<compile_context>
chip_gen: v7x
topology: tpu7x:2x2x1
jax: 0.10.0
libtpu: 0.0.40
codegen_flags: <defaults>
</compile_context>

<pallas_src>
import functools

import jax
import jax.numpy as jnp
import numpy as np
from jax.experimental import pallas as pl
from jax.experimental.pallas import tpu as pltpu

EPS = 1e-5


# ------------------------------ small helpers ------------------------------- #

def _round_up(x, m):
    return (x + m - 1) // m * m


def _vmem_limit(est_bytes):
    # Derived from the actual (double-buffered) block sizes of each call; capped
    # at 48 MiB so it also fits v7x's 64 MiB / TensorCore (v5e/v6e have 128 MiB).
    return int(min(max(2 * est_bytes, 24 << 20), 48 << 20))


def _pick_cout_tile(cpad_out):
    # 256-wide output tiles fill the 2x256^2 MXU on v6e/v7x; keep 128 on v5e
    # (4x128^2 MXU).
    try:
        prefer = 128 if "v5" in jax.devices()[0].device_kind.lower() else 256
    except Exception:  # pragma: no cover - non-TPU fallback
        prefer = 128
    return prefer if cpad_out % prefer == 0 else 128


# ----------------------------- Pallas kernels ------------------------------ #

def _conv3x3_stats_kernel(mask_ref, x_ref, w_ref, o_ref, stats_ref,
                          *, H, Wp, lead, nb):
    """3x3 / pad=1 / stride=1 conv as 9 contiguous-row-window MXU matmuls.

    x_ref:     (nb, L, Cpad)   flat spatially padded images: `lead` zero rows,
                               then (H+2)*Wp rows of the padded image, zero tail.
    w_ref:     (9, Cpad, tc)   tap-major (dy*3+dx) weights (resident per Cout tile).
    o_ref:     (nb, H*Wp, tc)  pre-BN conv output in padded-width layout; the two
                               seam columns per row are garbage (masked later).
    stats_ref: (8, tc)         rows 0/1 = per-channel sum / sum-of-squares over
                               *valid* pixels, accumulated across the innermost
                               (batch) grid axis.
    mask_ref:  (H*Wp, 1)       1.0 at valid output positions, 0.0 at the seams.
    """
    @pl.when(pl.program_id(2) == 0)
    def _init():
        stats_ref[...] = jnp.zeros_like(stats_ref)

    rows = H * Wp
    tc = w_ref.shape[-1]
    mask = mask_ref[...]                                   # (rows, 1) f32
    s = jnp.zeros((1, tc), jnp.float32)
    ss = jnp.zeros((1, tc), jnp.float32)

    for b in range(nb):                                    # static unroll
        acc = None
        for k in range(9):                                 # 9 MXU matmuls / image
            dy, dx = divmod(k, 3)
            # Contiguous row window (no strided slice, no reshape copy).  On v7x
            # the tap accumulation can additionally live in the MRB; here the
            # compiler keeps a single f32 accumulator.
            patch = x_ref[b, pl.ds(lead + dy * Wp + dx, rows), :]
            part = jnp.dot(patch, w_ref[k], preferred_element_type=jnp.float32)
            acc = part if acc is None else acc + part
        o_ref[b, :, :] = acc.astype(o_ref.dtype)
        am = acc * mask                                    # seam columns -> 0
        s = s + jnp.sum(am, axis=0, keepdims=True)
        ss = ss + jnp.sum(acc * am, axis=0, keepdims=True)

    # Single pair of tiny row updates per grid step (not per image).  Kept as two
    # plain sub-row RMWs for lowering robustness.
    stats_ref[0:1, :] += s
    stats_ref[1:2, :] += ss


def _bn_relu_pad_kernel(mask_ref, x_ref, sc_ref, sh_ref, o_ref, *, interior):
    """y = relu(x*scale + shift), written into the interior of the next conv's
    pre-padded flat layout; halo rows / seam columns are zeroed here (this is
    what makes the next conv's zero padding correct without a jnp.pad pass)."""
    rows = x_ref.shape[1]
    y = x_ref[0].astype(jnp.float32) * sc_ref[...] + sh_ref[...]
    y = jnp.maximum(y, 0.0) * mask_ref[...]
    o_ref[...] = jnp.zeros(o_ref.shape, o_ref.dtype)       # halo + seam + tail = 0
    o_ref[0, pl.ds(interior, rows), :] = y.astype(o_ref.dtype)


def _bn_add_relu_kernel(x_ref, sc_ref, sh_ref, id_ref, o_ref, *, interior):
    """y = relu(x*scale + shift + identity); identity is read from the interior
    window of the original flat padded input (no JAX-side slicing pass)."""
    rows = x_ref.shape[1]
    ident = id_ref[0, pl.ds(interior, rows), :].astype(jnp.float32)
    y = x_ref[0].astype(jnp.float32) * sc_ref[...] + sh_ref[...] + ident
    o_ref[0] = jnp.maximum(y, 0.0).astype(o_ref.dtype)


# ---------------------------- pallas_call wrappers -------------------------- #

def _conv3x3_with_stats(x_flat, w9, mask, *, H, Wp, lead, tc, store_dtype):
    """x_flat: (N, L, Cpad) flat padded images; w9: (9, Cpad, Cpad_out).
    Returns (pre: (N, H*Wp, Cpad_out) store_dtype,
             stats: (n_par*8, Cpad_out) f32 partial [sum; sumsq])."""
    n, L, cpad = x_flat.shape
    cpad_out = w9.shape[-1]
    rows = H * Wp
    j_tiles = cpad_out // tc

    # Split the batch into 2 "parallel" chunks with partial stats so both v7x
    # TensorCores get conv work even when j_tiles == 1.
    n_par = 2 if n % 2 == 0 else 1
    n_per = n // n_par

    # Batch several images per grid step under a VMEM budget (amortizes the
    # ~0.35us/step overhead and raises matmul M for small spatial layers).
    it_x = jnp.dtype(x_flat.dtype).itemsize
    it_o = jnp.dtype(store_dtype).itemsize
    per_img = L * cpad * it_x + rows * tc * it_o
    blk_w = 9 * cpad * tc * jnp.dtype(w9.dtype).itemsize
    fixed = blk_w + 8 * tc * 4 + rows * 128 * 4            # weights + stats + mask
    budget = 20 << 20
    nb = 1
    for cand in range(1, min(n_per, 8) + 1):
        if n_per % cand == 0 and 2 * (fixed + cand * per_img) + rows * tc * 4 <= budget:
            nb = cand
    spc = n_per // nb                                      # batch-steps per chunk

    est = 2 * (fixed + nb * per_img) + rows * tc * 4
    kernel = functools.partial(_conv3x3_stats_kernel, H=H, Wp=Wp, lead=lead, nb=nb)

    return pl.pallas_call(
        kernel,
        out_shape=(jax.ShapeDtypeStruct((n, rows, cpad_out), store_dtype),
                   jax.ShapeDtypeStruct((n_par * 8, cpad_out), jnp.float32)),
        grid=(j_tiles, n_par, spc),
        in_specs=[
            pl.BlockSpec((rows, 1), lambda j, p, s: (0, 0)),          # mask (resident)
            pl.BlockSpec((nb, L, cpad), lambda j, p, s: (p * spc + s, 0, 0)),
            pl.BlockSpec((9, cpad, tc), lambda j, p, s: (0, 0, j)),   # weights resident
        ],
        out_specs=(
            pl.BlockSpec((nb, rows, tc), lambda j, p, s: (p * spc + s, 0, j)),
            pl.BlockSpec((8, tc), lambda j, p, s: (p, j)),            # stats accumulator
        ),
        compiler_params=pltpu.CompilerParams(
            dimension_semantics=("parallel", "parallel", "arbitrary"),
            vmem_limit_bytes=_vmem_limit(est)),
    )(mask, x_flat, w9)


def _bn_relu_to_padded(pre, scale, shift, mask, *, L, interior, out_dtype):
    """BN affine + ReLU; output is the next conv's pre-padded flat input."""
    n, rows, cpad = pre.shape
    est = 2 * (rows * cpad * jnp.dtype(pre.dtype).itemsize
               + L * cpad * jnp.dtype(out_dtype).itemsize
               + rows * 128 * 4) + 4 * cpad * 4
    return pl.pallas_call(
        functools.partial(_bn_relu_pad_kernel, interior=interior),
        out_shape=jax.ShapeDtypeStruct((n, L, cpad), out_dtype),
        grid=(n,),
        in_specs=[
            pl.BlockSpec((rows, 1), lambda b: (0, 0)),
            pl.BlockSpec((1, rows, cpad), lambda b: (b, 0, 0)),
            pl.BlockSpec((1, cpad), lambda b: (0, 0)),                # resident
            pl.BlockSpec((1, cpad), lambda b: (0, 0)),                # resident
        ],
        out_specs=pl.BlockSpec((1, L, cpad), lambda b: (b, 0, 0)),
        compiler_params=pltpu.CompilerParams(
            dimension_semantics=("parallel",),
            vmem_limit_bytes=_vmem_limit(est)),
    )(mask, pre, scale, shift)


def _bn_add_relu_final(pre, scale, shift, identity, *, interior):
    """BN affine + residual add + ReLU (final).  identity = flat padded input."""
    n, rows, cpad = pre.shape
    L = identity.shape[1]
    est = 2 * (rows * cpad * jnp.dtype(pre.dtype).itemsize
               + L * cpad * jnp.dtype(identity.dtype).itemsize
               + rows * cpad * 4) + 4 * cpad * 4
    return pl.pallas_call(
        functools.partial(_bn_add_relu_kernel, interior=interior),
        out_shape=jax.ShapeDtypeStruct((n, rows, cpad), jnp.float32),
        grid=(n,),
        in_specs=[
            pl.BlockSpec((1, rows, cpad), lambda b: (b, 0, 0)),
            pl.BlockSpec((1, cpad), lambda b: (0, 0)),
            pl.BlockSpec((1, cpad), lambda b: (0, 0)),
            pl.BlockSpec((1, L, cpad), lambda b: (b, 0, 0)),
        ],
        out_specs=pl.BlockSpec((1, rows, cpad), lambda b: (b, 0, 0)),
        compiler_params=pltpu.CompilerParams(
            dimension_semantics=("parallel",),
            vmem_limit_bytes=_vmem_limit(est)),
    )(pre, scale, shift, identity)


# ------------------------------- JAX glue ---------------------------------- #

def _prep_weight(w_oihw, cpad):
    """torch (Cout,Cin,3,3) -> (9, Cpad, Cpad), tap-major, zero-padded channels."""
    cout, cin, _, _ = w_oihw.shape
    w = jnp.transpose(w_oihw.astype(jnp.float32), (2, 3, 1, 0)).reshape(9, cin, cout)
    return jnp.pad(w, ((0, 0), (0, cpad - cin), (0, cpad - cout)))


def _pad_affine(gamma, beta, cpad):
    c = gamma.shape[0]
    return (jnp.pad(gamma.astype(jnp.float32), (0, cpad - c)),
            jnp.pad(beta.astype(jnp.float32), (0, cpad - c)))


def _bn_scale_shift(stats, gamma, beta, count):
    """Finalize BN from (n_par*8, C) partial [sum; sumsq] rows."""
    stats = stats.reshape(-1, 8, stats.shape[-1]).sum(axis=0)
    mean = stats[0] / count
    var = jnp.maximum(stats[1] / count - mean * mean, 0.0)
    # NOTE: E[x^2]-E[x]^2 in f32 can cancel for very large count*magnitude;
    # adequate at ResNet34 scales.
    # TODO(synk): switch to merged per-chunk (mean, M2) statistics if this block
    # is reused with much larger batch*spatial extents.
    scale = gamma * jax.lax.rsqrt(var + EPS)
    shift = beta - mean * scale
    return scale[None, :], shift[None, :]


@functools.partial(jax.jit, static_argnames=("matmul_dtype", "store_dtype"))
def feature_basic_block(x_nchw, params, matmul_dtype=jnp.float32, store_dtype=None):
    # On v5e/v6e/v7x, bf16 MXU operands + bf16 pre-BN intermediates are the
    # recommended production setting (see main); the f32 default is kept so the
    # exact check against the f32 reference stays meaningful.
    if store_dtype is None:
        store_dtype = matmul_dtype

    n, c, h, w = x_nchw.shape
    cpad = _round_up(max(c, 128), 128)         # lane-dense / MXU-aligned channels
    hp, wp = h + 2, w + 2
    rows = h * wp                              # conv output rows (padded-width layout)
    lead = (-(wp + 1)) % 8                     # makes the interior start 8-aligned
    L = _round_up(lead + hp * wp + 2, 8)       # flat padded rows (+2 tap overrun slack)
    interior = lead + wp + 1
    count = n * h * w
    tc = _pick_cout_tile(cpad)

    # Single preparation pass over the (small) input: NHWC, channel pad, 1-px
    # spatial pad, flatten, row pad.  All later padding is fused into the kernels.
    x_nhwc = jnp.transpose(x_nchw, (0, 2, 3, 1)).astype(jnp.float32)
    x_padded = jnp.pad(x_nhwc, ((0, 0), (1, 1), (1, 1), (0, cpad - c)))
    x_flat = jnp.pad(x_padded.reshape(n, hp * wp, cpad),
                     ((0, 0), (lead, L - lead - hp * wp), (0, 0)))
    x_flat = x_flat.astype(matmul_dtype)

    # 1.0 at valid output positions, 0.0 at the 2 seam columns per padded-width row.
    mask = (jnp.arange(rows) % wp < w).astype(jnp.float32)[:, None]

    w1 = _prep_weight(params["w1"], cpad).astype(matmul_dtype)
    w2 = _prep_weight(params["w2"], cpad).astype(matmul_dtype)
    g1, bt1 = _pad_affine(params["g1"], params["bt1"], cpad)
    g2, bt2 = _pad_affine(params["g2"], params["bt2"], cpad)
    # NOTE: conv biases b1/b2 are intentionally not used -- a per-channel constant
    # added before training-mode BatchNorm is exactly cancelled by the mean
    # subtraction.  (Not valid for eval/running-stat BN.)

    # ---- stage 1: conv1 -> bn1 -> relu (written pre-padded for conv2) -------
    pre1, stats1 = _conv3x3_with_stats(x_flat, w1, mask, H=h, Wp=wp, lead=lead,
                                       tc=tc, store_dtype=store_dtype)
    sc1, sh1 = _bn_scale_shift(stats1, g1, bt1, count)
    h1 = _bn_relu_to_padded(pre1, sc1, sh1, mask, L=L, interior=interior,
                            out_dtype=matmul_dtype)

    # ---- stage 2: conv2 -> bn2 -> +identity -> relu --------------------------
    pre2, stats2 = _conv3x3_with_stats(h1, w2, mask, H=h, Wp=wp, lead=lead,
                                       tc=tc, store_dtype=store_dtype)
    sc2, sh2 = _bn_scale_shift(stats2, g2, bt2, count)
    out = _bn_add_relu_final(pre2, sc2, sh2, x_flat, interior=interior)

    out = out.reshape(n, h, wp, cpad)[:, :, :w, :c]
    return jnp.transpose(out, (0, 3, 1, 2))


# --------------------------- pure-JAX reference ----------------------------- #

def _reference(x, p):
    def conv(x, w, b):
        y = jax.lax.conv_general_dilated(
            x, w, window_strides=(1, 1), padding=((1, 1), (1, 1)),
            dimension_numbers=("NCHW", "OIHW", "NCHW"))
        return y + b[None, :, None, None]

    def bn(y, g, bt):
        mean = jnp.mean(y, axis=(0, 2, 3), keepdims=True)
        var = jnp.mean((y - mean) ** 2, axis=(0, 2, 3), keepdims=True)
        return (y - mean) * jax.lax.rsqrt(var + EPS) * g[None, :, None, None] \
            + bt[None, :, None, None]

    out = jax.nn.relu(bn(conv(x, p["w1"], p["b1"]), p["g1"], p["bt1"]))
    out = bn(conv(out, p["w2"], p["b2"]), p["g2"], p["bt2"]) + x
    return jax.nn.relu(out)


# ----------------------------------- main ----------------------------------- #

if __name__ == "__main__":
    N, C, H, W = 2, 4, 16, 16     # in_channel == n_channel (identity shortcut)
    key = jax.random.PRNGKey(0)
    ks = jax.random.split(key, 9)

    params = {
        "w1":  0.2 * jax.random.normal(ks[0], (C, C, 3, 3), jnp.float32),
        "b1":  0.1 * jax.random.normal(ks[1], (C,), jnp.float32),   # reference only
        "g1":  1.0 + 0.1 * jax.random.normal(ks[2], (C,), jnp.float32),
        "bt1": 0.1 * jax.random.normal(ks[3], (C,), jnp.float32),
        "w2":  0.2 * jax.random.normal(ks[4], (C, C, 3, 3), jnp.float32),
        "b2":  0.1 * jax.random.normal(ks[5], (C,), jnp.float32),   # reference only
        "g2":  1.0 + 0.1 * jax.random.normal(ks[6], (C,), jnp.float32),
        "bt2": 0.1 * jax.random.normal(ks[7], (C,), jnp.float32),
    }
    x = jax.random.normal(ks[8], (N, C, H, W), jnp.float32)

    # TODO(synk): shortcut_downsample is an arbitrary user-supplied nn.Module;
    # only the default (None -> identity shortcut) path is implemented.

    # f32 MXU operands / f32 intermediates: exact check against the reference
    # (which keeps the conv biases -- they cancel under training-mode BN).
    out = feature_basic_block(x, params)
    jax.block_until_ready(out)
    ref = _reference(x, params)
    np.testing.assert_allclose(np.asarray(out), np.asarray(ref),
                               rtol=2e-3, atol=2e-3)

    # bf16 MXU operands + bf16 pre-BN intermediates (recommended on v5e/v6e/v7x);
    # BN statistics / affine math stay f32.  Loose smoke-test bound only.
    out_bf16 = feature_basic_block(x, params, matmul_dtype=jnp.bfloat16)
    jax.block_until_ready(out_bf16)
    assert bool(jnp.isfinite(out_bf16).all())
    max_diff = float(jnp.max(jnp.abs(out_bf16.astype(jnp.float32) - ref)))
    assert max_diff < 0.5, f"bf16 path drifted too far: {max_diff}"

    print("KERNEL_OK")
</pallas_src>

<mosaic_0001>
module attributes {stable_mosaic.version = 11 : i64} {
  func.func @_conv3x3_stats_kernel(%arg0: i32, %arg1: i32, %arg2: i32, %arg3: memref<288x1xf32, #tpu.memory_space<vmem>>, %arg4: memref<1x336x128xf32, #tpu.memory_space<vmem>>, %arg5: memref<9x128x128xf32, #tpu.memory_space<vmem>>, %arg6: memref<1x288x128xf32, #tpu.memory_space<vmem>>, %arg7: memref<8x128xf32, #tpu.memory_space<vmem>>) attributes {dimension_semantics = [#tpu.dimension_semantics<parallel>, #tpu.dimension_semantics<parallel>, #tpu.dimension_semantics<arbitrary>], iteration_bounds = array<i64: 1, 2, 1>, scalar_prefetch = 0 : i64, scratch_operands = 0 : i64, tpu.core_type = #tpu.core_type<tc>, window_params = [{pipeline_mode = #tpu.pipeline_mode<synchronous>, transform_indices = @transform_0, window_bounds = array<i64: 288, 1>}, {transform_indices = @transform_1, window_bounds = array<i64: 1, 336, 128>}, {transform_indices = @transform_2, window_bounds = array<i64: 9, 128, 128>}, {transform_indices = @transform_3, window_bounds = array<i64: 1, 288, 128>}, {transform_indices = @transform_4, window_bounds = array<i64: 8, 128>}]} {
    %c0_i32 = arith.constant 0 : i32
    %0 = arith.cmpi eq, %arg2, %c0_i32 : i32
    %1 = arith.extui %0 : i1 to i32
    %c0_i32_0 = arith.constant 0 : i32
    %2 = arith.cmpi ne, %1, %c0_i32_0 : i32
    scf.if %2 {
      %cst_65 = arith.constant 0.000000e+00 : f32
      %77 = vector.broadcast %cst_65 : f32 to vector<8x128xf32>
      %c0_66 = arith.constant 0 : index
      %c0_67 = arith.constant 0 : index
      %78 = vector.load %arg7[%c0_66, %c0_67] : memref<8x128xf32, #tpu.memory_space<vmem>>, vector<8x128xf32>
      tpu.vector_store %arg7[%c0_66, %c0_67], %77 {strides = array<i32>} : memref<8x128xf32, #tpu.memory_space<vmem>>, vector<8x128xf32>,
    } else {
    }
    %c0 = arith.constant 0 : index
    %c0_1 = arith.constant 0 : index
    %3 = vector.load %arg3[%c0, %c0_1] : memref<288x1xf32, #tpu.memory_space<vmem>>, vector<288x1xf32>
    %cst = arith.constant 0.000000e+00 : f32
    %4 = vector.broadcast %cst : f32 to vector<1x128xf32>
    %cst_2 = arith.constant 0.000000e+00 : f32
    %5 = vector.broadcast %cst_2 : f32 to vector<1x128xf32>
    %c0_3 = arith.constant 0 : index
    %c5 = arith.constant 5 : index
    %c0_4 = arith.constant 0 : index
    %6 = vector.load %arg4[%c0_3, %c5, %c0_4] : memref<1x336x128xf32, #tpu.memory_space<vmem>>, vector<1x288x128xf32>
    %7 = vector.shape_cast %6 : vector<1x288x128xf32> to vector<288x128xf32>
    %c0_5 = arith.constant 0 : index
    %c0_6 = arith.constant 0 : index
    %c0_7 = arith.constant 0 : index
    %8 = vector.load %arg5[%c0_5, %c0_6, %c0_7] : memref<9x128x128xf32, #tpu.memory_space<vmem>>, vector<1x128x128xf32>
    %9 = vector.shape_cast %8 : vector<1x128x128xf32> to vector<128x128xf32>
    %cst_8 = arith.constant dense<0.000000e+00> : vector<288x128xf32>
    %10 = tpu.matmul %7, %9, %cst_8 {dimension_numbers = #tpu.dot_dimension_numbers<[1], [0], [0], [1], [0, 0, 1, 1], [], []>} : vector<288x128xf32>, vector<128x128xf32>, vector<288x128xf32> -> vector<288x128xf32>
    %c0_9 = arith.constant 0 : index
    %c6 = arith.constant 6 : index
    %c0_10 = arith.constant 0 : index
    %11 = vector.load %arg4[%c0_9, %c6, %c0_10] : memref<1x336x128xf32, #tpu.memory_space<vmem>>, vector<1x288x128xf32>
    %12 = vector.shape_cast %11 : vector<1x288x128xf32> to vector<288x128xf32>
    %c1 = arith.constant 1 : index
    %c0_11 = arith.constant 0 : index
    %c0_12 = arith.constant 0 : index
    %13 = vector.load %arg5[%c1, %c0_11, %c0_12] : memref<9x128x128xf32, #tpu.memory_space<vmem>>, vector<1x128x128xf32>
    %14 = vector.shape_cast %13 : vector<1x128x128xf32> to vector<128x128xf32>
    %cst_13 = arith.constant dense<0.000000e+00> : vector<288x128xf32>
    %15 = tpu.matmul %12, %14, %cst_13 {dimension_numbers = #tpu.dot_dimension_numbers<[1], [0], [0], [1], [0, 0, 1, 1], [], []>} : vector<288x128xf32>, vector<128x128xf32>, vector<288x128xf32> -> vector<288x128xf32>
    %16 = arith.addf %10, %15 : vector<288x128xf32>
    %c0_14 = arith.constant 0 : index
    %c7 = arith.constant 7 : index
    %c0_15 = arith.constant 0 : index
    %17 = vector.load %arg4[%c0_14, %c7, %c0_15] : memref<1x336x128xf32, #tpu.memory_space<vmem>>, vector<1x288x128xf32>
    %18 = vector.shape_cast %17 : vector<1x288x128xf32> to vector<288x128xf32>
    %c2 = arith.constant 2 : index
    %c0_16 = arith.constant 0 : index
    %c0_17 = arith.constant 0 : index
    %19 = vector.load %arg5[%c2, %c0_16, %c0_17] : memref<9x128x128xf32, #tpu.memory_space<vmem>>, vector<1x128x128xf32>
    %20 = vector.shape_cast %19 : vector<1x128x128xf32> to vector<128x128xf32>
    %cst_18 = arith.constant dense<0.000000e+00> : vector<288x128xf32>
    %21 = tpu.matmul %18, %20, %cst_18 {dimension_numbers = #tpu.dot_dimension_numbers<[1], [0], [0], [1], [0, 0, 1, 1], [], []>} : vector<288x128xf32>, vector<128x128xf32>, vector<288x128xf32> -> vector<288x128xf32>
    %22 = arith.addf %16, %21 : vector<288x128xf32>
    %c0_19 = arith.constant 0 : index
    %c23 = arith.constant 23 : index
    %c0_20 = arith.constant 0 : index
    %23 = vector.load %arg4[%c0_19, %c23, %c0_20] : memref<1x336x128xf32, #tpu.memory_space<vmem>>, vector<1x288x128xf32>
    %24 = vector.shape_cast %23 : vector<1x288x128xf32> to vector<288x128xf32>
    %c3 = arith.constant 3 : index
    %c0_21 = arith.constant 0 : index
    %c0_22 = arith.constant 0 : index
    %25 = vector.load %arg5[%c3, %c0_21, %c0_22] : memref<9x128x128xf32, #tpu.memory_space<vmem>>, vector<1x128x128xf32>
    %26 = vector.shape_cast %25 : vector<1x128x128xf32> to vector<128x128xf32>
    %cst_23 = arith.constant dense<0.000000e+00> : vector<288x128xf32>
    %27 = tpu.matmul %24, %26, %cst_23 {dimension_numbers = #tpu.dot_dimension_numbers<[1], [0], [0], [1], [0, 0, 1, 1], [], []>} : vector<288x128xf32>, vector<128x128xf32>, vector<288x128xf32> -> vector<288x128xf32>
    %28 = arith.addf %22, %27 : vector<288x128xf32>
    %c0_24 = arith.constant 0 : index
    %c24 = arith.constant 24 : index
    %c0_25 = arith.constant 0 : index
    %29 = vector.load %arg4[%c0_24, %c24, %c0_25] : memref<1x336x128xf32, #tpu.memory_space<vmem>>, vector<1x288x128xf32>
    %30 = vector.shape_cast %29 : vector<1x288x128xf32> to vector<288x128xf32>
    %c4 = arith.constant 4 : index
    %c0_26 = arith.constant 0 : index
    %c0_27 = arith.constant 0 : index
    %31 = vector.load %arg5[%c4, %c0_26, %c0_27] : memref<9x128x128xf32, #tpu.memory_space<vmem>>, vector<1x128x128xf32>
    %32 = vector.shape_cast %31 : vector<1x128x128xf32> to vector<128x128xf32>
    %cst_28 = arith.constant dense<0.000000e+00> : vector<288x128xf32>
    %33 = tpu.matmul %30, %32, %cst_28 {dimension_numbers = #tpu.dot_dimension_numbers<[1], [0], [0], [1], [0, 0, 1, 1], [], []>} : vector<288x128xf32>, vector<128x128xf32>, vector<288x128xf32> -> vector<288x128xf32>
    %34 = arith.addf %28, %33 : vector<288x128xf32>
    %c0_29 = arith.constant 0 : index
    %c25 = arith.constant 25 : index
    %c0_30 = arith.constant 0 : index
    %35 = vector.load %arg4[%c0_29, %c25, %c0_30] : memref<1x336x128xf32, #tpu.memory_space<vmem>>, vector<1x288x128xf32>
    %36 = vector.shape_cast %35 : vector<1x288x128xf32> to vector<288x128xf32>
    %c5_31 = arith.constant 5 : index
    %c0_32 = arith.constant 0 : index
    %c0_33 = arith.constant 0 : index
    %37 = vector.load %arg5[%c5_31, %c0_32, %c0_33] : memref<9x128x128xf32, #tpu.memory_space<vmem>>, vector<1x128x128xf32>
    %38 = vector.shape_cast %37 : vector<1x128x128xf32> to vector<128x128xf32>
    %cst_34 = arith.constant dense<0.000000e+00> : vector<288x128xf32>
    %39 = tpu.matmul %36, %38, %cst_34 {dimension_numbers = #tpu.dot_dimension_numbers<[1], [0], [0], [1], [0, 0, 1, 1], [], []>} : vector<288x128xf32>, vector<128x128xf32>, vector<288x128xf32> -> vector<288x128xf32>
    %40 = arith.addf %34, %39 : vector<288x128xf32>
    %c0_35 = arith.constant 0 : index
    %c41 = arith.constant 41 : index
    %c0_36 = arith.constant 0 : index
    %41 = vector.load %arg4[%c0_35, %c41, %c0_36] : memref<1x336x128xf32, #tpu.memory_space<vmem>>, vector<1x288x128xf32>
    %42 = vector.shape_cast %41 : vector<1x288x128xf32> to vector<288x128xf32>
    %c6_37 = arith.constant 6 : index
    %c0_38 = arith.constant 0 : index
    %c0_39 = arith.constant 0 : index
    %43 = vector.load %arg5[%c6_37, %c0_38, %c0_39] : memref<9x128x128xf32, #tpu.memory_space<vmem>>, vector<1x128x128xf32>
    %44 = vector.shape_cast %43 : vector<1x128x128xf32> to vector<128x128xf32>
    %cst_40 = arith.constant dense<0.000000e+00> : vector<288x128xf32>
    %45 = tpu.matmul %42, %44, %cst_40 {dimension_numbers = #tpu.dot_dimension_numbers<[1], [0], [0], [1], [0, 0, 1, 1], [], []>} : vector<288x128xf32>, vector<128x128xf32>, vector<288x128xf32> -> vector<288x128xf32>
    %46 = arith.addf %40, %45 : vector<288x128xf32>
    %c0_41 = arith.constant 0 : index
    %c42 = arith.constant 42 : index
    %c0_42 = arith.constant 0 : index
    %47 = vector.load %arg4[%c0_41, %c42, %c0_42] : memref<1x336x128xf32, #tpu.memory_space<vmem>>, vector<1x288x128xf32>
    %48 = vector.shape_cast %47 : vector<1x288x128xf32> to vector<288x128xf32>
    %c7_43 = arith.constant 7 : index
    %c0_44 = arith.constant 0 : index
    %c0_45 = arith.constant 0 : index
    %49 = vector.load %arg5[%c7_43, %c0_44, %c0_45] : memref<9x128x128xf32, #tpu.memory_space<vmem>>, vector<1x128x128xf32>
    %50 = vector.shape_cast %49 : vector<1x128x128xf32> to vector<128x128xf32>
    %cst_46 = arith.constant dense<0.000000e+00> : vector<288x128xf32>
    %51 = tpu.matmul %48, %50, %cst_46 {dimension_numbers = #tpu.dot_dimension_numbers<[1], [0], [0], [1], [0, 0, 1, 1], [], []>} : vector<288x128xf32>, vector<128x128xf32>, vector<288x128xf32> -> vector<288x128xf32>
    %52 = arith.addf %46, %51 : vector<288x128xf32>
    %c0_47 = arith.constant 0 : index
    %c43 = arith.constant 43 : index
    %c0_48 = arith.constant 0 : index
    %53 = vector.load %arg4[%c0_47, %c43, %c0_48] : memref<1x336x128xf32, #tpu.memory_space<vmem>>, vector<1x288x128xf32>
    %54 = vector.shape_cast %53 : vector<1x288x128xf32> to vector<288x128xf32>
    %c8 = arith.constant 8 : index
    %c0_49 = arith.constant 0 : index
    %c0_50 = arith.constant 0 : index
    %55 = vector.load %arg5[%c8, %c0_49, %c0_50] : memref<9x128x128xf32, #tpu.memory_space<vmem>>, vector<1x128x128xf32>
    %56 = vector.shape_cast %55 : vector<1x128x128xf32> to vector<128x128xf32>
    %cst_51 = arith.constant dense<0.000000e+00> : vector<288x128xf32>
    %57 = tpu.matmul %54, %56, %cst_51 {dimension_numbers = #tpu.dot_dimension_numbers<[1], [0], [0], [1], [0, 0, 1, 1], [], []>} : vector<288x128xf32>, vector<128x128xf32>, vector<288x128xf32> -> vector<288x128xf32>
    %58 = arith.addf %52, %57 : vector<288x128xf32>
    %c0_52 = arith.constant 0 : index
    %c0_53 = arith.constant 0 : index
    %c0_54 = arith.constant 0 : index
    %59 = vector.load %arg6[%c0_52, %c0_53, %c0_54] : memref<1x288x128xf32, #tpu.memory_space<vmem>>, vector<1x288x128xf32>
    %60 = vector.shape_cast %59 : vector<1x288x128xf32> to vector<288x128xf32>
    %61 = vector.shape_cast %58 : vector<288x128xf32> to vector<1x288x128xf32>
    tpu.vector_store %arg6[%c0_52, %c0_53, %c0_54], %61 {strides = array<i32>} : memref<1x288x128xf32, #tpu.memory_space<vmem>>, vector<1x288x128xf32>,
    %62 = vector.broadcast %3 : vector<288x1xf32> to vector<288x128xf32>
    %63 = arith.mulf %58, %62 : vector<288x128xf32>
    %cst_55 = arith.constant dense<0.000000e+00> : vector<128xf32>
    %64 = vector.multi_reduction <add>, %63, %cst_55 [0] : vector<288x128xf32> to vector<128xf32>
    %65 = vector.shape_cast %64 : vector<128xf32> to vector<1x128xf32>
    %66 = arith.addf %4, %65 : vector<1x128xf32>
    %67 = arith.mulf %58, %63 : vector<288x128xf32>
    %cst_56 = arith.constant dense<0.000000e+00> : vector<128xf32>
    %68 = vector.multi_reduction <add>, %67, %cst_56 [0] : vector<288x128xf32> to vector<128xf32>
    %69 = vector.shape_cast %68 : vector<128xf32> to vector<1x128xf32>
    %70 = arith.addf %5, %69 : vector<1x128xf32>
    %c0_57 = arith.constant 0 : index
    %c0_58 = arith.constant 0 : index
    %71 = vector.load %arg7[%c0_57, %c0_58] : memref<8x128xf32, #tpu.memory_space<vmem>>, vector<1x128xf32>
    %72 = arith.addf %71, %66 : vector<1x128xf32>
    %c0_59 = arith.constant 0 : index
    %c0_60 = arith.constant 0 : index
    %73 = vector.load %arg7[%c0_59, %c0_60] : memref<8x128xf32, #tpu.memory_space<vmem>>, vector<1x128xf32>
    tpu.vector_store %arg7[%c0_59, %c0_60], %72 {strides = array<i32>} : memref<8x128xf32, #tpu.memory_space<vmem>>, vector<1x128xf32>,
    %c1_61 = arith.constant 1 : index
    %c0_62 = arith.constant 0 : index
    %74 = vector.load %arg7[%c1_61, %c0_62] : memref<8x128xf32, #tpu.memory_space<vmem>>, vector<1x128xf32>
    %75 = arith.addf %74, %70 : vector<1x128xf32>
    %c1_63 = arith.constant 1 : index
    %c0_64 = arith.constant 0 : index
    %76 = vector.load %arg7[%c1_63, %c0_64] : memref<8x128xf32, #tpu.memory_space<vmem>>, vector<1x128xf32>
    tpu.vector_store %arg7[%c1_63, %c0_64], %75 {strides = array<i32>} : memref<8x128xf32, #tpu.memory_space<vmem>>, vector<1x128xf32>,
    return
  }
  func.func @transform_0(%arg0: i32, %arg1: i32, %arg2: i32) -> (i32, i32) {
    %c0_i32 = arith.constant 0 : i32
    %c0_i32_0 = arith.constant 0 : i32
    %c0_i32_1 = arith.constant 0 : i32
    return %c0_i32, %c0_i32_0 : i32, i32
  }
  func.func @transform_1(%arg0: i32, %arg1: i32, %arg2: i32) -> (i32, i32, i32) {
    %c1_i32 = arith.constant 1 : i32
    %0 = arith.muli %arg1, %c1_i32 : i32
    %1 = arith.addi %0, %arg2 : i32
    %c0_i32 = arith.constant 0 : i32
    %c0_i32_0 = arith.constant 0 : i32
    %c0_i32_1 = arith.constant 0 : i32
    return %1, %c0_i32, %c0_i32_0 : i32, i32, i32
  }
  func.func @transform_2(%arg0: i32, %arg1: i32, %arg2: i32) -> (i32, i32, i32) {
    %c0_i32 = arith.constant 0 : i32
    %c0_i32_0 = arith.constant 0 : i32
    %c0_i32_1 = arith.constant 0 : i32
    return %c0_i32, %c0_i32_0, %arg0 : i32, i32, i32
  }
  func.func @transform_3(%arg0: i32, %arg1: i32, %arg2: i32) -> (i32, i32, i32) {
    %c1_i32 = arith.constant 1 : i32
    %0 = arith.muli %arg1, %c1_i32 : i32
    %1 = arith.addi %0, %arg2 : i32
    %c0_i32 = arith.constant 0 : i32
    %c0_i32_0 = arith.constant 0 : i32
    return %1, %c0_i32, %arg0 : i32, i32, i32
  }
  func.func @transform_4(%arg0: i32, %arg1: i32, %arg2: i32) -> (i32, i32) {
    %c0_i32 = arith.constant 0 : i32
    return %arg1, %arg0 : i32, i32
  }
}

module attributes {stable_mosaic.version = 11 : i64} {
  func.func @_bn_relu_pad_kernel(%arg0: i32, %arg1: memref<288x1xf32, #tpu.memory_space<vmem>>, %arg2: memref<1x288x128xf32, #tpu.memory_space<vmem>>, %arg3: memref<1x128xf32, #tpu.memory_space<vmem>>, %arg4: memref<1x128xf32, #tpu.memory_space<vmem>>, %arg5: memref<1x336x128xf32, #tpu.memory_space<vmem>>) attributes {dimension_semantics = [#tpu.dimension_semantics<parallel>], iteration_bounds = array<i64: 2>, scalar_prefetch = 0 : i64, scratch_operands = 0 : i64, tpu.core_type = #tpu.core_type<tc>, window_params = [{pipeline_mode = #tpu.pipeline_mode<synchronous>, transform_indices = @transform_0, window_bounds = array<i64: 288, 1>}, {transform_indices = @transform_1, window_bounds = array<i64: 1, 288, 128>}, {pipeline_mode = #tpu.pipeline_mode<synchronous>, transform_indices = @transform_2, window_bounds = array<i64: 1, 128>}, {pipeline_mode = #tpu.pipeline_mode<synchronous>, transform_indices = @transform_3, window_bounds = array<i64: 1, 128>}, {transform_indices = @transform_4, window_bounds = array<i64: 1, 336, 128>}]} {
    %c0 = arith.constant 0 : index
    %c0_0 = arith.constant 0 : index
    %c0_1 = arith.constant 0 : index
    %0 = vector.load %arg2[%c0, %c0_0, %c0_1] : memref<1x288x128xf32, #tpu.memory_space<vmem>>, vector<1x288x128xf32>
    %1 = vector.shape_cast %0 : vector<1x288x128xf32> to vector<288x128xf32>
    %c0_2 = arith.constant 0 : index
    %c0_3 = arith.constant 0 : index
    %2 = vector.load %arg3[%c0_2, %c0_3] : memref<1x128xf32, #tpu.memory_space<vmem>>, vector<1x128xf32>
    %3 = vector.broadcast %2 : vector<1x128xf32> to vector<288x128xf32>
    %4 = arith.mulf %1, %3 : vector<288x128xf32>
    %c0_4 = arith.constant 0 : index
    %c0_5 = arith.constant 0 : index
    %5 = vector.load %arg4[%c0_4, %c0_5] : memref<1x128xf32, #tpu.memory_space<vmem>>, vector<1x128xf32>
    %6 = vector.broadcast %5 : vector<1x128xf32> to vector<288x128xf32>
    %7 = arith.addf %4, %6 : vector<288x128xf32>
    %cst = arith.constant 0.000000e+00 : f32
    %8 = vector.broadcast %cst : f32 to vector<288x128xf32>
    %9 = arith.maximumf %7, %8 : vector<288x128xf32>
    %c0_6 = arith.constant 0 : index
    %c0_7 = arith.constant 0 : index
    %10 = vector.load %arg1[%c0_6, %c0_7] : memref<288x1xf32, #tpu.memory_space<vmem>>, vector<288x1xf32>
    %11 = vector.broadcast %10 : vector<288x1xf32> to vector<288x128xf32>
    %12 = arith.mulf %9, %11 : vector<288x128xf32>
    %cst_8 = arith.constant 0.000000e+00 : f32
    %13 = vector.broadcast %cst_8 : f32 to vector<1x336x128xf32>
    %c0_9 = arith.constant 0 : index
    %c0_10 = arith.constant 0 : index
    %c0_11 = arith.constant 0 : index
    %14 = vector.load %arg5[%c0_9, %c0_10, %c0_11] : memref<1x336x128xf32, #tpu.memory_space<vmem>>, vector<1x336x128xf32>
    tpu.vector_store %arg5[%c0_9, %c0_10, %c0_11], %13 {strides = array<i32>} : memref<1x336x128xf32, #tpu.memory_space<vmem>>, vector<1x336x128xf32>,
    %c0_12 = arith.constant 0 : index
    %c24 = arith.constant 24 : index
    %c0_13 = arith.constant 0 : index
    %15 = vector.load %arg5[%c0_12, %c24, %c0_13] : memref<1x336x128xf32, #tpu.memory_space<vmem>>, vector<1x288x128xf32>
    %16 = vector.shape_cast %15 : vector<1x288x128xf32> to vector<288x128xf32>
    %17 = vector.shape_cast %12 : vector<288x128xf32> to vector<1x288x128xf32>
    tpu.vector_store %arg5[%c0_12, %c24, %c0_13], %17 {strides = array<i32>} : memref<1x336x128xf32, #tpu.memory_space<vmem>>, vector<1x288x128xf32>,
    return
  }
  func.func @transform_0(%arg0: i32) -> (i32, i32) {
    %c0_i32 = arith.constant 0 : i32
    %c0_i32_0 = arith.constant 0 : i32
    %c0_i32_1 = arith.constant 0 : i32
    return %c0_i32, %c0_i32_0 : i32, i32
  }
  func.func @transform_1(%arg0: i32) -> (i32, i32, i32) {
    %c0_i32 = arith.constant 0 : i32
    %c0_i32_0 = arith.constant 0 : i32
    %c0_i32_1 = arith.constant 0 : i32
    return %arg0, %c0_i32, %c0_i32_0 : i32, i32, i32
  }
  func.func @transform_2(%arg0: i32) -> (i32, i32) {
    %c0_i32 = arith.constant 0 : i32
    %c0_i32_0 = arith.constant 0 : i32
    %c0_i32_1 = arith.constant 0 : i32
    return %c0_i32, %c0_i32_0 : i32, i32
  }
  func.func @transform_3(%arg0: i32) -> (i32, i32) {
    %c0_i32 = arith.constant 0 : i32
    %c0_i32_0 = arith.constant 0 : i32
    %c0_i32_1 = arith.constant 0 : i32
    return %c0_i32, %c0_i32_0 : i32, i32
  }
  func.func @transform_4(%arg0: i32) -> (i32, i32, i32) {
    %c0_i32 = arith.constant 0 : i32
    %c0_i32_0 = arith.constant 0 : i32
    %c0_i32_1 = arith.constant 0 : i32
    return %arg0, %c0_i32, %c0_i32_0 : i32, i32, i32
  }
}

module attributes {stable_mosaic.version = 11 : i64} {
  func.func @_bn_add_relu_kernel(%arg0: i32, %arg1: memref<1x288x128xf32, #tpu.memory_space<vmem>>, %arg2: memref<1x128xf32, #tpu.memory_space<vmem>>, %arg3: memref<1x128xf32, #tpu.memory_space<vmem>>, %arg4: memref<1x336x128xf32, #tpu.memory_space<vmem>>, %arg5: memref<1x288x128xf32, #tpu.memory_space<vmem>>) attributes {dimension_semantics = [#tpu.dimension_semantics<parallel>], iteration_bounds = array<i64: 2>, scalar_prefetch = 0 : i64, scratch_operands = 0 : i64, tpu.core_type = #tpu.core_type<tc>, window_params = [{transform_indices = @transform_0, window_bounds = array<i64: 1, 288, 128>}, {pipeline_mode = #tpu.pipeline_mode<synchronous>, transform_indices = @transform_1, window_bounds = array<i64: 1, 128>}, {pipeline_mode = #tpu.pipeline_mode<synchronous>, transform_indices = @transform_2, window_bounds = array<i64: 1, 128>}, {transform_indices = @transform_3, window_bounds = array<i64: 1, 336, 128>}, {transform_indices = @transform_4, window_bounds = array<i64: 1, 288, 128>}]} {
    %c0 = arith.constant 0 : index
    %c24 = arith.constant 24 : index
    %c0_0 = arith.constant 0 : index
    %0 = vector.load %arg4[%c0, %c24, %c0_0] : memref<1x336x128xf32, #tpu.memory_space<vmem>>, vector<1x288x128xf32>
    %1 = vector.shape_cast %0 : vector<1x288x128xf32> to vector<288x128xf32>
    %c0_1 = arith.constant 0 : index
    %c0_2 = arith.constant 0 : index
    %c0_3 = arith.constant 0 : index
    %2 = vector.load %arg1[%c0_1, %c0_2, %c0_3] : memref<1x288x128xf32, #tpu.memory_space<vmem>>, vector<1x288x128xf32>
    %3 = vector.shape_cast %2 : vector<1x288x128xf32> to vector<288x128xf32>
    %c0_4 = arith.constant 0 : index
    %c0_5 = arith.constant 0 : index
    %4 = vector.load %arg2[%c0_4, %c0_5] : memref<1x128xf32, #tpu.memory_space<vmem>>, vector<1x128xf32>
    %5 = vector.broadcast %4 : vector<1x128xf32> to vector<288x128xf32>
    %6 = arith.mulf %3, %5 : vector<288x128xf32>
    %c0_6 = arith.constant 0 : index
    %c0_7 = arith.constant 0 : index
    %7 = vector.load %arg3[%c0_6, %c0_7] : memref<1x128xf32, #tpu.memory_space<vmem>>, vector<1x128xf32>
    %8 = vector.broadcast %7 : vector<1x128xf32> to vector<288x128xf32>
    %9 = arith.addf %6, %8 : vector<288x128xf32>
    %10 = arith.addf %9, %1 : vector<288x128xf32>
    %cst = arith.constant 0.000000e+00 : f32
    %11 = vector.broadcast %cst : f32 to vector<288x128xf32>
    %12 = arith.maximumf %10, %11 : vector<288x128xf32>
    %c0_8 = arith.constant 0 : index
    %c0_9 = arith.constant 0 : index
    %c0_10 = arith.constant 0 : index
    %13 = vector.load %arg5[%c0_8, %c0_9, %c0_10] : memref<1x288x128xf32, #tpu.memory_space<vmem>>, vector<1x288x128xf32>
    %14 = vector.shape_cast %13 : vector<1x288x128xf32> to vector<288x128xf32>
    %15 = vector.shape_cast %12 : vector<288x128xf32> to vector<1x288x128xf32>
    tpu.vector_store %arg5[%c0_8, %c0_9, %c0_10], %15 {strides = array<i32>} : memref<1x288x128xf32, #tpu.memory_space<vmem>>, vector<1x288x128xf32>,
    return
  }
  func.func @transform_0(%arg0: i32) -> (i32, i32, i32) {
    %c0_i32 = arith.constant 0 : i32
    %c0_i32_0 = arith.constant 0 : i32
    %c0_i32_1 = arith.constant 0 : i32
    return %arg0, %c0_i32, %c0_i32_0 : i32, i32, i32
  }
  func.func @transform_1(%arg0: i32) -> (i32, i32) {
    %c0_i32 = arith.constant 0 : i32
    %c0_i32_0 = arith.constant 0 : i32
    %c0_i32_1 = arith.constant 0 : i32
    return %c0_i32, %c0_i32_0 : i32, i32
  }
  func.func @transform_2(%arg0: i32) -> (i32, i32) {
    %c0_i32 = arith.constant 0 : i32
    %c0_i32_0 = arith.constant 0 : i32
    %c0_i32_1 = arith.constant 0 : i32
    return %c0_i32, %c0_i32_0 : i32, i32
  }
  func.func @transform_3(%arg0: i32) -> (i32, i32, i32) {
    %c0_i32 = arith.constant 0 : i32
    %c0_i32_0 = arith.constant 0 : i32
    %c0_i32_1 = arith.constant 0 : i32
    return %arg0, %c0_i32, %c0_i32_0 : i32, i32, i32
  }
  func.func @transform_4(%arg0: i32) -> (i32, i32, i32) {
    %c0_i32 = arith.constant 0 : i32
    %c0_i32_0 = arith.constant 0 : i32
    %c0_i32_1 = arith.constant 0 : i32
    return %arg0, %c0_i32, %c0_i32_0 : i32, i32, i32
  }
}

</mosaic_0001>

<bundles_post_ra>
// kernel: feature_basic_block.7
= control target key start
LH: loop header
LB: loop body
LE: loop exit
PB: predicated region body
PF: predicated region fallthrough
CT: control target
= control target key end

     0   :  { %s606_s15 = smov 0   ;;  %s830_s0 = inlined_call_operand.vmem [shape: f32[2,288,128], index: 0, kind: input, shape index: {}]   ;;  %s831_s1 = inlined_call_operand.vmem [shape: f32[1,128], index: 1, kind: input, shape index: {}]   ;;  %s832_s2 = inlined_call_operand.vmem [shape: f32[1,128], index: 2, kind: input, shape index: {}]   ;;  %s833_s3 = inlined_call_operand.vmem [shape: f32[2,336,128], index: 3, kind: input, shape index: {}]   ;;  %s834_s4 = inlined_call_operand.vmem [shape: f32[2,288,128], index: 4, kind: output, shape index: {}]  }
   0x1 LB: > { %s551_s16 = sadd.s32 4294967295, %s579_s15   ;;  %p555_p0 = scmp.ge.s32.totalorder %s579_s15, 1  ;;  %s579_s15 = sphi %s606_s15, %s14_s15  }
   0x2   : > { %p172_p1 = scmp.lt.s32.totalorder %s579_s15, 3 }
   0x4   : > { %p173_p2 = pnand %p555_p0, %p172_p1 }
   0x5   : > { %p203_p3 = scmp.lt.s32.totalorder (!%p173_p2), %s551_s16, 1  ;;  %v621_v0 = vld [vmem:[%s831_s1] ss:$0 sm:$0xff] (!%p173_p2) }
   0x6   : > { %176 = sbr.rel (%p173_p2) target bundleno = 63 (0x3f), region = 36  ;;  %v633_v1 = vld [vmem:[%s832_s2] ss:$0 sm:$0xff] (!%p173_p2) }
   0xd   : > { %s836_s16 = smov (!%p203_p3, %s551_s16), 1 }
   0xe   : > { %s563_s17 = smul.u32 288, %s836_s16 }
   0xf   : > { %s564_s18 = smul.u32 336, %s836_s16 }
  0x10   : > { %s628_s23 = scalar_lea.vmem %s830_s0, %s563_s17  ;;  %s669_s5 = scalar_lea.vmem %s834_s4, %s563_s17 }
  0x11   : > { %s638_s28 = scalar_lea.vmem %s833_s3, %s564_s18  ;;  %v254_v2 = vld [vmem:[%s628_s23] sm:$0xff]  ;;  %v255_v3 = vld [vmem:[%s628_s23 + $0x8] sm:$0xff]  ;;  %v256_v4 = vld [vmem:[%s628_s23 + $0x10] sm:$0xff] }
  0x12   : > { %v218_v5 = vld [vmem:[%s638_s28 + $0x18] sm:$0xff]  ;;  %v297_v6 = vmul.f32 %v621_v0, %v254_v2  ;;  %v298_v7 = vmul.f32 %v621_v0, %v255_v3  ;;  %v299_v8 = vmul.f32 %v621_v0, %v256_v4  ;;  %v219_v9 = vld [vmem:[%s638_s28 + $0x20] sm:$0xff]  ;;  %v220_v10 = vld [vmem:[%s638_s28 + $0x28] sm:$0xff] }
  0x13   : > { %v257_v11 = vld [vmem:[%s628_s23 + $0x18] sm:$0xff]  ;;  %v258_v16 = vld [vmem:[%s628_s23 + $0x20] sm:$0xff]  ;;  %v259_v17 = vld [vmem:[%s628_s23 + $0x28] sm:$0xff] }
  0x14   : > { %v340_v12 = vadd.f32 %v633_v1, %v297_v6  ;;  %v341_v13 = vadd.f32 %v633_v1, %v298_v7  ;;  %v342_v14 = vadd.f32 %v633_v1, %v299_v8  ;;  %v300_v15 = vmul.f32 %v621_v0, %v257_v11  ;;  %v221_v18 = vld [vmem:[%s638_s28 + $0x30] sm:$0xff]  ;;  %v222_v26 = vld [vmem:[%s638_s28 + $0x38] sm:$0xff]  ;;  %v223_v27 = vld [vmem:[%s638_s28 + $0x40] sm:$0xff] }
  0x15   : > { %v301_v19 = vmul.f32 %v621_v0, %v258_v16  ;;  %v302_v20 = vmul.f32 %v621_v0, %v259_v17  ;;  %v260_v21 = vld [vmem:[%s628_s23 + $0x30] sm:$0xff]  ;;  %v261_v28 = vld [vmem:[%s628_s23 + $0x38] sm:$0xff]  ;;  %v262_v33 = vld [vmem:[%s628_s23 + $0x40] sm:$0xff] }
  0x16   : > { %v376_v22 = vadd.f32 %v340_v12, %v218_v5  ;;  %v377_v23 = vadd.f32 %v341_v13, %v219_v9  ;;  %v378_v24 = vadd.f32 %v342_v14, %v220_v10  ;;  %v343_v25 = vadd.f32 %v633_v1, %v300_v15  ;;  %v263_v34 = vld [vmem:[%s628_s23 + $0x48] sm:$0xff]  ;;  %v225_v40 = vld [vmem:[%s638_s28 + $0x50] sm:$0xff]  ;;  %v265_v46 = vld [vmem:[%s628_s23 + $0x58] sm:$0xff] }
  0x17   : > { %v344_v29 = vadd.f32 %v633_v1, %v301_v19  ;;  %v345_v30 = vadd.f32 %v633_v1, %v302_v20  ;;  %v303_v31 = vmul.f32 %v621_v0, %v260_v21  ;;  %v304_v32 = vmul.f32 %v621_v0, %v261_v28  ;;  %v224_v39 = vld [vmem:[%s638_s28 + $0x48] sm:$0xff]  ;;  %v264_v41 = vld [vmem:[%s628_s23 + $0x50] sm:$0xff]  ;;  %v266_v51 = vld [vmem:[%s628_s23 + $0x60] sm:$0xff] }
  0x18   : > { %v412_v35 = vmax.f32 %v376_v22, 0.0  ;;  %v413_v36 = vmax.f32 %v377_v23, 0.0  ;;  %v414_v37 = vmax.f32 %v378_v24, 0.0  ;;  %v379_v38 = vadd.f32 %v343_v25, %v221_v18  ;;  %v267_v52 = vld [vmem:[%s628_s23 + $0x68] sm:$0xff]  ;;  %v226_v57 = vld [vmem:[%s638_s28 + $0x58] sm:$0xff]  ;;  %v227_v58 = vld [vmem:[%s638_s28 + $0x60] sm:$0xff] }
  0x19   : > { %v380_v42 = vadd.f32 %v344_v29, %v222_v26  ;;  %v381_v43 = vadd.f32 %v345_v30, %v223_v27  ;;  %v346_v44 = vadd.f32 %v633_v1, %v303_v31  ;;  %v347_v45 = vadd.f32 %v633_v1, %v304_v32  ;;  %v228_v59 = vld [vmem:[%s638_s28 + $0x68] sm:$0xff]  ;;  %v268_v2 = vld [vmem:[%s628_s23 + $0x70] sm:$0xff]  ;;  %v269_v3 = vld [vmem:[%s628_s23 + $0x78] sm:$0xff] }
  0x1a   : > { %448 = vst [vmem:[%s669_s5] sm:$0xff] %v412_v35  ;;  %449 = vst [vmem:[%s669_s5 + $0x8] sm:$0xff] %v413_v36  ;;  %v415_v47 = vmax.f32 %v379_v38, 0.0  ;;  %v305_v48 = vmul.f32 %v621_v0, %v262_v33  ;;  %v306_v49 = vmul.f32 %v621_v0, %v263_v34  ;;  %v307_v50 = vmul.f32 %v621_v0, %v264_v41  ;;  %v229_v6 = vld [vmem:[%s638_s28 + $0x70] sm:$0xff]  ;;  %v230_v13 = vld [vmem:[%s638_s28 + $0x78] sm:$0xff] }
  0x1b   : > { %450 = vst [vmem:[%s669_s5 + $0x10] sm:$0xff] %v414_v37  ;;  %v416_v53 = vmax.f32 %v380_v42, 0.0  ;;  %v417_v54 = vmax.f32 %v381_v43, 0.0  ;;  %v382_v55 = vadd.f32 %v346_v44, %v224_v39  ;;  %v383_v56 = vadd.f32 %v347_v45, %v225_v40  ;;  %v231_v14 = vld [vmem:[%s638_s28 + $0x80] sm:$0xff]  ;;  %v271_v20 = vld [vmem:[%s628_s23 + $0x88] sm:$0xff]  ;;  %v272_v21 = vld [vmem:[%s628_s23 + $0x90] sm:$0xff] }
  0x1c   : > { %451 = vst [vmem:[%s669_s5 + $0x18] sm:$0xff] %v415_v47  ;;  %v348_v60 = vadd.f32 %v633_v1, %v305_v48  ;;  %v349_v61 = vadd.f32 %v633_v1, %v306_v49  ;;  %v350_v62 = vadd.f32 %v633_v1, %v307_v50  ;;  %v308_v63 = vmul.f32 %v621_v0, %v265_v46  ;;  %v270_v19 = vld [vmem:[%s628_s23 + $0x80] sm:$0xff]  ;;  %v232_v26 = vld [vmem:[%s638_s28 + $0x88] sm:$0xff]  ;;  %v233_v27 = vld [vmem:[%s638_s28 + $0x90] sm:$0xff] }
  0x1d   : > { %452 = vst [vmem:[%s669_s5 + $0x20] sm:$0xff] %v416_v53  ;;  %453 = vst [vmem:[%s669_s5 + $0x28] sm:$0xff] %v417_v54  ;;  %v418_v4 = vmax.f32 %v382_v55, 0.0  ;;  %v419_v5 = vmax.f32 %v383_v56, 0.0  ;;  %v309_v7 = vmul.f32 %v621_v0, %v266_v51  ;;  %v310_v8 = vmul.f32 %v621_v0, %v267_v52  ;;  %v273_v32 = vld [vmem:[%s628_s23 + $0x98] sm:$0xff]  ;;  %v274_v37 = vld [vmem:[%s628_s23 + $0xa0] sm:$0xff] }
  0x1e   : > { %v384_v9 = vadd.f32 %v348_v60, %v226_v57  ;;  %v385_v10 = vadd.f32 %v349_v61, %v227_v58  ;;  %v386_v11 = vadd.f32 %v350_v62, %v228_v59  ;;  %v351_v12 = vadd.f32 %v633_v1, %v308_v63  ;;  %v275_v38 = vld [vmem:[%s628_s23 + $0xa8] sm:$0xff]  ;;  %v234_v43 = vld [vmem:[%s638_s28 + $0x98] sm:$0xff]  ;;  %v235_v44 = vld [vmem:[%s638_s28 + $0xa0] sm:$0xff] }
  0x1f   : > { %454 = vst [vmem:[%s669_s5 + $0x30] sm:$0xff] %v418_v4  ;;  %455 = vst [vmem:[%s669_s5 + $0x38] sm:$0xff] %v419_v5  ;;  %v352_v15 = vadd.f32 %v633_v1, %v309_v7  ;;  %v353_v16 = vadd.f32 %v633_v1, %v310_v8  ;;  %v311_v17 = vmul.f32 %v621_v0, %v268_v2  ;;  %v236_v45 = vld [vmem:[%s638_s28 + $0xa8] sm:$0xff]  ;;  %v276_v50 = vld [vmem:[%s628_s23 + $0xb0] sm:$0xff] }
  0x20   : > { %v312_v18 = vmul.f32 %v621_v0, %v269_v3  ;;  %v420_v22 = vmax.f32 %v384_v9, 0.0  ;;  %v421_v23 = vmax.f32 %v385_v10, 0.0  ;;  %v422_v24 = vmax.f32 %v386_v11, 0.0  ;;  %v277_v51 = vld [vmem:[%s628_s23 + $0xb8] sm:$0xff]  ;;  %v237_v54 = vld [vmem:[%s638_s28 + $0xb0] sm:$0xff]  ;;  %v239_v62 = vld [vmem:[%s638_s28 + $0xc0] sm:$0xff] }
  0x21   : > { %v387_v25 = vadd.f32 %v351_v12, %v229_v6  ;;  %v388_v28 = vadd.f32 %v352_v15, %v230_v13  ;;  %v389_v29 = vadd.f32 %v353_v16, %v231_v14  ;;  %v354_v30 = vadd.f32 %v633_v1, %v311_v17  ;;  %v238_v61 = vld [vmem:[%s638_s28 + $0xb8] sm:$0xff]  ;;  %v278_v5 = vld [vmem:[%s628_s23 + $0xc0] sm:$0xff]  ;;  %v279_v6 = vld [vmem:[%s628_s23 + $0xc8] sm:$0xff] }
  0x22   : > { %v355_v31 = vadd.f32 %v633_v1, %v312_v18  ;;  %456 = vst [vmem:[%s669_s5 + $0x40] sm:$0xff] %v420_v22  ;;  %457 = vst [vmem:[%s669_s5 + $0x48] sm:$0xff] %v421_v23  ;;  %v313_v34 = vmul.f32 %v621_v0, %v270_v19  ;;  %v314_v35 = vmul.f32 %v621_v0, %v271_v20  ;;  %v280_v7 = vld [vmem:[%s628_s23 + $0xd0] sm:$0xff]  ;;  %v240_v12 = vld [vmem:[%s638_s28 + $0xc8] sm:$0xff] }
  0x23   : > { %458 = vst [vmem:[%s669_s5 + $0x50] sm:$0xff] %v422_v24  ;;  %v423_v33 = vmax.f32 %v387_v25, 0.0  ;;  %v315_v36 = vmul.f32 %v621_v0, %v272_v21  ;;  %v424_v39 = vmax.f32 %v388_v28, 0.0  ;;  %v425_v40 = vmax.f32 %v389_v29, 0.0  ;;  %v241_v13 = vld [vmem:[%s638_s28 + $0xd0] sm:$0xff]  ;;  %v281_v18 = vld [vmem:[%s628_s23 + $0xd8] sm:$0xff] }
  0x24   : > { %v390_v41 = vadd.f32 %v354_v30, %v232_v26  ;;  %v391_v42 = vadd.f32 %v355_v31, %v233_v27  ;;  %v356_v46 = vadd.f32 %v633_v1, %v313_v34  ;;  %v357_v47 = vadd.f32 %v633_v1, %v314_v35  ;;  %v282_v23 = vld [vmem:[%s628_s23 + $0xe0] sm:$0xff]  ;;  %v283_v24 = vld [vmem:[%s628_s23 + $0xe8] sm:$0xff]  ;;  %v242_v29 = vld [vmem:[%s638_s28 + $0xd8] sm:$0xff] }
  0x25   : > { %459 = vst [vmem:[%s669_s5 + $0x58] sm:$0xff] %v423_v33  ;;  %v358_v48 = vadd.f32 %v633_v1, %v315_v36  ;;  %v316_v49 = vmul.f32 %v621_v0, %v273_v32  ;;  %460 = vst [vmem:[%s669_s5 + $0x60] sm:$0xff] %v424_v39  ;;  %v317_v55 = vmul.f32 %v621_v0, %v274_v37  ;;  %v243_v30 = vld [vmem:[%s638_s28 + $0xe0] sm:$0xff]  ;;  %v244_v31 = vld [vmem:[%s638_s28 + $0xe8] sm:$0xff] }
  0x26   : > { %461 = vst [vmem:[%s669_s5 + $0x68] sm:$0xff] %v425_v40  ;;  %v426_v52 = vmax.f32 %v390_v41, 0.0  ;;  %v427_v53 = vmax.f32 %v391_v42, 0.0  ;;  %v318_v56 = vmul.f32 %v621_v0, %v275_v38  ;;  %v392_v57 = vadd.f32 %v356_v46, %v234_v43  ;;  %v284_v36 = vld [vmem:[%s628_s23 + $0xf0] sm:$0xff]  ;;  %v285_v37 = vld [vmem:[%s628_s23 + $0xf8] sm:$0xff] }
  0x27   : > { %v393_v58 = vadd.f32 %v357_v47, %v235_v44  ;;  %v394_v59 = vadd.f32 %v358_v48, %v236_v45  ;;  %v359_v60 = vadd.f32 %v633_v1, %v316_v49  ;;  %v360_v63 = vadd.f32 %v633_v1, %v317_v55  ;;  %v245_v40 = vld [vmem:[%s638_s28 + $0xf0] sm:$0xff]  ;;  %v246_v47 = vld [vmem:[%s638_s28 + $0xf8] sm:$0xff]  ;;  %v247_v48 = vld [vmem:[%s638_s28 + $0x100] sm:$0xff] }
  0x28   : > { %462 = vst [vmem:[%s669_s5 + $0x70] sm:$0xff] %v426_v52  ;;  %463 = vst [vmem:[%s669_s5 + $0x78] sm:$0xff] %v427_v53  ;;  %v361_v2 = vadd.f32 %v633_v1, %v318_v56  ;;  %v319_v3 = vmul.f32 %v621_v0, %v276_v50  ;;  %v320_v4 = vmul.f32 %v621_v0, %v277_v51  ;;  %v428_v8 = vmax.f32 %v392_v57, 0.0  ;;  %v286_v53 = vld [vmem:[%s628_s23 + $0x100] sm:$0xff]  ;;  %v288_v55 = vld [vmem:[%s628_s23 + $0x110] sm:$0xff] }
  0x29   : > { %v429_v9 = vmax.f32 %v393_v58, 0.0  ;;  %v430_v10 = vmax.f32 %v394_v59, 0.0  ;;  %v395_v11 = vadd.f32 %v359_v60, %v237_v54  ;;  %v396_v14 = vadd.f32 %v360_v63, %v238_v61  ;;  %v287_v54 = vld [vmem:[%s628_s23 + $0x108] sm:$0xff]  ;;  %v249_v61 = vld [vmem:[%s638_s28 + $0x110] sm:$0xff] }
  0x2a   : > { %v397_v15 = vadd.f32 %v361_v2, %v239_v62  ;;  %v362_v16 = vadd.f32 %v633_v1, %v319_v3  ;;  %v363_v17 = vadd.f32 %v633_v1, %v320_v4  ;;  %464 = vst [vmem:[%s669_s5 + $0x80] sm:$0xff] %v428_v8  ;;  %v321_v20 = vmul.f32 %v621_v0, %v278_v5  ;;  %v248_v60 = vld [vmem:[%s638_s28 + $0x108] sm:$0xff]  ;;  %v289_v4 = vld [vmem:[%s628_s23 + $0x118] sm:$0xff] }
  0x2b   : > { %465 = vst [vmem:[%s669_s5 + $0x88] sm:$0xff] %v429_v9  ;;  %466 = vst [vmem:[%s669_s5 + $0x90] sm:$0xff] %v430_v10  ;;  %v431_v19 = vmax.f32 %v395_v11, 0.0  ;;  %v322_v21 = vmul.f32 %v621_v0, %v279_v6  ;;  %v323_v22 = vmul.f32 %v621_v0, %v280_v7  ;;  %v432_v25 = vmax.f32 %v396_v14, 0.0  ;;  %v251_v14 = vld [vmem:[%s638_s28 + $0x120] sm:$0xff] }
  0x2c   : > { %v433_v26 = vmax.f32 %v397_v15, 0.0  ;;  %v398_v27 = vadd.f32 %v362_v16, %v240_v12  ;;  %v399_v28 = vadd.f32 %v363_v17, %v241_v13  ;;  %v364_v32 = vadd.f32 %v633_v1, %v321_v20  ;;  %v250_v13 = vld [vmem:[%s638_s28 + $0x118] sm:$0xff]  ;;  %v252_v15 = vld [vmem:[%s638_s28 + $0x128] sm:$0xff] }
  0x2d   : > { %467 = vst [vmem:[%s669_s5 + $0x98] sm:$0xff] %v431_v19  ;;  %v365_v33 = vadd.f32 %v633_v1, %v322_v21  ;;  %v366_v34 = vadd.f32 %v633_v1, %v323_v22  ;;  %v324_v35 = vmul.f32 %v621_v0, %v281_v18  ;;  %468 = vst [vmem:[%s669_s5 + $0xa0] sm:$0xff] %v432_v25  ;;  %v253_v22 = vld [vmem:[%s638_s28 + $0x130] sm:$0xff] }
  0x2e   : > { %469 = vst [vmem:[%s669_s5 + $0xa8] sm:$0xff] %v433_v26  ;;  %v434_v38 = vmax.f32 %v398_v27, 0.0  ;;  %v435_v39 = vmax.f32 %v399_v28, 0.0  ;;  %v325_v41 = vmul.f32 %v621_v0, %v282_v23  ;;  %v326_v42 = vmul.f32 %v621_v0, %v283_v24 }
  0x2f   : > { %v400_v43 = vadd.f32 %v364_v32, %v242_v29  ;;  %v401_v44 = vadd.f32 %v365_v33, %v243_v30  ;;  %v402_v45 = vadd.f32 %v366_v34, %v244_v31  ;;  %v367_v46 = vadd.f32 %v633_v1, %v324_v35 }
  0x30   : > { %470 = vst [vmem:[%s669_s5 + $0xb0] sm:$0xff] %v434_v38  ;;  %471 = vst [vmem:[%s669_s5 + $0xb8] sm:$0xff] %v435_v39  ;;  %v368_v49 = vadd.f32 %v633_v1, %v325_v41  ;;  %v369_v50 = vadd.f32 %v633_v1, %v326_v42  ;;  %v327_v51 = vmul.f32 %v621_v0, %v284_v36 }
  0x31   : > { %v328_v52 = vmul.f32 %v621_v0, %v285_v37  ;;  %v436_v56 = vmax.f32 %v400_v43, 0.0  ;;  %v437_v57 = vmax.f32 %v401_v44, 0.0  ;;  %v438_v58 = vmax.f32 %v402_v45, 0.0 }
  0x32   : > { %v403_v59 = vadd.f32 %v367_v46, %v245_v40  ;;  %v404_v62 = vadd.f32 %v368_v49, %v246_v47  ;;  %v405_v63 = vadd.f32 %v369_v50, %v247_v48  ;;  %v370_v2 = vadd.f32 %v633_v1, %v327_v51 }
  0x33   : > { %v371_v3 = vadd.f32 %v633_v1, %v328_v52  ;;  %472 = vst [vmem:[%s669_s5 + $0xc0] sm:$0xff] %v436_v56  ;;  %473 = vst [vmem:[%s669_s5 + $0xc8] sm:$0xff] %v437_v57  ;;  %v329_v6 = vmul.f32 %v621_v0, %v286_v53  ;;  %v330_v7 = vmul.f32 %v621_v0, %v287_v54 }
  0x34   : > { %474 = vst [vmem:[%s669_s5 + $0xd0] sm:$0xff] %v438_v58  ;;  %v439_v5 = vmax.f32 %v403_v59, 0.0  ;;  %v331_v8 = vmul.f32 %v621_v0, %v288_v55  ;;  %v440_v9 = vmax.f32 %v404_v62, 0.0  ;;  %v441_v10 = vmax.f32 %v405_v63, 0.0 }
  0x35   : > { %v406_v11 = vadd.f32 %v370_v2, %v248_v60  ;;  %v407_v12 = vadd.f32 %v371_v3, %v249_v61  ;;  %v372_v16 = vadd.f32 %v633_v1, %v329_v6  ;;  %v373_v17 = vadd.f32 %v633_v1, %v330_v7 }
  0x36   : > { %475 = vst [vmem:[%s669_s5 + $0xd8] sm:$0xff] %v439_v5  ;;  %v374_v18 = vadd.f32 %v633_v1, %v331_v8  ;;  %v332_v19 = vmul.f32 %v621_v0, %v289_v4  ;;  %476 = vst [vmem:[%s669_s5 + $0xe0] sm:$0xff] %v440_v9 }
  0x37   : > { %477 = vst [vmem:[%s669_s5 + $0xe8] sm:$0xff] %v441_v10  ;;  %v442_v20 = vmax.f32 %v406_v11, 0.0  ;;  %v443_v21 = vmax.f32 %v407_v12, 0.0  ;;  %v408_v23 = vadd.f32 %v372_v16, %v250_v13  ;;  %v409_v24 = vadd.f32 %v373_v17, %v251_v14 }
  0x38   : > { %v410_v25 = vadd.f32 %v374_v18, %v252_v15  ;;  %v375_v26 = vadd.f32 %v633_v1, %v332_v19 }
  0x39   : > { %478 = vst [vmem:[%s669_s5 + $0xf0] sm:$0xff] %v442_v20  ;;  %479 = vst [vmem:[%s669_s5 + $0xf8] sm:$0xff] %v443_v21  ;;  %v444_v27 = vmax.f32 %v408_v23, 0.0  ;;  %v445_v28 = vmax.f32 %v409_v24, 0.0 }
  0x3a   : > { %v446_v29 = vmax.f32 %v410_v25, 0.0  ;;  %v411_v0 = vadd.f32 %v375_v26, %v253_v22 }
  0x3b   : > { %480 = vst [vmem:[%s669_s5 + $0x100] sm:$0xff] %v444_v27  ;;  %481 = vst [vmem:[%s669_s5 + $0x108] sm:$0xff] %v445_v28 }
  0x3c   : > { %482 = vst [vmem:[%s669_s5 + $0x110] sm:$0xff] %v446_v29  ;;  %v447_v30 = vmax.f32 %v411_v0, 0.0 }
  0x3e   : > { %483 = vst [vmem:[%s669_s5 + $0x118] sm:$0xff] %v447_v30 }
  0x3f PF: > { %s14_s15 = sadd.s32 1, %s579_s15  }
  0x40   : > { %p11_p4 = scmp.ge.s32.totalorder %s14_s15, 4  }
  0x42   :  { %13 = sbr.rel (!%p11_p4) target bundleno = 1 (0x1), region = 69 }

// kernel: feature_basic_block.5
= control target key start
LH: loop header
LB: loop body
LE: loop exit
PB: predicated region body
PF: predicated region fallthrough
CT: control target
= control target key end

     0   :  { %s801_s15 = smov 0   ;;  %s1106_s0 = inlined_call_operand.vmem [shape: f32[288,1], index: 0, kind: input, shape index: {}]   ;;  %s1107_s1 = inlined_call_operand.vmem [shape: f32[2,288,128], index: 1, kind: input, shape index: {}]   ;;  %s1108_s2 = inlined_call_operand.vmem [shape: f32[1,128], index: 2, kind: input, shape index: {}]   ;;  %s1109_s3 = inlined_call_operand.vmem [shape: f32[1,128], index: 3, kind: input, shape index: {}]   ;;  %s1110_s4 = inlined_call_operand.vmem [shape: f32[2,336,128], index: 4, kind: output, shape index: {}]  }
   0x1 LB: > { %s741_s16 = sadd.s32 4294967295, %s772_s15   ;;  %p745_p0 = scmp.ge.s32.totalorder %s772_s15, 1  ;;  %s772_s15 = sphi %s801_s15, %s14_s15  }
   0x2   : > { %p162_p1 = scmp.lt.s32.totalorder %s772_s15, 3 }
   0x4   : > { %p163_p2 = pnand %p745_p0, %p162_p1 }
   0x5   : > { %v358_v0 = vld [vmem:[%s1106_s0 + $0x10] sm:$0xff] (!%p163_p2)  ;;  %v356_v1 = vld [vmem:[%s1106_s0] sm:$0xff] (!%p163_p2)  ;;  %p188_p3 = scmp.lt.s32.totalorder (!%p163_p2), %s741_s16, 1  ;;  %v774_v2 = vmov (!%p163_p2), 0   ;;  %v359_v3 = vld [vmem:[%s1106_s0 + $0x18] sm:$0xff] (!%p163_p2)  ;;  %v775_v7 = vmov (!%p163_p2), 0.0  }
   0x6   : > { %166 = sbr.rel (%p163_p2) target bundleno = 206 (0xce), region = 36  ;;  %765 = vset.pattern.permute.xlu1 (!%p163_p2), %v774_v2  ;;  %764 = vset.pattern.permute.xlu0 (!%p163_p2), %v774_v2  ;;  %v357_v4 = vld [vmem:[%s1106_s0 + $0x8] sm:$0xff] (!%p163_p2)  ;;  %v360_v6 = vld [vmem:[%s1106_s0 + $0x20] sm:$0xff] (!%p163_p2)  ;;  %v363_v8 = vld [vmem:[%s1106_s0 + $0x38] sm:$0xff] (!%p163_p2) }
   0x7   : > { %404 = vperm.xlu1 (!%p163_p2), %765, %v358_v0   ;;  %394 = vperm.xlu0 (!%p163_p2), %764, %v356_v1   ;;  %v361_v5 = vld [vmem:[%s1106_s0 + $0x28] sm:$0xff] (!%p163_p2)  ;;  %v362_v9 = vld [vmem:[%s1106_s0 + $0x30] sm:$0xff] (!%p163_p2)  ;;  %v364_v11 = vld [vmem:[%s1106_s0 + $0x40] sm:$0xff] (!%p163_p2) }
   0x8   : > { %v365_v10 = vld [vmem:[%s1106_s0 + $0x48] sm:$0xff] (!%p163_p2)  ;;  %v367_v12 = vld [vmem:[%s1106_s0 + $0x58] sm:$0xff] (!%p163_p2)  ;;  %v366_v13 = vld [vmem:[%s1106_s0 + $0x50] sm:$0xff] (!%p163_p2) }
   0x9   : > { %v369_v14 = vld [vmem:[%s1106_s0 + $0x68] sm:$0xff] (!%p163_p2)  ;;  %v368_v15 = vld [vmem:[%s1106_s0 + $0x60] sm:$0xff] (!%p163_p2)  ;;  %v371_v16 = vld [vmem:[%s1106_s0 + $0x78] sm:$0xff] (!%p163_p2) }
   0xa   : > { %v370_v17 = vld [vmem:[%s1106_s0 + $0x70] sm:$0xff] (!%p163_p2)  ;;  %v373_v18 = vld [vmem:[%s1106_s0 + $0x88] sm:$0xff] (!%p163_p2)  ;;  %v372_v19 = vld [vmem:[%s1106_s0 + $0x80] sm:$0xff] (!%p163_p2) }
   0xb   : > { %409 = vperm.xlu1 (!%p163_p2), %765, %v359_v3   ;;  %399 = vperm.xlu0 (!%p163_p2), %764, %v357_v4   ;;  %v375_v20 = vld [vmem:[%s1106_s0 + $0x98] sm:$0xff] (!%p163_p2)  ;;  %v374_v21 = vld [vmem:[%s1106_s0 + $0x90] sm:$0xff] (!%p163_p2)  ;;  %v377_v22 = vld [vmem:[%s1106_s0 + $0xa8] sm:$0xff] (!%p163_p2) }
   0xc   : > { %v376_v23 = vld [vmem:[%s1106_s0 + $0xa0] sm:$0xff] (!%p163_p2)  ;;  %v379_v24 = vld [vmem:[%s1106_s0 + $0xb8] sm:$0xff] (!%p163_p2)  ;;  %v378_v25 = vld [vmem:[%s1106_s0 + $0xb0] sm:$0xff] (!%p163_p2) }
   0xd   : > { %s1112_s16 = smov (!%p188_p3, %s741_s16), 1  ;;  %v381_v26 = vld [vmem:[%s1106_s0 + $0xc8] sm:$0xff]  ;;  %v380_v27 = vld [vmem:[%s1106_s0 + $0xc0] sm:$0xff]  ;;  %v383_v28 = vld [vmem:[%s1106_s0 + $0xd8] sm:$0xff] }
   0xe   : > { %s753_s25 = smul.u32 336, %s1112_s16  ;;  %v382_v29 = vld [vmem:[%s1106_s0 + $0xd0] sm:$0xff]  ;;  %v385_v30 = vld [vmem:[%s1106_s0 + $0xe8] sm:$0xff]  ;;  %v384_v31 = vld [vmem:[%s1106_s0 + $0xe0] sm:$0xff] }
   0xf   : > { %419 = vperm.xlu1 %765, %v361_v5   ;;  %414 = vperm.xlu0 %764, %v360_v6   ;;  %s752_s30 = smul.u32 288, %s1112_s16  ;;  %v387_v32 = vld [vmem:[%s1106_s0 + $0xf8] sm:$0xff]  ;;  %v386_v33 = vld [vmem:[%s1106_s0 + $0xf0] sm:$0xff]  ;;  %v928_v34 = vld [vmem:[%s1108_s2] ss:$0 sm:$0xff] }
  0x10   : > { %s833_s6 = scalar_lea.vmem %s1110_s4, %s753_s25  ;;  %v937_v39 = vld [vmem:[%s1109_s3] ss:$0 sm:$0xff]  ;;  %v389_v40 = vld [vmem:[%s1106_s0 + $0x108] sm:$0xff]  ;;  %v391_v50 = vld [vmem:[%s1106_s0 + $0x118] sm:$0xff] }
  0x11   : > { %608 = vst [vmem:[%s833_s6] sm:$0xff] %v775_v7  ;;  %609 = vst [vmem:[%s833_s6 + $0x8] sm:$0xff] %v775_v7  ;;  %s923_s17 = scalar_lea.vmem %s1107_s1, %s752_s30  ;;  %v388_v43 = vld [vmem:[%s1106_s0 + $0x100] sm:$0xff]  ;;  %v390_v51 = vld [vmem:[%s1106_s0 + $0x110] sm:$0xff] }
  0x12   : > { %610 = vst [vmem:[%s833_s6 + $0x10] sm:$0xff] %v775_v7  ;;  %647 = vst [vmem:[%s833_s6 + $0x138] sm:$0xff] %v775_v7  ;;  %v231_v35 = vld [vmem:[%s923_s17 + $0x108] sm:$0xff]  ;;  %v230_v36 = vld [vmem:[%s923_s17 + $0x100] sm:$0xff] }
  0x13   : > { %648 = vst [vmem:[%s833_s6 + $0x140] sm:$0xff] %v775_v7  ;;  %649 = vst [vmem:[%s833_s6 + $0x148] sm:$0xff] %v775_v7  ;;  %429 = vperm.xlu1 %765, %v363_v8   ;;  %424 = vperm.xlu0 %764, %v362_v9   ;;  %v274_v37 = vmul.f32 %v928_v34, %v231_v35  ;;  %v273_v38 = vmul.f32 %v928_v34, %v230_v36  ;;  %v233_v44 = vld [vmem:[%s923_s17 + $0x118] sm:$0xff]  ;;  %v232_v45 = vld [vmem:[%s923_s17 + $0x110] sm:$0xff] }
  0x14   : > { %v276_v46 = vmul.f32 %v928_v34, %v233_v44  ;;  %v275_v47 = vmul.f32 %v928_v34, %v232_v45  ;;  %v200_v52 = vld [vmem:[%s923_s17 + $0x10] sm:$0xff]  ;;  %v198_v53 = vld [vmem:[%s923_s17] sm:$0xff]  ;;  %v201_v56 = vld [vmem:[%s923_s17 + $0x18] sm:$0xff] }
  0x15   : > { %v943_v41 = vadd.f32 %v937_v39, %v274_v37  ;;  %v946_v42 = vadd.f32 %v937_v39, %v273_v38  ;;  %v243_v54 = vmul.f32 %v928_v34, %v200_v52  ;;  %v241_v55 = vmul.f32 %v928_v34, %v198_v53  ;;  %v199_v57 = vld [vmem:[%s923_s17 + $0x8] sm:$0xff]  ;;  %v202_v63 = vld [vmem:[%s923_s17 + $0x20] sm:$0xff]  ;;  %v205_v6 = vld [vmem:[%s923_s17 + $0x38] sm:$0xff] }
  0x16   : > { %v956_v48 = vadd.f32 %v937_v39, %v276_v46  ;;  %v959_v49 = vadd.f32 %v937_v39, %v275_v47  ;;  %v244_v60 = vmul.f32 %v928_v34, %v201_v56  ;;  %v242_v61 = vmul.f32 %v928_v34, %v199_v57  ;;  %v203_v62 = vld [vmem:[%s923_s17 + $0x28] sm:$0xff]  ;;  %v204_v7 = vld [vmem:[%s923_s17 + $0x30] sm:$0xff]  ;;  %v210_v47 = vld [vmem:[%s923_s17 + $0x60] sm:$0xff] }
  0x17   : > { %439 = vperm.xlu1 %765, %v365_v10   ;;  %434 = vperm.xlu0 %764, %v364_v11   ;;  %v286_v58 = vadd.f32 %v937_v39, %v243_v54  ;;  %v284_v59 = vadd.f32 %v937_v39, %v241_v55  ;;  %v246_v0 = vmul.f32 %v928_v34, %v203_v62  ;;  %v211_v46 = vld [vmem:[%s923_s17 + $0x68] sm:$0xff] }
  0x18   : > { %v245_v1 = vmul.f32 %v928_v34, %v202_v63  ;;  %v287_v4 = vadd.f32 %v937_v39, %v244_v60  ;;  %v285_v5 = vadd.f32 %v937_v39, %v242_v61  ;;  %v254_v54 = vmul.f32 %v928_v34, %v211_v46  ;;  %v213_v60 = vld [vmem:[%s923_s17 + $0x78] sm:$0xff]  ;;  %v212_v61 = vld [vmem:[%s923_s17 + $0x70] sm:$0xff] }
  0x19   : > { %v322_v2 = vmax.f32 %v286_v58, 0.0  ;;  %v320_v3 = vmax.f32 %v284_v59, 0.0  ;;  %v289_v10 = vadd.f32 %v937_v39, %v246_v0  ;;  %v253_v55 = vmul.f32 %v928_v34, %v210_v47 }
  0x1a   : > { %v288_v11 = vadd.f32 %v937_v39, %v245_v1  ;;  %v297_v0 = vadd.f32 %v937_v39, %v254_v54 }
  0x1b   : > { %449 = vperm.xlu1 %765, %v367_v12   ;;  %444 = vperm.xlu0 %764, %v366_v13   ;;  %v248_v12 = vmul.f32 %v928_v34, %v205_v6  ;;  %v247_v13 = vmul.f32 %v928_v34, %v204_v7  ;;  %v296_v1 = vadd.f32 %v937_v39, %v253_v55 }
  0x1f   : > { %459 = vperm.xlu1 %765, %v369_v14   ;;  %454 = vperm.xlu0 %764, %v368_v15  }
  0x23   : > { %469 = vperm.xlu1 %765, %v371_v16   ;;  %464 = vperm.xlu0 %764, %v370_v17   ;;  %v323_v16 = vmax.f32 %v287_v4, 0.0  ;;  %v321_v17 = vmax.f32 %v285_v5, 0.0 }
  0x27   : > { %479 = vperm.xlu1 %765, %v373_v18   ;;  %474 = vperm.xlu0 %764, %v372_v19   ;;  %v207_v18 = vld [vmem:[%s923_s17 + $0x48] sm:$0xff]  ;;  %v206_v19 = vld [vmem:[%s923_s17 + $0x40] sm:$0xff] }
  0x2b   : > { %489 = vperm.xlu1 %765, %v375_v20   ;;  %484 = vperm.xlu0 %764, %v374_v21  }
  0x2f   : > { %499 = vperm.xlu1 %765, %v377_v22   ;;  %494 = vperm.xlu0 %764, %v376_v23   ;;  %v325_v22 = vmax.f32 %v289_v10, 0.0  ;;  %v324_v23 = vmax.f32 %v288_v11, 0.0 }
  0x33   : > { %509 = vperm.xlu1 %765, %v379_v24   ;;  %504 = vperm.xlu0 %764, %v378_v25   ;;  %v291_v24 = vadd.f32 %v937_v39, %v248_v12  ;;  %v290_v25 = vadd.f32 %v937_v39, %v247_v13 }
  0x35   : > { %v327_v35 = vmax.f32 %v291_v24, 0.0  ;;  %v326_v36 = vmax.f32 %v290_v25, 0.0 }
  0x37   : > { %519 = vperm.xlu1 %765, %v381_v26   ;;  %514 = vperm.xlu0 %764, %v380_v27  }
  0x3b   : > { %529 = vperm.xlu1 %765, %v383_v28   ;;  %524 = vperm.xlu0 %764, %v382_v29   ;;  %v250_v28 = vmul.f32 %v928_v34, %v207_v18  ;;  %v249_v29 = vmul.f32 %v928_v34, %v206_v19  ;;  %v333_v18 = vmax.f32 %v297_v0, 0.0  ;;  %v332_v19 = vmax.f32 %v296_v1, 0.0 }
  0x3d   : > { %v293_v44 = vadd.f32 %v937_v39, %v250_v28  ;;  %v292_v45 = vadd.f32 %v937_v39, %v249_v29 }
  0x3f   : > { %539 = vperm.xlu1 %765, %v385_v30   ;;  %534 = vperm.xlu0 %764, %v384_v31   ;;  %v209_v30 = vld [vmem:[%s923_s17 + $0x58] sm:$0xff]  ;;  %v208_v31 = vld [vmem:[%s923_s17 + $0x50] sm:$0xff]  ;;  %v329_v58 = vmax.f32 %v293_v44, 0.0  ;;  %v328_v59 = vmax.f32 %v292_v45, 0.0 }
  0x40   : > { %v252_v37 = vmul.f32 %v928_v34, %v209_v30  ;;  %v251_v38 = vmul.f32 %v928_v34, %v208_v31 }
  0x42   : > { %v295_v52 = vadd.f32 %v937_v39, %v252_v37  ;;  %v294_v53 = vadd.f32 %v937_v39, %v251_v38 }
  0x43   : > { %549 = vperm.xlu1 %765, %v387_v32   ;;  %544 = vperm.xlu0 %764, %v386_v33  }
  0x44   : > { %v331_v6 = vmax.f32 %v295_v52, 0.0  ;;  %v330_v7 = vmax.f32 %v294_v53, 0.0 }
  0x47   : > { %559 = vperm.xlu1 %765, %v389_v40   ;;  %554 = vperm.xlu0 %764, %v388_v43  }
  0x4b   : > { %569 = vperm.xlu1 %765, %v391_v50   ;;  %564 = vperm.xlu0 %764, %v390_v51  }
  0x86   : > { %v405_v8 = vpop.permute.xlu1 %404  ;;  %v395_v9 = vpop.permute.xlu0 %394 }
  0x87   : > { %v574_v14 = vmul.f32 %v405_v8, %v322_v2  ;;  %v572_v15 = vmul.f32 %v395_v9, %v320_v3  ;;  %v256_v2 = vmul.f32 %v928_v34, %v213_v60  ;;  %v255_v3 = vmul.f32 %v928_v34, %v212_v61  ;;  %v215_v8 = vld [vmem:[%s923_s17 + $0x88] sm:$0xff]  ;;  %v214_v9 = vld [vmem:[%s923_s17 + $0x80] sm:$0xff] }
  0x89   : > { %652 = vst [vmem:[%s833_s6 + $0x28] sm:$0xff] %v574_v14  ;;  %650 = vst [vmem:[%s833_s6 + $0x18] sm:$0xff] %v572_v15  ;;  %v299_v12 = vadd.f32 %v937_v39, %v256_v2  ;;  %v298_v13 = vadd.f32 %v937_v39, %v255_v3  ;;  %v258_v14 = vmul.f32 %v928_v34, %v215_v8 }
  0x8a   : > { %v410_v20 = vpop.permute.xlu1 %409  ;;  %v400_v21 = vpop.permute.xlu0 %399  ;;  %v257_v15 = vmul.f32 %v928_v34, %v214_v9 }
  0x8b   : > { %v575_v26 = vmul.f32 %v410_v20, %v323_v16  ;;  %v573_v27 = vmul.f32 %v400_v21, %v321_v17  ;;  %v217_v20 = vld [vmem:[%s923_s17 + $0x98] sm:$0xff]  ;;  %v216_v21 = vld [vmem:[%s923_s17 + $0x90] sm:$0xff]  ;;  %v335_v24 = vmax.f32 %v299_v12, 0.0  ;;  %v334_v25 = vmax.f32 %v298_v13, 0.0 }
  0x8c   : > { %v260_v30 = vmul.f32 %v928_v34, %v217_v20  ;;  %v259_v31 = vmul.f32 %v928_v34, %v216_v21 }
  0x8d   : > { %653 = vst [vmem:[%s833_s6 + $0x30] sm:$0xff] %v575_v26  ;;  %651 = vst [vmem:[%s833_s6 + $0x20] sm:$0xff] %v573_v27  ;;  %v301_v26 = vadd.f32 %v937_v39, %v258_v14  ;;  %v300_v27 = vadd.f32 %v937_v39, %v257_v15 }
  0x8e   : > { %v420_v32 = vpop.permute.xlu1 %419  ;;  %v415_v33 = vpop.permute.xlu0 %414  ;;  %v303_v46 = vadd.f32 %v937_v39, %v260_v30  ;;  %v302_v47 = vadd.f32 %v937_v39, %v259_v31 }
  0x8f   : > { %v577_v40 = vmul.f32 %v420_v32, %v325_v22  ;;  %v576_v43 = vmul.f32 %v415_v33, %v324_v23  ;;  %v219_v32 = vld [vmem:[%s923_s17 + $0xa8] sm:$0xff]  ;;  %v218_v33 = vld [vmem:[%s923_s17 + $0xa0] sm:$0xff]  ;;  %v337_v37 = vmax.f32 %v301_v26, 0.0  ;;  %v336_v38 = vmax.f32 %v300_v27, 0.0 }
  0x90   : > { %v339_v60 = vmax.f32 %v303_v46, 0.0  ;;  %v338_v61 = vmax.f32 %v302_v47, 0.0 }
  0x91   : > { %655 = vst [vmem:[%s833_s6 + $0x40] sm:$0xff] %v577_v40  ;;  %654 = vst [vmem:[%s833_s6 + $0x38] sm:$0xff] %v576_v43  ;;  %v262_v40 = vmul.f32 %v928_v34, %v219_v32  ;;  %v261_v43 = vmul.f32 %v928_v34, %v218_v33 }
  0x92   : > { %v430_v50 = vpop.permute.xlu1 %429  ;;  %v425_v51 = vpop.permute.xlu0 %424 }
  0x93   : > { %v579_v56 = vmul.f32 %v430_v50, %v327_v35  ;;  %v578_v57 = vmul.f32 %v425_v51, %v326_v36  ;;  %v221_v50 = vld [vmem:[%s923_s17 + $0xb8] sm:$0xff]  ;;  %v220_v51 = vld [vmem:[%s923_s17 + $0xb0] sm:$0xff]  ;;  %v305_v54 = vadd.f32 %v937_v39, %v262_v40  ;;  %v304_v55 = vadd.f32 %v937_v39, %v261_v43 }
  0x95   : > { %657 = vst [vmem:[%s833_s6 + $0x50] sm:$0xff] %v579_v56  ;;  %656 = vst [vmem:[%s833_s6 + $0x48] sm:$0xff] %v578_v57  ;;  %v264_v56 = vmul.f32 %v928_v34, %v221_v50  ;;  %v263_v57 = vmul.f32 %v928_v34, %v220_v51  ;;  %v341_v2 = vmax.f32 %v305_v54, 0.0  ;;  %v340_v3 = vmax.f32 %v304_v55, 0.0 }
  0x96   : > { %v440_v62 = vpop.permute.xlu1 %439  ;;  %v435_v63 = vpop.permute.xlu0 %434 }
  0x97   : > { %v581_v4 = vmul.f32 %v440_v62, %v329_v58  ;;  %v580_v5 = vmul.f32 %v435_v63, %v328_v59  ;;  %v223_v62 = vld [vmem:[%s923_s17 + $0xc8] sm:$0xff]  ;;  %v222_v63 = vld [vmem:[%s923_s17 + $0xc0] sm:$0xff] }
  0x98   : > { %v266_v8 = vmul.f32 %v928_v34, %v223_v62  ;;  %v265_v9 = vmul.f32 %v928_v34, %v222_v63 }
  0x99   : > { %659 = vst [vmem:[%s833_s6 + $0x60] sm:$0xff] %v581_v4  ;;  %658 = vst [vmem:[%s833_s6 + $0x58] sm:$0xff] %v580_v5  ;;  %v307_v4 = vadd.f32 %v937_v39, %v264_v56  ;;  %v306_v5 = vadd.f32 %v937_v39, %v263_v57 }
  0x9a   : > { %v450_v10 = vpop.permute.xlu1 %449  ;;  %v445_v11 = vpop.permute.xlu0 %444  ;;  %v309_v20 = vadd.f32 %v937_v39, %v266_v8  ;;  %v308_v21 = vadd.f32 %v937_v39, %v265_v9 }
  0x9b   : > { %v583_v16 = vmul.f32 %v450_v10, %v331_v6  ;;  %v582_v17 = vmul.f32 %v445_v11, %v330_v7  ;;  %v225_v10 = vld [vmem:[%s923_s17 + $0xd8] sm:$0xff]  ;;  %v224_v11 = vld [vmem:[%s923_s17 + $0xd0] sm:$0xff]  ;;  %v343_v14 = vmax.f32 %v307_v4, 0.0  ;;  %v342_v15 = vmax.f32 %v306_v5, 0.0 }
  0x9c   : > { %v345_v32 = vmax.f32 %v309_v20, 0.0  ;;  %v344_v33 = vmax.f32 %v308_v21, 0.0  ;;  %v352_v5 = vmax.f32 %v946_v42, 0.0 }
  0x9d   : > { %661 = vst [vmem:[%s833_s6 + $0x70] sm:$0xff] %v583_v16  ;;  %660 = vst [vmem:[%s833_s6 + $0x68] sm:$0xff] %v582_v17  ;;  %v268_v16 = vmul.f32 %v928_v34, %v225_v10  ;;  %v267_v17 = vmul.f32 %v928_v34, %v224_v11  ;;  %v355_v10 = vmax.f32 %v956_v48, 0.0  ;;  %v354_v11 = vmax.f32 %v959_v49, 0.0 }
  0x9e   : > { %v460_v22 = vpop.permute.xlu1 %459  ;;  %v455_v23 = vpop.permute.xlu0 %454 }
  0x9f   : > { %v585_v28 = vmul.f32 %v460_v22, %v333_v18  ;;  %v584_v29 = vmul.f32 %v455_v23, %v332_v19  ;;  %v227_v22 = vld [vmem:[%s923_s17 + $0xe8] sm:$0xff]  ;;  %v226_v23 = vld [vmem:[%s923_s17 + $0xe0] sm:$0xff]  ;;  %v311_v26 = vadd.f32 %v937_v39, %v268_v16  ;;  %v310_v27 = vadd.f32 %v937_v39, %v267_v17 }
  0xa1   : > { %663 = vst [vmem:[%s833_s6 + $0x80] sm:$0xff] %v585_v28  ;;  %662 = vst [vmem:[%s833_s6 + $0x78] sm:$0xff] %v584_v29  ;;  %v270_v28 = vmul.f32 %v928_v34, %v227_v22  ;;  %v269_v29 = vmul.f32 %v928_v34, %v226_v23  ;;  %v347_v40 = vmax.f32 %v311_v26, 0.0  ;;  %v346_v43 = vmax.f32 %v310_v27, 0.0 }
  0xa2   : > { %v470_v35 = vpop.permute.xlu1 %469  ;;  %v465_v36 = vpop.permute.xlu0 %464 }
  0xa3   : > { %v587_v44 = vmul.f32 %v470_v35, %v335_v24  ;;  %v586_v45 = vmul.f32 %v465_v36, %v334_v25  ;;  %v229_v35 = vld [vmem:[%s923_s17 + $0xf8] sm:$0xff]  ;;  %v228_v36 = vld [vmem:[%s923_s17 + $0xf0] sm:$0xff] }
  0xa4   : > { %v272_v50 = vmul.f32 %v928_v34, %v229_v35  ;;  %v271_v51 = vmul.f32 %v928_v34, %v228_v36 }
  0xa5   : > { %665 = vst [vmem:[%s833_s6 + $0x90] sm:$0xff] %v587_v44  ;;  %664 = vst [vmem:[%s833_s6 + $0x88] sm:$0xff] %v586_v45  ;;  %v313_v44 = vadd.f32 %v937_v39, %v270_v28  ;;  %v312_v45 = vadd.f32 %v937_v39, %v269_v29 }
  0xa6   : > { %v480_v52 = vpop.permute.xlu1 %479  ;;  %v475_v53 = vpop.permute.xlu0 %474 }
  0xa7   : > { %v589_v58 = vmul.f32 %v480_v52, %v337_v37  ;;  %v588_v59 = vmul.f32 %v475_v53, %v336_v38  ;;  %v349_v54 = vmax.f32 %v313_v44, 0.0  ;;  %v348_v55 = vmax.f32 %v312_v45, 0.0 }
  0xa9   : > { %667 = vst [vmem:[%s833_s6 + $0xa0] sm:$0xff] %v589_v58  ;;  %666 = vst [vmem:[%s833_s6 + $0x98] sm:$0xff] %v588_v59  ;;  %v315_v58 = vadd.f32 %v937_v39, %v272_v50  ;;  %v314_v59 = vadd.f32 %v937_v39, %v271_v51  ;;  %v353_v39 = vmax.f32 %v943_v41, 0.0 }
  0xaa   : > { %v490_v0 = vpop.permute.xlu1 %489  ;;  %v485_v1 = vpop.permute.xlu0 %484 }
  0xab   : > { %v591_v6 = vmul.f32 %v490_v0, %v339_v60  ;;  %v590_v7 = vmul.f32 %v485_v1, %v338_v61  ;;  %v351_v63 = vmax.f32 %v315_v58, 0.0  ;;  %v350_v0 = vmax.f32 %v314_v59, 0.0 }
  0xad   : > { %669 = vst [vmem:[%s833_s6 + $0xb0] sm:$0xff] %v591_v6  ;;  %668 = vst [vmem:[%s833_s6 + $0xa8] sm:$0xff] %v590_v7 }
  0xae   : > { %v500_v12 = vpop.permute.xlu1 %499  ;;  %v495_v13 = vpop.permute.xlu0 %494 }
  0xaf   : > { %v593_v18 = vmul.f32 %v500_v12, %v341_v2  ;;  %v592_v19 = vmul.f32 %v495_v13, %v340_v3 }
  0xb1   : > { %671 = vst [vmem:[%s833_s6 + $0xc0] sm:$0xff] %v593_v18  ;;  %670 = vst [vmem:[%s833_s6 + $0xb8] sm:$0xff] %v592_v19 }
  0xb2   : > { %v510_v24 = vpop.permute.xlu1 %509  ;;  %v505_v25 = vpop.permute.xlu0 %504 }
  0xb3   : > { %v595_v30 = vmul.f32 %v510_v24, %v343_v14  ;;  %v594_v31 = vmul.f32 %v505_v25, %v342_v15 }
  0xb5   : > { %673 = vst [vmem:[%s833_s6 + $0xd0] sm:$0xff] %v595_v30  ;;  %672 = vst [vmem:[%s833_s6 + $0xc8] sm:$0xff] %v594_v31 }
  0xb6   : > { %v520_v37 = vpop.permute.xlu1 %519  ;;  %v515_v38 = vpop.permute.xlu0 %514 }
  0xb7   : > { %v597_v46 = vmul.f32 %v520_v37, %v345_v32  ;;  %v596_v47 = vmul.f32 %v515_v38, %v344_v33 }
  0xb9   : > { %675 = vst [vmem:[%s833_s6 + $0xe0] sm:$0xff] %v597_v46  ;;  %674 = vst [vmem:[%s833_s6 + $0xd8] sm:$0xff] %v596_v47 }
  0xba   : > { %v530_v52 = vpop.permute.xlu1 %529  ;;  %v525_v53 = vpop.permute.xlu0 %524 }
  0xbb   : > { %v599_v56 = vmul.f32 %v530_v52, %v347_v40  ;;  %v598_v57 = vmul.f32 %v525_v53, %v346_v43 }
  0xbd   : > { %677 = vst [vmem:[%s833_s6 + $0xf0] sm:$0xff] %v599_v56  ;;  %676 = vst [vmem:[%s833_s6 + $0xe8] sm:$0xff] %v598_v57 }
  0xbe   : > { %v540_v60 = vpop.permute.xlu1 %539  ;;  %v535_v34 = vpop.permute.xlu0 %534 }
  0xbf   : > { %v601_v61 = vmul.f32 %v540_v60, %v349_v54  ;;  %v600_v62 = vmul.f32 %v535_v34, %v348_v55 }
  0xc1   : > { %679 = vst [vmem:[%s833_s6 + $0x100] sm:$0xff] %v601_v61  ;;  %678 = vst [vmem:[%s833_s6 + $0xf8] sm:$0xff] %v600_v62 }
  0xc2   : > { %v550_v1 = vpop.permute.xlu1 %549  ;;  %v545_v2 = vpop.permute.xlu0 %544 }
  0xc3   : > { %v603_v3 = vmul.f32 %v550_v1, %v351_v63  ;;  %v602_v4 = vmul.f32 %v545_v2, %v350_v0 }
  0xc5   : > { %681 = vst [vmem:[%s833_s6 + $0x110] sm:$0xff] %v603_v3  ;;  %680 = vst [vmem:[%s833_s6 + $0x108] sm:$0xff] %v602_v4 }
  0xc6   : > { %v560_v6 = vpop.permute.xlu1 %559  ;;  %v555_v7 = vpop.permute.xlu0 %554 }
  0xc7   : > { %v605_v8 = vmul.f32 %v560_v6, %v353_v39  ;;  %v604_v9 = vmul.f32 %v555_v7, %v352_v5 }
  0xc9   : > { %683 = vst [vmem:[%s833_s6 + $0x120] sm:$0xff] %v605_v8  ;;  %682 = vst [vmem:[%s833_s6 + $0x118] sm:$0xff] %v604_v9 }
  0xca   : > { %v570_v12 = vpop.permute.xlu1 %569  ;;  %v565_v13 = vpop.permute.xlu0 %564 }
  0xcb   : > { %v607_v14 = vmul.f32 %v570_v12, %v355_v10  ;;  %v606_v41 = vmul.f32 %v565_v13, %v354_v11 }
  0xcd   : > { %685 = vst [vmem:[%s833_s6 + $0x130] sm:$0xff] %v607_v14  ;;  %684 = vst [vmem:[%s833_s6 + $0x128] sm:$0xff] %v606_v41 }
  0xce PF: > { %s14_s15 = sadd.s32 1, %s772_s15  }
  0xcf   : > { %p11_p4 = scmp.ge.s32.totalorder %s14_s15, 4  }
  0xd1   :  { %13 = sbr.rel (!%p11_p4) target bundleno = 1 (0x1), region = 66 }

// kernel: feature_basic_block.4
= control target key start
LH: loop header
LB: loop body
LE: loop exit
PB: predicated region body
PF: predicated region fallthrough
CT: control target
= control target key end

     0   :  { %s5819_s15 = smov 0   ;;  %s5821_s16 = smov 0   ;;  %s7117_s0 = inlined_call_operand.vmem [shape: f32[288,1], index: 0, kind: input, shape index: {}]   ;;  %s7118_s1 = inlined_call_operand.vmem [shape: f32[2,336,128], index: 1, kind: input, shape index: {}]   ;;  %s7119_s2 = inlined_call_operand.vmem [shape: f32[9,128,128], index: 2, kind: input, shape index: {}]   ;;  %s7120_s3 = inlined_call_operand.vmem [shape: f32[2,288,128], index: 3, kind: output, shape index: {0}]   ;;  %s7121_s4 = inlined_call_operand.vmem [shape: f32[16,128], index: 4, kind: output, shape index: {1}]  }
   0x1   :  { %s5823_s17 = smov 0  }
   0x2 LB: > { %s30_s18 = sadd.s32 1, %s5786_s16  ;;  %p3770_p0 = scmp.ge.s32.totalorder %s5790_s17, 1  ;;  %s5790_s17 = sphi %s5823_s17, %s15_s17   ;;  %s5786_s16 = sphi %s5821_s16, %s7123_s16   ;;  %s5782_s15 = sphi %s5819_s15, %s7122_s15  }
   0x3   : > { %p32_p1 = scmp.ge.s32.totalorder %s30_s18, 2  ;;  %p203_p2 = scmp.lt.s32.totalorder %s5790_s17, 3 }
   0x5   : > { %s7125_s18 = smov (%p32_p1, %s30_s18), 0  ;;  %p204_p3 = pnand %p3770_p0, %p203_p2 }
   0x6   : > { %v3774_v0 = vld [vmem:[%s7119_s2 + $0x80] sm:$0xff] (!%p204_p3)  ;;  %v3775_v1 = vld [vmem:[%s7119_s2 + $0x88] sm:$0xff] (!%p204_p3)  ;;  %p246_p4 = scmp.lt.s32.totalorder (!%p204_p3), %s5782_s15, 1  ;;  %v3776_v5 = vld [vmem:[%s7119_s2 + $0x90] sm:$0xff] (!%p204_p3) }
   0x7   : > { %207 = sbr.rel (%p204_p3) target bundleno = 601 (0x259), region = 32  ;;  %v3822_v2 = vld [vmem:[%s7119_s2 + $0x200] sm:$0xff] (!%p204_p3)  ;;  %v5146_v3 = vpack.c.bf16 (!%p204_p3), %v3775_v1, %v3774_v0  ;;  %v3823_v4 = vld [vmem:[%s7119_s2 + $0x208] sm:$0xff] (!%p204_p3)  ;;  %v3777_v6 = vld [vmem:[%s7119_s2 + $0x98] sm:$0xff] (!%p204_p3) }
   0x8   : > { %v5855_v7 = vpack.c.bf16 (!%p204_p3), %v3823_v4, %v3822_v2  ;;  %v5150_v8 = vpack.c.bf16 (!%p204_p3), %v3777_v6, %v3776_v5  ;;  %v3824_v9 = vld [vmem:[%s7119_s2 + $0x210] sm:$0xff] (!%p204_p3)  ;;  %v3825_v10 = vld [vmem:[%s7119_s2 + $0x218] sm:$0xff] (!%p204_p3)  ;;  %v3778_v11 = vld [vmem:[%s7119_s2 + $0xa0] sm:$0xff] (!%p204_p3) }
   0x9   : > { %5147 = vmatprep.subr.bf16.mxu1 (!%p204_p3), %v5146_v3  ;;  %v5868_v12 = vpack.c.bf16 (!%p204_p3), %v3825_v10, %v3824_v9  ;;  %v3779_v13 = vld [vmem:[%s7119_s2 + $0xa8] sm:$0xff] (!%p204_p3)  ;;  %v3826_v14 = vld [vmem:[%s7119_s2 + $0x220] sm:$0xff] (!%p204_p3)  ;;  %v3780_v18 = vld [vmem:[%s7119_s2 + $0xb0] sm:$0xff] (!%p204_p3) }
   0xa   : > { %v3827_v15 = vld [vmem:[%s7119_s2 + $0x228] sm:$0xff] (!%p204_p3)  ;;  %5275 = vmatprep.subr.bf16.mxu0 (!%p204_p3), %v5855_v7  ;;  %5149 = vmatpush3.bf16.msra.mxu1 (!%p204_p3), %v5146_v3  ;;  %v5154_v16 = vpack.c.bf16 (!%p204_p3), %v3779_v13, %v3778_v11  ;;  %v3781_v19 = vld [vmem:[%s7119_s2 + $0xb8] sm:$0xff] (!%p204_p3)  ;;  %v3828_v20 = vld [vmem:[%s7119_s2 + $0x230] sm:$0xff] (!%p204_p3) }
   0xb   : > { %5277 = vmatpush3.bf16.msra.mxu0 (!%p204_p3), %v5855_v7  ;;  %5151 = vmatprep.subr.bf16.mxu1 (!%p204_p3), %v5150_v8  ;;  %v5883_v17 = vpack.c.bf16 (!%p204_p3), %v3827_v15, %v3826_v14  ;;  %v3829_v21 = vld [vmem:[%s7119_s2 + $0x238] sm:$0xff] (!%p204_p3)  ;;  %v5158_v22 = vpack.c.bf16 (!%p204_p3), %v3781_v19, %v3780_v18  ;;  %v3782_v24 = vld [vmem:[%s7119_s2 + $0xc0] sm:$0xff] (!%p204_p3)  ;;  %v3783_v25 = vld [vmem:[%s7119_s2 + $0xc8] sm:$0xff] (!%p204_p3) }
   0xc   : > { %5279 = vmatprep.subr.bf16.mxu0 (!%p204_p3), %v5868_v12  ;;  %v5904_v23 = vpack.c.bf16 (!%p204_p3), %v3829_v21, %v3828_v20  ;;  %v3830_v27 = vld [vmem:[%s7119_s2 + $0x240] sm:$0xff] (!%p204_p3)  ;;  %v3831_v28 = vld [vmem:[%s7119_s2 + $0x248] sm:$0xff] (!%p204_p3)  ;;  %v5162_v30 = vpack.c.bf16 (!%p204_p3), %v3783_v25, %v3782_v24  ;;  %v3784_v32 = vld [vmem:[%s7119_s2 + $0xd0] sm:$0xff] (!%p204_p3) }
   0xd   : > { %v5922_v31 = vpack.c.bf16 (!%p204_p3), %v3831_v28, %v3830_v27  ;;  %v3785_v33 = vld [vmem:[%s7119_s2 + $0xd8] sm:$0xff] (!%p204_p3)  ;;  %v3832_v34 = vld [vmem:[%s7119_s2 + $0x250] sm:$0xff] (!%p204_p3)  ;;  %v3786_v38 = vld [vmem:[%s7119_s2 + $0xe0] sm:$0xff] (!%p204_p3) }
   0xe   : > { %s7127_s15 = smov (!%p246_p4, %s5782_s15), 1  ;;  %5153 = vmatpush3.bf16.msra.mxu1 %v5150_v8  ;;  %v3833_v35 = vld [vmem:[%s7119_s2 + $0x258] sm:$0xff]  ;;  %v5166_v36 = vpack.c.bf16 %v3785_v33, %v3784_v32  ;;  %v3787_v39 = vld [vmem:[%s7119_s2 + $0xe8] sm:$0xff]  ;;  %v3834_v40 = vld [vmem:[%s7119_s2 + $0x260] sm:$0xff] }
   0xf   : > { %s5738_s21 = smul.u32 336, %s7127_s15  ;;  %5281 = vmatpush3.bf16.msra.mxu0 %v5868_v12  ;;  %5155 = vmatprep.subr.bf16.mxu1 %v5154_v16  ;;  %v5938_v37 = vpack.c.bf16 %v3833_v35, %v3832_v34  ;;  %v3835_v41 = vld [vmem:[%s7119_s2 + $0x268] sm:$0xff]  ;;  %v5170_v42 = vpack.c.bf16 %v3787_v39, %v3786_v38  ;;  %v3788_v44 = vld [vmem:[%s7119_s2 + $0xf0] sm:$0xff]  ;;  %v3789_v45 = vld [vmem:[%s7119_s2 + $0xf8] sm:$0xff]  ;;  %s3773_s24 = sshll.u32 %s7127_s15, 3 }
  0x10   : > { %5283 = vmatprep.subr.bf16.mxu0 %v5883_v17  ;;  %v5954_v43 = vpack.c.bf16 %v3835_v41, %v3834_v40  ;;  %v3836_v46 = vld [vmem:[%s7119_s2 + $0x270] sm:$0xff]  ;;  %v3837_v47 = vld [vmem:[%s7119_s2 + $0x278] sm:$0xff]  ;;  %v5174_v48 = vpack.c.bf16 %v3789_v45, %v3788_v44  ;;  %v350_v50 = vld [vmem:[%s7119_s2] sm:$0xff]  ;;  %s6981_s27 = scalar_lea.vmem %s7121_s4, %s3773_s24 }
  0x11   : > { %s5900_s6 = scalar_lea.vmem %s7118_s1, %s5738_s21  ;;  %v5970_v49 = vpack.c.bf16 %v3837_v47, %v3836_v46  ;;  %v351_v51 = vld [vmem:[%s7119_s2 + $0x8] sm:$0xff]  ;;  %v3838_v52 = vld [vmem:[%s7119_s2 + $0x280] sm:$0xff]  ;;  %v3840_v56 = vld [vmem:[%s7119_s2 + $0x290] sm:$0xff] }
  0x12   : > { %v366_v26 = vld [vmem:[%s5900_s6 + $0x6] sm:$0xff]  ;;  %v1577_v29 = vld [vmem:[%s5900_s6 + $0x18] sm:$0xff]  ;;  %5157 = vmatpush3.bf16.msra.mxu1 %v5154_v16  ;;  %v5178_v54 = vpack.c.bf16 %v351_v51, %v350_v50  ;;  %v367_v58 = vld [vmem:[%s5900_s6 + $0xe] sm:$0xff] }
  0x13   : > { %4404 = vmatprep.mubr.f32.mxu1 %v366_v26  ;;  %4748 = vmatprep.mubr.f32.mxu0 %v1577_v29  ;;  %v3839_v53 = vld [vmem:[%s7119_s2 + $0x288] sm:$0xff]  ;;  %v3841_v57 = vld [vmem:[%s7119_s2 + $0x298] sm:$0xff]  ;;  %v352_v59 = vld [vmem:[%s7119_s2 + $0x10] sm:$0xff] }
  0x14   : > { %5285 = vmatpush3.bf16.msra.mxu0 %v5883_v17  ;;  %5159 = vmatprep.subr.bf16.mxu1 %v5158_v22  ;;  %v5306_v55 = vpack.c.bf16 %v3839_v53, %v3838_v52  ;;  %v353_v60 = vld [vmem:[%s7119_s2 + $0x18] sm:$0xff]  ;;  %v1578_v61 = vld [vmem:[%s5900_s6 + $0x20] sm:$0xff]  ;;  %v5310_v63 = vpack.c.bf16 %v3841_v57, %v3840_v56  ;;  %v1579_v0 = vld [vmem:[%s5900_s6 + $0x28] sm:$0xff] }
  0x15   : > { %5287 = vmatprep.subr.bf16.mxu0 %v5904_v23  ;;  %v368_v62 = vld [vmem:[%s5900_s6 + $0x16] sm:$0xff]  ;;  %v5182_v1 = vpack.c.bf16 %v353_v60, %v352_v59  ;;  %v3842_v2 = vld [vmem:[%s7119_s2 + $0x2a0] sm:$0xff]  ;;  %v3843_v3 = vld [vmem:[%s7119_s2 + $0x2a8] sm:$0xff] }
  0x16   : > { %5161 = vmatpush3.bf16.msra.mxu1 %v5158_v22  ;;  %v369_v4 = vld [vmem:[%s5900_s6 + $0x1e] sm:$0xff]  ;;  %v355_v6 = vld [vmem:[%s7119_s2 + $0x28] sm:$0xff]  ;;  %v1580_v8 = vld [vmem:[%s5900_s6 + $0x30] sm:$0xff]  ;;  %v5314_v11 = vpack.c.bf16 %v3843_v3, %v3842_v2 }
  0x17   : > { %5163 = vmatprep.subr.bf16.mxu1 %v5162_v30  ;;  %v354_v5 = vld [vmem:[%s7119_s2 + $0x20] sm:$0xff]  ;;  %v1581_v10 = vld [vmem:[%s5900_s6 + $0x38] sm:$0xff]  ;;  %v3844_v13 = vld [vmem:[%s7119_s2 + $0x2b0] sm:$0xff] }
  0x18   : > { %5289 = vmatpush3.bf16.msra.mxu0 %v5904_v23  ;;  %v370_v9 = vld [vmem:[%s5900_s6 + $0x26] sm:$0xff]  ;;  %v3845_v14 = vld [vmem:[%s7119_s2 + $0x2b8] sm:$0xff]  ;;  %v5186_v15 = vpack.c.bf16 %v355_v6, %v354_v5  ;;  %v371_v16 = vld [vmem:[%s5900_s6 + $0x2e] sm:$0xff] }
  0x19   : > { %5291 = vmatprep.subr.bf16.mxu0 %v5922_v31  ;;  %v356_v18 = vld [vmem:[%s7119_s2 + $0x30] sm:$0xff]  ;;  %v357_v19 = vld [vmem:[%s7119_s2 + $0x38] sm:$0xff]  ;;  %v1582_v20 = vld [vmem:[%s5900_s6 + $0x40] sm:$0xff]  ;;  %v5318_v24 = vpack.c.bf16 %v3845_v14, %v3844_v13 }
  0x1a   : > { %5165 = vmatpush3.bf16.msra.mxu1 %v5162_v30  ;;  %v372_v21 = vld [vmem:[%s5900_s6 + $0x36] sm:$0xff]  ;;  %v1583_v22 = vld [vmem:[%s5900_s6 + $0x48] sm:$0xff]  ;;  %v3846_v25 = vld [vmem:[%s7119_s2 + $0x2c0] sm:$0xff]  ;;  %v5190_v27 = vpack.c.bf16 %v357_v19, %v356_v18 }
  0x1b   : > { %5167 = vmatprep.subr.bf16.mxu1 %v5166_v36  ;;  %v3847_v26 = vld [vmem:[%s7119_s2 + $0x2c8] sm:$0xff]  ;;  %v373_v28 = vld [vmem:[%s5900_s6 + $0x3e] sm:$0xff]  ;;  %v1584_v32 = vld [vmem:[%s5900_s6 + $0x50] sm:$0xff] }
  0x1c   : > { %5293 = vmatpush3.bf16.msra.mxu0 %v5922_v31  ;;  %v358_v29 = vld [vmem:[%s7119_s2 + $0x40] sm:$0xff]  ;;  %v359_v30 = vld [vmem:[%s7119_s2 + $0x48] sm:$0xff]  ;;  %v1585_v34 = vld [vmem:[%s5900_s6 + $0x58] sm:$0xff]  ;;  %v5322_v35 = vpack.c.bf16 %v3847_v26, %v3846_v25 }
  0x1d   : > { %5295 = vmatprep.subr.bf16.mxu0 %v5938_v37  ;;  %v374_v33 = vld [vmem:[%s5900_s6 + $0x46] sm:$0xff]  ;;  %v3849_v38 = vld [vmem:[%s7119_s2 + $0x2d8] sm:$0xff]  ;;  %v5194_v39 = vpack.c.bf16 %v359_v30, %v358_v29  ;;  %v375_v40 = vld [vmem:[%s5900_s6 + $0x4e] sm:$0xff] }
  0x1e   : > { %5169 = vmatpush3.bf16.msra.mxu1 %v5166_v36  ;;  %v3848_v36 = vld [vmem:[%s7119_s2 + $0x2d0] sm:$0xff]  ;;  %v1586_v44 = vld [vmem:[%s5900_s6 + $0x60] sm:$0xff]  ;;  %v1587_v46 = vld [vmem:[%s5900_s6 + $0x68] sm:$0xff] }
  0x1f   : > { %5171 = vmatprep.subr.bf16.mxu1 %v5170_v42  ;;  %v360_v41 = vld [vmem:[%s7119_s2 + $0x50] sm:$0xff]  ;;  %v5326_v47 = vpack.c.bf16 %v3849_v38, %v3848_v36  ;;  %v3851_v50 = vld [vmem:[%s7119_s2 + $0x2e8] sm:$0xff]  ;;  %v377_v52 = vld [vmem:[%s5900_s6 + $0x5e] sm:$0xff] }
  0x20   : > { %5297 = vmatpush3.bf16.msra.mxu0 %v5938_v37  ;;  %v376_v45 = vld [vmem:[%s5900_s6 + $0x56] sm:$0xff]  ;;  %v362_v53 = vld [vmem:[%s7119_s2 + $0x60] sm:$0xff]  ;;  %v1591_v3 = vld [vmem:[%s5900_s6 + $0x88] sm:$0xff] }
  0x21   : > { %5299 = vmatprep.subr.bf16.mxu0 %v5954_v43  ;;  %v378_v56 = vld [vmem:[%s5900_s6 + $0x66] sm:$0xff]  ;;  %v1589_v57 = vld [vmem:[%s5900_s6 + $0x78] sm:$0xff]  ;;  %v3852_v59 = vld [vmem:[%s7119_s2 + $0x2f0] sm:$0xff] }
  0x22   : > { %5173 = vmatpush3.bf16.msra.mxu1 %v5170_v42  ;;  %v361_v42 = vld [vmem:[%s7119_s2 + $0x58] sm:$0xff]  ;;  %v3854_v5 = vld [vmem:[%s7119_s2 + $0x300] sm:$0xff]  ;;  %v3855_v6 = vld [vmem:[%s7119_s2 + $0x308] sm:$0xff] }
  0x23   : > { %5175 = vmatprep.subr.bf16.mxu1 %v5174_v48  ;;  %v5198_v51 = vpack.c.bf16 %v361_v42, %v360_v41  ;;  %v3853_v60 = vld [vmem:[%s7119_s2 + $0x2f8] sm:$0xff]  ;;  %v1592_v13 = vld [vmem:[%s5900_s6 + $0x90] sm:$0xff]  ;;  %v382_v14 = vld [vmem:[%s5900_s6 + $0x86] sm:$0xff] }
  0x24   : > { %5301 = vmatpush3.bf16.msra.mxu0 %v5954_v43  ;;  %v380_v2 = vld [vmem:[%s5900_s6 + $0x76] sm:$0xff]  ;;  %v383_v19 = vld [vmem:[%s5900_s6 + $0x8e] sm:$0xff]  ;;  %v385_v26 = vld [vmem:[%s5900_s6 + $0x9e] sm:$0xff] }
  0x25   : > { %5303 = vmatprep.subr.bf16.mxu0 %v5970_v49  ;;  %v3857_v25 = vld [vmem:[%s7119_s2 + $0x318] sm:$0xff]  ;;  %v6132_v29 = vld [vmem:[%s5900_s6 + $0x29] sm:$0xff] }
  0x26   : > { %5177 = vmatpush3.bf16.msra.mxu1 %v5174_v48  ;;  %v3850_v48 = vld [vmem:[%s7119_s2 + $0x2e0] sm:$0xff]  ;;  %v388_v36 = vld [vmem:[%s5900_s6 + $0xb6] sm:$0xff] }
  0x27   : > { %5179 = vmatprep.subr.bf16.mxu1 %v5178_v54  ;;  %v6147_v38 = vld [vmem:[%s5900_s6 + $0x39] sm:$0xff] }
  0x28   : > { %5305 = vmatpush3.bf16.msra.mxu0 %v5970_v49  ;;  %v3861_v41 = vld [vmem:[%s7119_s2 + $0x338] sm:$0xff] }
  0x29   : > { %5307 = vmatprep.subr.bf16.mxu0 %v5306_v55  ;;  %4405 = vmatmul.mubr.f32.vlgmr.msra.gmra.mrb[0].mxu1 %v367_v58  ;;  %v5330_v58 = vpack.c.bf16 %v3851_v50, %v3850_v48  ;;  %v389_v42 = vld [vmem:[%s5900_s6 + $0xbe] sm:$0xff]  ;;  %v3863_v50 = vld [vmem:[%s7119_s2 + $0x348] sm:$0xff] }
  0x2a   : > { %5181 = vmatpush3.bf16.msra.mxu1 %v5178_v54  ;;  %4407 = vmatprep.mubr.f32.mxu1 %v368_v62  ;;  %v363_v54 = vld [vmem:[%s7119_s2 + $0x68] sm:$0xff]  ;;  %v3862_v48 = vld [vmem:[%s7119_s2 + $0x340] sm:$0xff] }
  0x2b   : > { %4749 = vmatmul.mubr.f32.vlgmr.msra.gmra.mrb[0].mxu0 %v1578_v61  ;;  %5183 = vmatprep.subr.bf16.mxu1 %v5182_v1  ;;  %v5202_v61 = vpack.c.bf16 %v363_v54, %v362_v53  ;;  %v379_v62 = vld [vmem:[%s5900_s6 + $0x6e] sm:$0xff]  ;;  %v392_v53 = vld [vmem:[%s5900_s6 + $0xd6] sm:$0xff] }
  0x2c   : > { %5309 = vmatpush3.bf16.msra.mxu0 %v5306_v55  ;;  %4751 = vmatprep.mubr.f32.mxu0 %v1579_v0  ;;  %v1588_v55 = vld [vmem:[%s5900_s6 + $0x70] sm:$0xff]  ;;  %v365_v0 = vld [vmem:[%s7119_s2 + $0x78] sm:$0xff] }
  0x2d   : > { %5311 = vmatprep.subr.bf16.mxu0 %v5310_v63  ;;  %4408 = vmatmul.mubr.f32.gmra.mrb[2].mxu1 %v369_v4  ;;  %v5334_v4 = vpack.c.bf16 %v3853_v60, %v3852_v59  ;;  %v6179_v54 = vld [vmem:[%s5900_s6 + $0x59] sm:$0xff]  ;;  %v6191_v59 = vld [vmem:[%s5900_s6 + $0x61] sm:$0xff] }
  0x2e   : > { %4410 = vmatprep.mubr.f32.mxu1 %v370_v9  ;;  %5185 = vmatpush3.bf16.msra.mxu1 %v5182_v1  ;;  %v1590_v1 = vld [vmem:[%s5900_s6 + $0x80] sm:$0xff] }
  0x2f   : > { %4752 = vmatmul.mubr.f32.gmra.mrb[2].mxu0 %v1580_v8  ;;  %5187 = vmatprep.subr.bf16.mxu1 %v5186_v15  ;;  %v381_v9 = vld [vmem:[%s5900_s6 + $0x7e] sm:$0xff]  ;;  %v394_v60 = vld [vmem:[%s5900_s6 + $0xe6] sm:$0xff] }
  0x30   : > { %5313 = vmatpush3.bf16.msra.mxu0 %v5310_v63  ;;  %4754 = vmatprep.mubr.f32.mxu0 %v1581_v10  ;;  %v364_v63 = vld [vmem:[%s7119_s2 + $0x70] sm:$0xff]  ;;  %v3790_v10 = vld [vmem:[%s7119_s2 + $0x100] sm:$0xff] }
  0x31   : > { %5315 = vmatprep.subr.bf16.mxu0 %v5314_v11  ;;  %4411 = vmatmul.mubr.f32.gmra.mrb[4].mxu1 %v371_v16  ;;  %v5206_v8 = vpack.c.bf16 %v365_v0, %v364_v63  ;;  %v5338_v16 = vpack.c.bf16 %v3855_v6, %v3854_v5  ;;  %v3866_v63 = vld [vmem:[%s7119_s2 + $0x360] sm:$0xff]  ;;  %v3867_v0 = vld [vmem:[%s7119_s2 + $0x368] sm:$0xff]  ;;  %v3868_v6 = vld [vmem:[%s7119_s2 + $0x370] sm:$0xff] }
  0x32   : > { %4413 = vmatprep.mubr.f32.mxu1 %v372_v21  ;;  %5189 = vmatpush3.bf16.msra.mxu1 %v5186_v15  ;;  %v1593_v15 = vld [vmem:[%s5900_s6 + $0x98] sm:$0xff]  ;;  %v5362_v5 = vpack.c.bf16 %v3867_v0, %v3866_v63  ;;  %v3799_v63 = vld [vmem:[%s7119_s2 + $0x148] sm:$0xff] }
  0x33   : > { %4755 = vmatmul.mubr.f32.gmra.mrb[4].mxu0 %v1582_v20  ;;  %5191 = vmatprep.subr.bf16.mxu1 %v5190_v27  ;;  %v1594_v20 = vld [vmem:[%s5900_s6 + $0xa0] sm:$0xff]  ;;  %v384_v21 = vld [vmem:[%s5900_s6 + $0x96] sm:$0xff] }
  0x34   : > { %5317 = vmatpush3.bf16.msra.mxu0 %v5314_v11  ;;  %4757 = vmatprep.mubr.f32.mxu0 %v1583_v22  ;;  %v3791_v11 = vld [vmem:[%s7119_s2 + $0x108] sm:$0xff]  ;;  %v1911_v22 = vld [vmem:[%s5900_s6 + $0x19] sm:$0xff] }
  0x35   : > { %5319 = vmatprep.subr.bf16.mxu0 %v5318_v24  ;;  %4414 = vmatmul.mubr.f32.gmra.mrb[6].mxu1 %v373_v28  ;;  %v6115_v18 = vpack.c.bf16 %v3791_v11, %v3790_v10  ;;  %v386_v28 = vld [vmem:[%s5900_s6 + $0xa6] sm:$0xff]  ;;  %v321_v0 = vld [vmem:[%s5900_s6 + $0x3d] sm:$0xff] }
  0x36   : > { %4416 = vmatprep.mubr.f32.mxu1 %v374_v33  ;;  %5193 = vmatpush3.bf16.msra.mxu1 %v5190_v27  ;;  %v1912_v27 = vld [vmem:[%s5900_s6 + $0x21] sm:$0xff] }
  0x37   : > { %4758 = vmatmul.mubr.f32.gmra.mrb[6].mxu0 %v1584_v32  ;;  %5195 = vmatprep.subr.bf16.mxu1 %v5194_v39  ;;  %v3858_v32 = vld [vmem:[%s7119_s2 + $0x320] sm:$0xff]  ;;  %v3859_v33 = vld [vmem:[%s7119_s2 + $0x328] sm:$0xff] }
  0x38   : > { %4760 = vmatprep.mubr.f32.mxu0 %v1585_v34  ;;  %5321 = vmatpush3.bf16.msra.mxu0 %v5318_v24  ;;  %v3856_v24 = vld [vmem:[%s7119_s2 + $0x310] sm:$0xff]  ;;  %v6223_v10 = vld [vmem:[%s5900_s6 + $0x81] sm:$0xff] }
  0x39   : > { %5323 = vmatprep.subr.bf16.mxu0 %v5322_v35  ;;  %4417 = vmatmul.mubr.f32.gmra.mrb[8].mxu1 %v375_v40  ;;  %v5342_v30 = vpack.c.bf16 %v3857_v25, %v3856_v24  ;;  %v387_v34 = vld [vmem:[%s5900_s6 + $0xae] sm:$0xff]  ;;  %v398_v11 = vld [vmem:[%s5900_s6 + $0x106] sm:$0xff]  ;;  %v401_v25 = vld [vmem:[%s5900_s6 + $0x11e] sm:$0xff] }
  0x3a   : > { %4419 = vmatprep.mubr.f32.mxu1 %v376_v45  ;;  %5197 = vmatpush3.bf16.msra.mxu1 %v5194_v39  ;;  %v5346_v39 = vpack.c.bf16 %v3859_v33, %v3858_v32  ;;  %v3860_v40 = vld [vmem:[%s7119_s2 + $0x330] sm:$0xff]  ;;  %v390_v45 = vld [vmem:[%s5900_s6 + $0xc6] sm:$0xff]  ;;  %v3793_v32 = vld [vmem:[%s7119_s2 + $0x118] sm:$0xff] }
  0x3b   : > { %4761 = vmatmul.mubr.f32.gmra.mrb[8].mxu0 %v1586_v44  ;;  %5199 = vmatprep.subr.bf16.mxu1 %v5198_v51  ;;  %v6159_v44 = vld [vmem:[%s5900_s6 + $0x41] sm:$0xff]  ;;  %v315_v33 = vld [vmem:[%s5900_s6 + $0xd] sm:$0xff] }
  0x3c   : > { %4763 = vmatprep.mubr.f32.mxu0 %v1587_v46  ;;  %5325 = vmatpush3.bf16.msra.mxu0 %v5322_v35  ;;  %v6143_v35 = vld [vmem:[%s5900_s6 + $0x31] sm:$0xff]  ;;  %v6163_v46 = vld [vmem:[%s5900_s6 + $0x49] sm:$0xff] }
  0x3d   : > { %5327 = vmatprep.subr.bf16.mxu0 %v5326_v47  ;;  %4420 = vmatmul.mubr.f32.gmra.mrb[10].mxu1 %v377_v52  ;;  %v6175_v52 = vld [vmem:[%s5900_s6 + $0x51] sm:$0xff] }
  0x3e   : > { %4422 = vmatprep.mubr.f32.mxu1 %v378_v56  ;;  %5201 = vmatpush3.bf16.msra.mxu1 %v5198_v51  ;;  %v391_v51 = vld [vmem:[%s5900_s6 + $0xce] sm:$0xff] }
  0x3f   : > { %4764 = vmatmul.mubr.f32.gmra.mrb[10].mxu0 %v1588_v55  ;;  %5203 = vmatprep.subr.bf16.mxu1 %v5202_v61  ;;  %v5354_v55 = vpack.c.bf16 %v3863_v50, %v3862_v48  ;;  %v3864_v56 = vld [vmem:[%s7119_s2 + $0x350] sm:$0xff]  ;;  %v318_v48 = vld [vmem:[%s5900_s6 + $0x25] sm:$0xff] }
  0x40   : > { %4766 = vmatprep.mubr.f32.mxu0 %v1589_v57  ;;  %5329 = vmatpush3.bf16.msra.mxu0 %v5326_v47  ;;  %v5350_v47 = vpack.c.bf16 %v3861_v41, %v3860_v40  ;;  %v3865_v57 = vld [vmem:[%s7119_s2 + $0x358] sm:$0xff]  ;;  %v3794_v41 = vld [vmem:[%s7119_s2 + $0x120] sm:$0xff]  ;;  %v6289_v50 = vld [vmem:[%s5900_s6 + $0xc9] sm:$0xff] }
  0x41   : > { %5331 = vmatprep.subr.bf16.mxu0 %v5330_v58  ;;  %4423 = vmatmul.mubr.f32.gmra.mrb[12].mxu1 %v379_v62  ;;  %v5358_v62 = vpack.c.bf16 %v3865_v57, %v3864_v56  ;;  %v6301_v56 = vld [vmem:[%s5900_s6 + $0xd1] sm:$0xff] }
  0x42   : > { %4425 = vmatprep.mubr.f32.mxu1 %v380_v2  ;;  %5205 = vmatpush3.bf16.msra.mxu1 %v5202_v61  ;;  %v6195_v61 = vld [vmem:[%s5900_s6 + $0x69] sm:$0xff]  ;;  %v6207_v2 = vld [vmem:[%s5900_s6 + $0x71] sm:$0xff] }
  0x43   : > { %4767 = vmatmul.mubr.f32.gmra.mrb[12].mxu0 %v1590_v1  ;;  %5207 = vmatprep.subr.bf16.mxu1 %v5206_v8  ;;  %v395_v1 = vld [vmem:[%s5900_s6 + $0xee] sm:$0xff] }
  0x44   : > { %4769 = vmatprep.mubr.f32.mxu0 %v1591_v3  ;;  %5333 = vmatpush3.bf16.msra.mxu0 %v5330_v58  ;;  %v393_v58 = vld [vmem:[%s5900_s6 + $0xde] sm:$0xff]  ;;  %v396_v3 = vld [vmem:[%s5900_s6 + $0xf6] sm:$0xff] }
  0x45   : > { %5335 = vmatprep.subr.bf16.mxu0 %v5334_v4  ;;  %4426 = vmatmul.mubr.f32.gmra.mrb[14].mxu1 %v381_v9  ;;  %v397_v9 = vld [vmem:[%s5900_s6 + $0xfe] sm:$0xff]  ;;  %v320_v57 = vld [vmem:[%s5900_s6 + $0x35] sm:$0xff] }
  0x46   : > { %4428 = vmatprep.mubr.f32.mxu1 %v382_v14  ;;  %5209 = vmatpush3.bf16.msra.mxu1 %v5206_v8  ;;  %v3869_v8 = vld [vmem:[%s7119_s2 + $0x378] sm:$0xff] }
  0x47   : > { %4770 = vmatmul.mubr.f32.gmra.mrb[14].mxu0 %v1592_v13  ;;  %5211 = vmatprep.subr.bf16.mxu1 %v6115_v18  ;;  %v6227_v13 = vld [vmem:[%s5900_s6 + $0x89] sm:$0xff]  ;;  %v5366_v14 = vpack.c.bf16 %v3869_v8, %v3868_v6 }
  0x48   : > { %4772 = vmatprep.mubr.f32.mxu0 %v1593_v15  ;;  %5337 = vmatpush3.bf16.msra.mxu0 %v5334_v4  ;;  %v6211_v4 = vld [vmem:[%s5900_s6 + $0x79] sm:$0xff]  ;;  %v3800_v8 = vld [vmem:[%s7119_s2 + $0x150] sm:$0xff] }
  0x49   : > { %5339 = vmatprep.subr.bf16.mxu0 %v5338_v16  ;;  %4429 = vmatmul.mubr.f32.gmra.mrb[16].mxu1 %v383_v19  ;;  %v3870_v15 = vld [vmem:[%s7119_s2 + $0x380] sm:$0xff]  ;;  %v399_v19 = vld [vmem:[%s5900_s6 + $0x10e] sm:$0xff] }
  0x4a   : > { %4431 = vmatprep.mubr.f32.mxu1 %v384_v21  ;;  %v400_v21 = vld [vmem:[%s5900_s6 + $0x116] sm:$0xff] }
  0x4b   : > { %4773 = vmatmul.mubr.f32.gmra.mrb[16].mxu0 %v1594_v20  ;;  %v6239_v20 = vld [vmem:[%s5900_s6 + $0x91] sm:$0xff] }
  0x4c   : > { %4834 = vmatprep.mubr.f32.mxu0 %v1911_v22  ;;  %v6243_v22 = vld [vmem:[%s5900_s6 + $0x99] sm:$0xff] }
  0x4d   : > { %4432 = vmatmul.mubr.f32.gmra.mrb[18].mxu1 %v385_v26  ;;  %v6251_v26 = vld [vmem:[%s5900_s6 + $0xa1] sm:$0xff] }
  0x4e   : > { %4434 = vmatprep.mubr.f32.mxu1 %v386_v28  ;;  %v6255_v28 = vld [vmem:[%s5900_s6 + $0xa9] sm:$0xff] }
  0x4f   : > { %4835 = vmatmul.mubr.f32.vlgmr.msra.gmra.mrb[0].mxu0 %v1912_v27  ;;  %v314_v27 = vld [vmem:[%s5900_s6 + $0x5] sm:$0xff] }
  0x50   : > { %5341 = vmatpush3.bf16.msra.mxu0 %v5338_v16  ;;  %4837 = vmatprep.mubr.f32.mxu0 %v6132_v29  ;;  %v3871_v16 = vld [vmem:[%s7119_s2 + $0x388] sm:$0xff] }
  0x51   : > { %5343 = vmatprep.subr.bf16.mxu0 %v5342_v30  ;;  %4435 = vmatmul.mubr.f32.gmra.mrb[20].mxu1 %v387_v34  ;;  %v6245_v24 = vpack.c.bf16 %v3871_v16, %v3870_v15  ;;  %v6268_v34 = vld [vmem:[%s5900_s6 + $0xb1] sm:$0xff]  ;;  %v6337_v16 = vld [vmem:[%s5900_s6 + $0xf9] sm:$0xff] }
  0x52   : > { %4437 = vmatprep.mubr.f32.mxu1 %v388_v36  ;;  %v316_v36 = vld [vmem:[%s5900_s6 + $0x15] sm:$0xff] }
  0x53   : > { %4838 = vmatmul.mubr.f32.gmra.mrb[2].mxu0 %v6143_v35  ;;  %v324_v15 = vld [vmem:[%s5900_s6 + $0x55] sm:$0xff] }
  0x54   : > { %4840 = vmatprep.mubr.f32.mxu0 %v6147_v38  ;;  %5345 = vmatpush3.bf16.msra.mxu0 %v5342_v30  ;;  %v3792_v30 = vld [vmem:[%s7119_s2 + $0x110] sm:$0xff] }
  0x55   : > { %5347 = vmatprep.subr.bf16.mxu0 %v5346_v39  ;;  %4438 = vmatmul.mubr.f32.gmra.mrb[22].mxu1 %v389_v42  ;;  %v5214_v40 = vpack.c.bf16 %v3793_v32, %v3792_v30  ;;  %v3795_v42 = vld [vmem:[%s7119_s2 + $0x128] sm:$0xff] }
  0x56   : > { %4440 = vmatprep.mubr.f32.mxu1 %v390_v45  ;;  %v317_v45 = vld [vmem:[%s5900_s6 + $0x1d] sm:$0xff]  ;;  %v326_v32 = vld [vmem:[%s5900_s6 + $0x65] sm:$0xff] }
  0x57   : > { %4841 = vmatmul.mubr.f32.gmra.mrb[4].mxu0 %v6159_v44  ;;  %v6349_v30 = vld [vmem:[%s5900_s6 + $0x101] sm:$0xff] }
  0x58   : > { %4843 = vmatprep.mubr.f32.mxu0 %v6163_v46  ;;  %5349 = vmatpush3.bf16.msra.mxu0 %v5346_v39  ;;  %v6272_v39 = vld [vmem:[%s5900_s6 + $0xb9] sm:$0xff] }
  0x59   : > { %5351 = vmatprep.subr.bf16.mxu0 %v5350_v47  ;;  %4441 = vmatmul.mubr.f32.gmra.mrb[24].mxu1 %v391_v51  ;;  %v5218_v51 = vpack.c.bf16 %v3795_v42, %v3794_v41  ;;  %v3805_v41 = vld [vmem:[%s7119_s2 + $0x178] sm:$0xff]  ;;  %v327_v42 = vld [vmem:[%s5900_s6 + $0x6d] sm:$0xff] }
  0x5a   : > { %4443 = vmatprep.mubr.f32.mxu1 %v392_v53  ;;  %v3796_v53 = vld [vmem:[%s7119_s2 + $0x130] sm:$0xff] }
  0x5b   : > { %4844 = vmatmul.mubr.f32.gmra.mrb[6].mxu0 %v6175_v52 }
  0x5c   : > { %4846 = vmatprep.mubr.f32.mxu0 %v6179_v54  ;;  %5353 = vmatpush3.bf16.msra.mxu0 %v5350_v47  ;;  %v6285_v47 = vld [vmem:[%s5900_s6 + $0xc1] sm:$0xff] }
  0x5d   : > { %5355 = vmatprep.subr.bf16.mxu0 %v5354_v55  ;;  %4444 = vmatmul.mubr.f32.gmra.mrb[26].mxu1 %v393_v58  ;;  %v6305_v58 = vld [vmem:[%s5900_s6 + $0xd9] sm:$0xff] }
  0x5e   : > { %4446 = vmatprep.mubr.f32.mxu1 %v394_v60 }
  0x5f   : > { %4847 = vmatmul.mubr.f32.gmra.mrb[8].mxu0 %v6191_v59 }
  0x60   : > { %4849 = vmatprep.mubr.f32.mxu0 %v6195_v61  ;;  %5357 = vmatpush3.bf16.msra.mxu0 %v5354_v55  ;;  %v319_v55 = vld [vmem:[%s5900_s6 + $0x2d] sm:$0xff] }
  0x61   : > { %5359 = vmatprep.subr.bf16.mxu0 %v5358_v62  ;;  %4447 = vmatmul.mubr.f32.gmra.mrb[28].mxu1 %v395_v1  ;;  %v6317_v1 = vld [vmem:[%s5900_s6 + $0xe1] sm:$0xff] }
  0x62   : > { %4449 = vmatprep.mubr.f32.mxu1 %v396_v3  ;;  %v322_v3 = vld [vmem:[%s5900_s6 + $0x45] sm:$0xff] }
  0x63   : > { %4850 = vmatmul.mubr.f32.gmra.mrb[10].mxu0 %v6207_v2 }
  0x64   : > { %4852 = vmatprep.mubr.f32.mxu0 %v6211_v4  ;;  %5361 = vmatpush3.bf16.msra.mxu0 %v5358_v62  ;;  %v3798_v62 = vld [vmem:[%s7119_s2 + $0x140] sm:$0xff] }
  0x65   : > { %5363 = vmatprep.subr.bf16.mxu0 %v5362_v5  ;;  %4450 = vmatmul.mubr.f32.gmra.mrb[30].mxu1 %v397_v9  ;;  %v5226_v6 = vpack.c.bf16 %v3799_v63, %v3798_v62  ;;  %v3801_v9 = vld [vmem:[%s7119_s2 + $0x158] sm:$0xff]  ;;  %v330_v62 = vld [vmem:[%s5900_s6 + $0x85] sm:$0xff] }
  0x66   : > { %4452 = vmatprep.mubr.f32.mxu1 %v398_v11  ;;  %v323_v11 = vld [vmem:[%s5900_s6 + $0x4d] sm:$0xff] }
  0x67   : > { %4853 = vmatmul.mubr.f32.gmra.mrb[12].mxu0 %v6223_v10  ;;  %v6385_v63 = vld [vmem:[%s5900_s6 + $0x129] sm:$0xff] }
  0x68   : > { %4855 = vmatprep.mubr.f32.mxu0 %v6227_v13  ;;  %5365 = vmatpush3.bf16.msra.mxu0 %v5362_v5  ;;  %v6321_v5 = vld [vmem:[%s5900_s6 + $0xe9] sm:$0xff] }
  0x69   : > { %5367 = vmatprep.subr.bf16.mxu0 %v5366_v14  ;;  %4453 = vmatmul.mubr.f32.gmra.mrb[32].mxu1 %v399_v19  ;;  %v5230_v19 = vpack.c.bf16 %v3801_v9, %v3800_v8  ;;  %v332_v8 = vld [vmem:[%s5900_s6 + $0x95] sm:$0xff] }
  0x6a   : > { %4455 = vmatprep.mubr.f32.mxu1 %v400_v21  ;;  %v3802_v21 = vld [vmem:[%s7119_s2 + $0x160] sm:$0xff]  ;;  %v3872_v9 = vld [vmem:[%s7119_s2 + $0x390] sm:$0xff] }
  0x6b   : > { %4856 = vmatmul.mubr.f32.gmra.mrb[14].mxu0 %v6239_v20 }
  0x6c   : > { %4858 = vmatprep.mubr.f32.mxu0 %v6243_v22  ;;  %5369 = vmatpush3.bf16.msra.mxu0 %v5366_v14  ;;  %v6333_v14 = vld [vmem:[%s5900_s6 + $0xf1] sm:$0xff] }
  0x6d   : > { %5371 = vmatprep.subr.bf16.mxu0 %v6245_v24  ;;  %4456 = vmatmul.mubr.f32.gmra.mrb[34].mxu1 %v401_v25  ;;  %v3803_v25 = vld [vmem:[%s7119_s2 + $0x168] sm:$0xff] }
  0x6e   : > { %4490 = vmatprep.mubr.f32.mxu1 %v314_v27  ;;  %v325_v27 = vld [vmem:[%s5900_s6 + $0x5d] sm:$0xff] }
  0x6f   : > { %4859 = vmatmul.mubr.f32.gmra.mrb[16].mxu0 %v6251_v26 }
  0x70   : > { %4861 = vmatprep.mubr.f32.mxu0 %v6255_v28 }
  0x71   : > { %4491 = vmatmul.mubr.f32.vlgmr.msra.gmra.mrb[0].mxu1 %v315_v33  ;;  %v6353_v33 = vld [vmem:[%s5900_s6 + $0x109] sm:$0xff] }
  0x72   : > { %5213 = vmatpush3.bf16.msra.mxu1 %v6115_v18  ;;  %4493 = vmatprep.mubr.f32.mxu1 %v316_v36  ;;  %v3797_v18 = vld [vmem:[%s7119_s2 + $0x138] sm:$0xff]  ;;  %v5234_v36 = vpack.c.bf16 %v3803_v25, %v3802_v21  ;;  %v3874_v25 = vld [vmem:[%s7119_s2 + $0x3a0] sm:$0xff] }
  0x73   : > { %4862 = vmatmul.mubr.f32.gmra.mrb[18].mxu0 %v6268_v34  ;;  %5215 = vmatprep.subr.bf16.mxu1 %v5214_v40  ;;  %v5222_v60 = vpack.c.bf16 %v3797_v18, %v3796_v53  ;;  %v3806_v18 = vld [vmem:[%s7119_s2 + $0x180] sm:$0xff] }
  0x74   : > { %4864 = vmatprep.mubr.f32.mxu0 %v6272_v39 }
  0x75   : > { %4494 = vmatmul.mubr.f32.gmra.mrb[2].mxu1 %v317_v45  ;;  %v6365_v45 = vld [vmem:[%s5900_s6 + $0x111] sm:$0xff] }
  0x76   : > { %4496 = vmatprep.mubr.f32.mxu1 %v318_v48  ;;  %5217 = vmatpush3.bf16.msra.mxu1 %v5214_v40  ;;  %v3804_v40 = vld [vmem:[%s7119_s2 + $0x170] sm:$0xff] }
  0x77   : > { %4865 = vmatmul.mubr.f32.gmra.mrb[20].mxu0 %v6285_v47  ;;  %5219 = vmatprep.subr.bf16.mxu1 %v5218_v51  ;;  %v328_v48 = vld [vmem:[%s5900_s6 + $0x75] sm:$0xff]  ;;  %v5238_v53 = vpack.c.bf16 %v3805_v41, %v3804_v40 }
  0x78   : > { %4867 = vmatprep.mubr.f32.mxu0 %v6289_v50  ;;  %v3876_v40 = vld [vmem:[%s7119_s2 + $0x3b0] sm:$0xff] }
  0x79   : > { %4497 = vmatmul.mubr.f32.gmra.mrb[4].mxu1 %v319_v55  ;;  %v3807_v55 = vld [vmem:[%s7119_s2 + $0x188] sm:$0xff] }
  0x7a   : > { %4499 = vmatprep.mubr.f32.mxu1 %v320_v57  ;;  %5221 = vmatpush3.bf16.msra.mxu1 %v5218_v51  ;;  %v6369_v51 = vld [vmem:[%s5900_s6 + $0x119] sm:$0xff] }
  0x7b   : > { %4868 = vmatmul.mubr.f32.gmra.mrb[22].mxu0 %v6301_v56  ;;  %5223 = vmatprep.subr.bf16.mxu1 %v5222_v60  ;;  %v329_v57 = vld [vmem:[%s5900_s6 + $0x7d] sm:$0xff] }
  0x7c   : > { %4870 = vmatprep.mubr.f32.mxu0 %v6305_v58 }
  0x7d   : > { %4500 = vmatmul.mubr.f32.gmra.mrb[6].mxu1 %v321_v0  ;;  %v6387_v0 = vpack.c.bf16 %v3807_v55, %v3806_v18  ;;  %v3880_v18 = vld [vmem:[%s7119_s2 + $0x3d0] sm:$0xff]  ;;  %v3881_v55 = vld [vmem:[%s7119_s2 + $0x3d8] sm:$0xff] }
  0x7e   : > { %4502 = vmatprep.mubr.f32.mxu1 %v322_v3  ;;  %5225 = vmatpush3.bf16.msra.mxu1 %v5222_v60  ;;  %v6381_v60 = vld [vmem:[%s5900_s6 + $0x121] sm:$0xff]  ;;  %v331_v3 = vld [vmem:[%s5900_s6 + $0x8d] sm:$0xff] }
  0x7f   : > { %4871 = vmatmul.mubr.f32.gmra.mrb[24].mxu0 %v6317_v1  ;;  %5227 = vmatprep.subr.bf16.mxu1 %v5226_v6 }
  0x80   : > { %4873 = vmatprep.mubr.f32.mxu0 %v6321_v5 }
  0x81   : > { %4503 = vmatmul.mubr.f32.gmra.mrb[8].mxu1 %v323_v11  ;;  %v3873_v11 = vld [vmem:[%s7119_s2 + $0x398] sm:$0xff] }
  0x82   : > { %4505 = vmatprep.mubr.f32.mxu1 %v324_v15  ;;  %5229 = vmatpush3.bf16.msra.mxu1 %v5226_v6  ;;  %v6393_v6 = vld [vmem:[%s5900_s6 + $0x131] sm:$0xff]  ;;  %v333_v15 = vld [vmem:[%s5900_s6 + $0x9d] sm:$0xff]  ;;  %v5374_v21 = vpack.c.bf16 %v3873_v11, %v3872_v9 }
  0x83   : > { %4874 = vmatmul.mubr.f32.gmra.mrb[26].mxu0 %v6333_v14  ;;  %5231 = vmatprep.subr.bf16.mxu1 %v5230_v19  ;;  %v3884_v9 = vld [vmem:[%s7119_s2 + $0x3f0] sm:$0xff]  ;;  %v3885_v11 = vld [vmem:[%s7119_s2 + $0x3f8] sm:$0xff] }
  0x84   : > { %4876 = vmatprep.mubr.f32.mxu0 %v6337_v16 }
  0x85   : > { %4506 = vmatmul.mubr.f32.gmra.mrb[10].mxu1 %v325_v27  ;;  %v3875_v27 = vld [vmem:[%s7119_s2 + $0x3a8] sm:$0xff] }
  0x86   : > { %4508 = vmatprep.mubr.f32.mxu1 %v326_v32  ;;  %5233 = vmatpush3.bf16.msra.mxu1 %v5230_v19  ;;  %v334_v19 = vld [vmem:[%s5900_s6 + $0xa5] sm:$0xff]  ;;  %v335_v32 = vld [vmem:[%s5900_s6 + $0xad] sm:$0xff] }
  0x87   : > { %4877 = vmatmul.mubr.f32.gmra.mrb[28].mxu0 %v6349_v30  ;;  %5235 = vmatprep.subr.bf16.mxu1 %v5234_v36 }
  0x88   : > { %4879 = vmatprep.mubr.f32.mxu0 %v6353_v33 }
  0x89   : > { %4509 = vmatmul.mubr.f32.gmra.mrb[12].mxu1 %v327_v42  ;;  %v3878_v42 = vld [vmem:[%s7119_s2 + $0x3c0] sm:$0xff] }
  0x8a   : > { %4511 = vmatprep.mubr.f32.mxu1 %v328_v48  ;;  %5237 = vmatpush3.bf16.msra.mxu1 %v5234_v36  ;;  %v5378_v36 = vpack.c.bf16 %v3875_v27, %v3874_v25  ;;  %v3879_v48 = vld [vmem:[%s7119_s2 + $0x3c8] sm:$0xff]  ;;  %v349_v27 = vld [vmem:[%s5900_s6 + $0x11d] sm:$0xff] }
  0x8b   : > { %4880 = vmatmul.mubr.f32.gmra.mrb[30].mxu0 %v6365_v45  ;;  %5239 = vmatprep.subr.bf16.mxu1 %v5238_v53 }
  0x8c   : > { %4882 = vmatprep.mubr.f32.mxu0 %v6369_v51 }
  0x8d   : > { %4512 = vmatmul.mubr.f32.gmra.mrb[14].mxu1 %v329_v57  ;;  %v5390_v57 = vpack.c.bf16 %v3881_v55, %v3880_v18  ;;  %v3815_v18 = vld [vmem:[%s7119_s2 + $0x1c8] sm:$0xff] }
  0x8e   : > { %4514 = vmatprep.mubr.f32.mxu1 %v330_v62  ;;  %5241 = vmatpush3.bf16.msra.mxu1 %v5238_v53  ;;  %v5386_v53 = vpack.c.bf16 %v3879_v48, %v3878_v42  ;;  %v3882_v62 = vld [vmem:[%s7119_s2 + $0x3e0] sm:$0xff]  ;;  %v3813_v42 = vld [vmem:[%s7119_s2 + $0x1b8] sm:$0xff]  ;;  %v283_v55 = vld [vmem:[%s7117_s0 + $0x28] sm:$0xff] }
  0x8f   : > { %4883 = vmatmul.mubr.f32.gmra.mrb[32].mxu0 %v6381_v60  ;;  %5243 = vmatprep.subr.bf16.mxu1 %v6387_v0  ;;  %v281_v48 = vld [vmem:[%s7117_s0 + $0x18] sm:$0xff] }
  0x90   : > { %4885 = vmatprep.mubr.f32.mxu0 %v6385_v63 }
  0x91   : > { %4515 = vmatmul.mubr.f32.gmra.mrb[16].mxu1 %v331_v3  ;;  %v3883_v3 = vld [vmem:[%s7119_s2 + $0x3e8] sm:$0xff] }
  0x92   : > { %4517 = vmatprep.mubr.f32.mxu1 %v332_v8  ;;  %v5394_v8 = vpack.c.bf16 %v3883_v3, %v3882_v62  ;;  %v3817_v62 = vld [vmem:[%s7119_s2 + $0x1d8] sm:$0xff] }
  0x93   : > { %4886 = vmatmul.mubr.f32.gmra.mrb[34].mxu0 %v6393_v6  ;;  %v285_v3 = vld [vmem:[%s7117_s0 + $0x38] sm:$0xff] }
  0x94   : > { %4920 = vmatprep.mubr.f32.mxu0 %v6132_v29  ;;  %v336_v29 = vld [vmem:[%s5900_s6 + $0xb5] sm:$0xff] }
  0x95   : > { %4518 = vmatmul.mubr.f32.gmra.mrb[18].mxu1 %v333_v15  ;;  %v5398_v15 = vpack.c.bf16 %v3885_v11, %v3884_v9  ;;  %v3819_v9 = vld [vmem:[%s7119_s2 + $0x1e8] sm:$0xff] }
  0x96   : > { %4520 = vmatprep.mubr.f32.mxu1 %v334_v19  ;;  %v3886_v19 = vld [vmem:[%s7119_s2 + $0x400] sm:$0xff]  ;;  %v287_v11 = vld [vmem:[%s7117_s0 + $0x48] sm:$0xff] }
  0x97   : > { %4921 = vmatmul.mubr.f32.vlgmr.msra.gmra.mrb[0].mxu0 %v6143_v35  ;;  %v3877_v35 = vld [vmem:[%s7119_s2 + $0x3b8] sm:$0xff] }
  0x98   : > { %5373 = vmatpush3.bf16.msra.mxu0 %v6245_v24  ;;  %4923 = vmatprep.mubr.f32.mxu0 %v6147_v38  ;;  %v337_v24 = vld [vmem:[%s5900_s6 + $0xbd] sm:$0xff]  ;;  %v338_v38 = vld [vmem:[%s5900_s6 + $0xc5] sm:$0xff]  ;;  %v5382_v41 = vpack.c.bf16 %v3877_v35, %v3876_v40 }
  0x99   : > { %5375 = vmatprep.subr.bf16.mxu0 %v5374_v21  ;;  %4521 = vmatmul.mubr.f32.gmra.mrb[20].mxu1 %v335_v32  ;;  %v909_v32 = vld [vmem:[%s5900_s6 + $0x7] sm:$0xff] }
  0x9a   : > { %4523 = vmatprep.mubr.f32.mxu1 %v336_v29  ;;  %v5792_v29 = vmov 0   ;;  %v3811_v35 = vld [vmem:[%s7119_s2 + $0x1a8] sm:$0xff] }
  0x9b   : > { %4924 = vmatmul.mubr.f32.gmra.mrb[2].mxu0 %v6159_v44  ;;  %v339_v44 = vld [vmem:[%s5900_s6 + $0xcd] sm:$0xff]  ;;  %5766 = vset.pattern.permute.xlu0 %v5792_v29 }
  0x9c   : > { %4926 = vmatprep.mubr.f32.mxu0 %v6163_v46  ;;  %5377 = vmatpush3.bf16.msra.mxu0 %v5374_v21  ;;  %v340_v46 = vld [vmem:[%s5900_s6 + $0xd5] sm:$0xff]  ;;  %v3887_v21 = vld [vmem:[%s7119_s2 + $0x408] sm:$0xff] }
  0x9d   : > { %5379 = vmatprep.subr.bf16.mxu0 %v5378_v36  ;;  %4524 = vmatmul.mubr.f32.gmra.mrb[22].mxu1 %v337_v24  ;;  %v6478_v25 = vpack.c.bf16 %v3887_v21, %v3886_v19  ;;  %v280_v24 = vld [vmem:[%s7117_s0 + $0x10] sm:$0xff]  ;;  %v3821_v19 = vld [vmem:[%s7119_s2 + $0x1f8] sm:$0xff] }
  0x9e   : > { %4526 = vmatprep.mubr.f32.mxu1 %v338_v38  ;;  %5767 = vset.pattern.permute.xlu1 %v5792_v29  ;;  %v279_v38 = vld [vmem:[%s7117_s0 + $0x8] sm:$0xff]  ;;  %v289_v21 = vld [vmem:[%s7117_s0 + $0x58] sm:$0xff] }
  0x9f   : > { %4927 = vmatmul.mubr.f32.gmra.mrb[4].mxu0 %v6175_v52  ;;  %v341_v52 = vld [vmem:[%s5900_s6 + $0xdd] sm:$0xff]  ;;  %3295 = vperm.xlu1 %5767, %v280_v24   ;;  %v295_v24 = vld [vmem:[%s7117_s0 + $0x88] sm:$0xff] }
  0xa0   : > { %4929 = vmatprep.mubr.f32.mxu0 %v6179_v54  ;;  %5381 = vmatpush3.bf16.msra.mxu0 %v5378_v36  ;;  %v342_v54 = vld [vmem:[%s5900_s6 + $0xe5] sm:$0xff]  ;;  %v6498_v36 = vld [vmem:[%s5900_s6 + $0x17] sm:$0xff] }
  0xa1   : > { %5383 = vmatprep.subr.bf16.mxu0 %v5382_v41  ;;  %4527 = vmatmul.mubr.f32.gmra.mrb[24].mxu1 %v339_v44  ;;  %v282_v44 = vld [vmem:[%s7117_s0 + $0x20] sm:$0xff]  ;;  %v6663_v29 = vld [vmem:[%s5900_s6 + $0x97] sm:$0xff] }
  0xa2   : > { %4529 = vmatprep.mubr.f32.mxu1 %v340_v46  ;;  %v6542_v46 = vld [vmem:[%s5900_s6 + $0x37] sm:$0xff] }
  0xa3   : > { %4930 = vmatmul.mubr.f32.gmra.mrb[6].mxu0 %v6191_v59  ;;  %v343_v59 = vld [vmem:[%s5900_s6 + $0xed] sm:$0xff]  ;;  %3300 = vperm.xlu1 %5767, %v281_v48  }
  0xa4   : > { %4932 = vmatprep.mubr.f32.mxu0 %v6195_v61  ;;  %5385 = vmatpush3.bf16.msra.mxu0 %v5382_v41  ;;  %v344_v61 = vld [vmem:[%s5900_s6 + $0xf5] sm:$0xff]  ;;  %v6520_v41 = vld [vmem:[%s5900_s6 + $0x27] sm:$0xff] }
  0xa5   : > { %5387 = vmatprep.subr.bf16.mxu0 %v5386_v53  ;;  %4530 = vmatmul.mubr.f32.gmra.mrb[26].mxu1 %v341_v52  ;;  %v284_v52 = vld [vmem:[%s7117_s0 + $0x30] sm:$0xff] }
  0xa6   : > { %4532 = vmatprep.mubr.f32.mxu1 %v342_v54  ;;  %v6564_v54 = vld [vmem:[%s5900_s6 + $0x47] sm:$0xff] }
  0xa7   : > { %4933 = vmatmul.mubr.f32.gmra.mrb[8].mxu0 %v6207_v2  ;;  %v345_v2 = vld [vmem:[%s5900_s6 + $0xfd] sm:$0xff]  ;;  %3310 = vperm.xlu1 %5767, %v283_v55  }
  0xa8   : > { %4935 = vmatprep.mubr.f32.mxu0 %v6211_v4  ;;  %5389 = vmatpush3.bf16.msra.mxu0 %v5386_v53  ;;  %v346_v4 = vld [vmem:[%s5900_s6 + $0x105] sm:$0xff] }
  0xa9   : > { %5391 = vmatprep.subr.bf16.mxu0 %v5390_v57  ;;  %4533 = vmatmul.mubr.f32.gmra.mrb[28].mxu1 %v343_v59  ;;  %v3814_v53 = vld [vmem:[%s7119_s2 + $0x1c0] sm:$0xff] }
  0xaa   : > { %4535 = vmatprep.mubr.f32.mxu1 %v344_v61  ;;  %v286_v59 = vld [vmem:[%s7117_s0 + $0x40] sm:$0xff]  ;;  %v6586_v61 = vld [vmem:[%s5900_s6 + $0x57] sm:$0xff] }
  0xab   : > { %4936 = vmatmul.mubr.f32.gmra.mrb[10].mxu0 %v6223_v10  ;;  %v347_v10 = vld [vmem:[%s5900_s6 + $0x10d] sm:$0xff]  ;;  %3320 = vperm.xlu1 %5767, %v285_v3   ;;  %v298_v55 = vld [vmem:[%s7117_s0 + $0xa0] sm:$0xff] }
  0xac   : > { %4938 = vmatprep.mubr.f32.mxu0 %v6227_v13  ;;  %5393 = vmatpush3.bf16.msra.mxu0 %v5390_v57  ;;  %v348_v13 = vld [vmem:[%s5900_s6 + $0x115] sm:$0xff] }
  0xad   : > { %5395 = vmatprep.subr.bf16.mxu0 %v5394_v8  ;;  %4536 = vmatmul.mubr.f32.gmra.mrb[30].mxu1 %v345_v2  ;;  %v3816_v57 = vld [vmem:[%s7119_s2 + $0x1d0] sm:$0xff] }
  0xae   : > { %4538 = vmatprep.mubr.f32.mxu1 %v346_v4  ;;  %v288_v2 = vld [vmem:[%s7117_s0 + $0x50] sm:$0xff]  ;;  %v6608_v4 = vld [vmem:[%s5900_s6 + $0x67] sm:$0xff] }
  0xaf   : > { %4939 = vmatmul.mubr.f32.gmra.mrb[12].mxu0 %v6239_v20  ;;  %v3808_v20 = vld [vmem:[%s7119_s2 + $0x190] sm:$0xff]  ;;  %3330 = vperm.xlu1 %5767, %v287_v11   ;;  %v6731_v11 = vld [vmem:[%s5900_s6 + $0xc7] sm:$0xff] }
  0xb0   : > { %4941 = vmatprep.mubr.f32.mxu0 %v6243_v22  ;;  %5397 = vmatpush3.bf16.msra.mxu0 %v5394_v8  ;;  %v3809_v22 = vld [vmem:[%s7119_s2 + $0x198] sm:$0xff]  ;;  %v3818_v8 = vld [vmem:[%s7119_s2 + $0x1e0] sm:$0xff]  ;;  %v3892_v3 = vld [vmem:[%s7119_s2 + $0x430] sm:$0xff] }
  0xb1   : > { %5399 = vmatprep.subr.bf16.mxu0 %v5398_v15  ;;  %4539 = vmatmul.mubr.f32.gmra.mrb[32].mxu1 %v347_v10  ;;  %v5246_v40 = vpack.c.bf16 %v3809_v22, %v3808_v20  ;;  %v290_v10 = vld [vmem:[%s7117_s0 + $0x60] sm:$0xff]  ;;  %v6653_v22 = vld [vmem:[%s5900_s6 + $0x8f] sm:$0xff] }
  0xb2   : > { %4541 = vmatprep.mubr.f32.mxu1 %v348_v13  ;;  %v6630_v13 = vld [vmem:[%s5900_s6 + $0x77] sm:$0xff]  ;;  %v6646_v20 = vld [vmem:[%s5900_s6 + $0x87] sm:$0xff] }
  0xb3   : > { %4942 = vmatmul.mubr.f32.gmra.mrb[14].mxu0 %v6251_v26  ;;  %v910_v26 = vld [vmem:[%s5900_s6 + $0xf] sm:$0xff]  ;;  %3340 = vperm.xlu1 %5767, %v289_v21  }
  0xb4   : > { %4944 = vmatprep.mubr.f32.mxu0 %v6255_v28  ;;  %5401 = vmatpush3.bf16.msra.mxu0 %v5398_v15  ;;  %v278_v28 = vld [vmem:[%s7117_s0] sm:$0xff]  ;;  %v3820_v15 = vld [vmem:[%s7119_s2 + $0x1f0] sm:$0xff] }
  0xb5   : > { %5403 = vmatprep.subr.bf16.mxu0 %v6478_v25  ;;  %4542 = vmatmul.mubr.f32.gmra.mrb[34].mxu1 %v349_v27  ;;  %v6636_v27 = vld [vmem:[%s5900_s6 + $0x7f] sm:$0xff]  ;;  %v6743_v21 = vld [vmem:[%s5900_s6 + $0xcf] sm:$0xff] }
  0xb6   : > { %4576 = vmatprep.mubr.f32.mxu1 %v909_v32  ;;  %3285 = vperm.xlu0 %5766, %v278_v28   ;;  %v292_v32 = vld [vmem:[%s7117_s0 + $0x70] sm:$0xff]  ;;  %v2280_v28 = vld [vmem:[%s5900_s6 + $0x141] sm:$0xff] }
  0xb7   : > { %4945 = vmatmul.mubr.f32.gmra.mrb[16].mxu0 %v6268_v34  ;;  %v3810_v34 = vld [vmem:[%s7119_s2 + $0x1a0] sm:$0xff] }
  0xb8   : > { %4947 = vmatprep.mubr.f32.mxu0 %v6272_v39  ;;  %v6509_v39 = vld [vmem:[%s5900_s6 + $0x1f] sm:$0xff] }
  0xb9   : > { %4577 = vmatmul.mubr.f32.vlgmr.msra.gmra.mrb[0].mxu1 %v910_v26  ;;  %v294_v26 = vld [vmem:[%s7117_s0 + $0x80] sm:$0xff] }
  0xba   : > { %5245 = vmatpush3.bf16.msra.mxu1 %v6387_v0  ;;  %4579 = vmatprep.mubr.f32.mxu1 %v6498_v36  ;;  %v3812_v0 = vld [vmem:[%s7119_s2 + $0x1b0] sm:$0xff] }
  0xbb   : > { %4948 = vmatmul.mubr.f32.gmra.mrb[18].mxu0 %v6285_v47  ;;  %5247 = vmatprep.subr.bf16.mxu1 %v5246_v40  ;;  %v5250_v47 = vpack.c.bf16 %v3811_v35, %v3810_v34  ;;  %v3889_v34 = vld [vmem:[%s7119_s2 + $0x418] sm:$0xff] }
  0xbc   : > { %4950 = vmatprep.mubr.f32.mxu0 %v6289_v50  ;;  %3290 = vperm.xlu0 %5766, %v279_v38   ;;  %v6532_v50 = vld [vmem:[%s5900_s6 + $0x2f] sm:$0xff]  ;;  %v6676_v35 = vld [vmem:[%s5900_s6 + $0x9f] sm:$0xff] }
  0xbd   : > { %4580 = vmatmul.mubr.f32.gmra.mrb[2].mxu1 %v6509_v39  ;;  %v296_v38 = vld [vmem:[%s7117_s0 + $0x90] sm:$0xff] }
  0xbe   : > { %4582 = vmatprep.mubr.f32.mxu1 %v6520_v41  ;;  %5249 = vmatpush3.bf16.msra.mxu1 %v5246_v40  ;;  %v3888_v40 = vld [vmem:[%s7119_s2 + $0x410] sm:$0xff] }
  0xbf   : > { %4951 = vmatmul.mubr.f32.gmra.mrb[20].mxu0 %v6301_v56  ;;  %5251 = vmatprep.subr.bf16.mxu1 %v5250_v47  ;;  %v5254_v56 = vpack.c.bf16 %v3813_v42, %v3812_v0  ;;  %v6686_v0 = vld [vmem:[%s5900_s6 + $0xa7] sm:$0xff]  ;;  %v2581_v42 = vld [vmem:[%s5900_s6 + $0x3a] sm:$0xff]  ;;  %v5406_v48 = vpack.c.bf16 %v3889_v34, %v3888_v40  ;;  %v304_v34 = vld [vmem:[%s7117_s0 + $0xd0] sm:$0xff] }
  0xc0   : > { %4953 = vmatprep.mubr.f32.mxu0 %v6305_v58  ;;  %3305 = vperm.xlu0 %5766, %v282_v44   ;;  %v6554_v58 = vld [vmem:[%s5900_s6 + $0x3f] sm:$0xff]  ;;  %v303_v40 = vld [vmem:[%s7117_s0 + $0xc8] sm:$0xff] }
  0xc1   : > { %4583 = vmatmul.mubr.f32.gmra.mrb[4].mxu1 %v6532_v50  ;;  %v3890_v44 = vld [vmem:[%s7119_s2 + $0x420] sm:$0xff] }
  0xc2   : > { %4585 = vmatprep.mubr.f32.mxu1 %v6542_v46  ;;  %5253 = vmatpush3.bf16.msra.mxu1 %v5250_v47  ;;  %v2580_v47 = vld [vmem:[%s5900_s6 + $0x32] sm:$0xff] }
  0xc3   : > { %4954 = vmatmul.mubr.f32.gmra.mrb[22].mxu0 %v6317_v1  ;;  %5255 = vmatprep.subr.bf16.mxu1 %v5254_v56  ;;  %v5258_v1 = vpack.c.bf16 %v3815_v18, %v3814_v53  ;;  %v6698_v53 = vld [vmem:[%s5900_s6 + $0xaf] sm:$0xff]  ;;  %v297_v18 = vld [vmem:[%s7117_s0 + $0x98] sm:$0xff] }
  0xc4   : > { %4956 = vmatprep.mubr.f32.mxu0 %v6321_v5  ;;  %3315 = vperm.xlu0 %5766, %v284_v52   ;;  %v6576_v5 = vld [vmem:[%s5900_s6 + $0x4f] sm:$0xff]  ;;  %v2582_v52 = vld [vmem:[%s5900_s6 + $0x42] sm:$0xff] }
  0xc5   : > { %4586 = vmatmul.mubr.f32.gmra.mrb[6].mxu1 %v6554_v58 }
  0xc6   : > { %4588 = vmatprep.mubr.f32.mxu1 %v6564_v54  ;;  %5257 = vmatpush3.bf16.msra.mxu1 %v5254_v56  ;;  %v3891_v56 = vld [vmem:[%s7119_s2 + $0x428] sm:$0xff] }
  0xc7   : > { %4957 = vmatmul.mubr.f32.gmra.mrb[24].mxu0 %v6333_v14  ;;  %5259 = vmatprep.subr.bf16.mxu1 %v5258_v1  ;;  %v5262_v14 = vpack.c.bf16 %v3817_v62, %v3816_v57  ;;  %v2583_v57 = vld [vmem:[%s5900_s6 + $0x4a] sm:$0xff]  ;;  %v5410_v62 = vpack.c.bf16 %v3891_v56, %v3890_v44  ;;  %v305_v56 = vld [vmem:[%s7117_s0 + $0xd8] sm:$0xff] }
  0xc8   : > { %4959 = vmatprep.mubr.f32.mxu0 %v6337_v16  ;;  %3325 = vperm.xlu0 %5766, %v286_v59   ;;  %v6598_v16 = vld [vmem:[%s5900_s6 + $0x5f] sm:$0xff]  ;;  %v3899_v44 = vld [vmem:[%s7119_s2 + $0x468] sm:$0xff] }
  0xc9   : > { %4589 = vmatmul.mubr.f32.gmra.mrb[8].mxu1 %v6576_v5  ;;  %v6721_v59 = vld [vmem:[%s5900_s6 + $0xbf] sm:$0xff] }
  0xca   : > { %4591 = vmatprep.mubr.f32.mxu1 %v6586_v61  ;;  %5261 = vmatpush3.bf16.msra.mxu1 %v5258_v1  ;;  %v6709_v1 = vld [vmem:[%s5900_s6 + $0xb7] sm:$0xff] }
  0xcb   : > { %4960 = vmatmul.mubr.f32.gmra.mrb[26].mxu0 %v6349_v30  ;;  %5263 = vmatprep.subr.bf16.mxu1 %v5262_v14  ;;  %v5266_v30 = vpack.c.bf16 %v3819_v9, %v3818_v8  ;;  %v300_v8 = vld [vmem:[%s7117_s0 + $0xb0] sm:$0xff] }
  0xcc   : > { %4962 = vmatprep.mubr.f32.mxu0 %v6353_v33  ;;  %3335 = vperm.xlu0 %5766, %v288_v2   ;;  %v6620_v33 = vld [vmem:[%s5900_s6 + $0x6f] sm:$0xff]  ;;  %v2585_v2 = vld [vmem:[%s5900_s6 + $0x5a] sm:$0xff] }
  0xcd   : > { %4592 = vmatmul.mubr.f32.gmra.mrb[10].mxu1 %v6598_v16  ;;  %v2584_v9 = vld [vmem:[%s5900_s6 + $0x52] sm:$0xff] }
  0xce   : > { %4594 = vmatprep.mubr.f32.mxu1 %v6608_v4  ;;  %5265 = vmatpush3.bf16.msra.mxu1 %v5262_v14  ;;  %v299_v14 = vld [vmem:[%s7117_s0 + $0xa8] sm:$0xff] }
  0xcf   : > { %4963 = vmatmul.mubr.f32.gmra.mrb[28].mxu0 %v6365_v45  ;;  %5267 = vmatprep.subr.bf16.mxu1 %v5266_v30  ;;  %v5270_v45 = vpack.c.bf16 %v3821_v19, %v3820_v15  ;;  %v3894_v15 = vld [vmem:[%s7119_s2 + $0x440] sm:$0xff]  ;;  %v3895_v19 = vld [vmem:[%s7119_s2 + $0x448] sm:$0xff] }
  0xd0   : > { %4965 = vmatprep.mubr.f32.mxu0 %v6369_v51  ;;  %3345 = vperm.xlu0 %5766, %v290_v10   ;;  %v291_v51 = vld [vmem:[%s7117_s0 + $0x68] sm:$0xff]  ;;  %v301_v10 = vld [vmem:[%s7117_s0 + $0xb8] sm:$0xff] }
  0xd1   : > { %4595 = vmatmul.mubr.f32.gmra.mrb[12].mxu1 %v6620_v33  ;;  %3350 = vperm.xlu1 %5767, %v291_v51   ;;  %v2586_v51 = vld [vmem:[%s5900_s6 + $0x62] sm:$0xff] }
  0xd2   : > { %4597 = vmatprep.mubr.f32.mxu1 %v6630_v13  ;;  %5269 = vmatpush3.bf16.msra.mxu1 %v5266_v30 }
  0xd3   : > { %4966 = vmatmul.mubr.f32.gmra.mrb[30].mxu0 %v6381_v60  ;;  %v2279_v60 = vld [vmem:[%s5900_s6 + $0x139] sm:$0xff]  ;;  %5271 = vmatprep.subr.bf16.mxu1 %v5270_v45 }
  0xd4   : > { %4968 = vmatprep.mubr.f32.mxu0 %v6385_v63  ;;  %3355 = vperm.xlu0 %5766, %v292_v32   ;;  %v293_v63 = vld [vmem:[%s7117_s0 + $0x78] sm:$0xff] }
  0xd5   : > { %4598 = vmatmul.mubr.f32.gmra.mrb[14].mxu1 %v6636_v27  ;;  %3360 = vperm.xlu1 %5767, %v293_v63   ;;  %v6753_v32 = vld [vmem:[%s5900_s6 + $0xd7] sm:$0xff]  ;;  %v5418_v63 = vpack.c.bf16 %v3895_v19, %v3894_v15  ;;  %v6819_v15 = vld [vmem:[%s5900_s6 + $0x107] sm:$0xff] }
  0xd6   : > { %4600 = vmatprep.mubr.f32.mxu1 %v6646_v20  ;;  %5273 = vmatpush3.bf16.msra.mxu1 %v5270_v45  ;;  %v302_v45 = vld [vmem:[%s7117_s0 + $0xc0] sm:$0xff] }
  0xd7   : > { %4969 = vmatmul.mubr.f32.gmra.mrb[32].mxu0 %v6393_v6  ;;  %v2579_v6 = vld [vmem:[%s5900_s6 + $0x2a] sm:$0xff]  ;;  %5434 = vmatprep.subr.bf16.mxu1 %v5855_v7  ;;  %v2593_v19 = vld [vmem:[%s5900_s6 + $0x9a] sm:$0xff] }
  0xd8   : > { %4971 = vmatprep.mubr.f32.mxu0 %v2279_v60  ;;  %3365 = vperm.xlu0 %5766, %v294_v26   ;;  %v2587_v60 = vld [vmem:[%s5900_s6 + $0x6a] sm:$0xff] }
  0xd9   : > { %4601 = vmatmul.mubr.f32.gmra.mrb[16].mxu1 %v6653_v22  ;;  %3370 = vperm.xlu1 %5767, %v295_v24   ;;  %v3896_v26 = vld [vmem:[%s7119_s2 + $0x450] sm:$0xff] }
  0xda   : > { %4603 = vmatprep.mubr.f32.mxu1 %v6663_v29  ;;  %v2588_v24 = vld [vmem:[%s5900_s6 + $0x72] sm:$0xff] }
  0xdb   : > { %4972 = vmatmul.mubr.f32.gmra.mrb[34].mxu0 %v2280_v28  ;;  %v3897_v28 = vld [vmem:[%s7119_s2 + $0x458] sm:$0xff] }
  0xdc   : > { %5006 = vmatprep.mubr.f32.mxu0 %v2579_v6  ;;  %3375 = vperm.xlu0 %5766, %v296_v38   ;;  %v6765_v6 = vld [vmem:[%s5900_s6 + $0xdf] sm:$0xff]  ;;  %v6775_v38 = vld [vmem:[%s5900_s6 + $0xe7] sm:$0xff] }
  0xdd   : > { %4604 = vmatmul.mubr.f32.gmra.mrb[18].mxu1 %v6676_v35  ;;  %3380 = vperm.xlu1 %5767, %v297_v18   ;;  %v6790_v18 = vld [vmem:[%s5900_s6 + $0xef] sm:$0xff] }
  0xde   : > { %4606 = vmatprep.mubr.f32.mxu1 %v6686_v0 }
  0xdf   : > { %5007 = vmatmul.mubr.f32.vlgmr.msra.gmra.mrb[0].mxu0 %v2580_v47  ;;  %v2589_v47 = vld [vmem:[%s5900_s6 + $0x7a] sm:$0xff] }
  0xe0   : > { %5405 = vmatpush3.bf16.msra.mxu0 %v6478_v25  ;;  %5009 = vmatprep.mubr.f32.mxu0 %v2581_v42  ;;  %v3893_v25 = vld [vmem:[%s7119_s2 + $0x438] sm:$0xff]  ;;  %v5422_v42 = vpack.c.bf16 %v3897_v28, %v3896_v26  ;;  %v2595_v28 = vld [vmem:[%s5900_s6 + $0xaa] sm:$0xff] }
  0xe1   : > { %5407 = vmatprep.subr.bf16.mxu0 %v5406_v48  ;;  %4607 = vmatmul.mubr.f32.gmra.mrb[20].mxu1 %v6698_v53  ;;  %v5414_v30 = vpack.c.bf16 %v3893_v25, %v3892_v3  ;;  %v3900_v25 = vld [vmem:[%s7119_s2 + $0x470] sm:$0xff] }
  0xe2   : > { %3385 = vperm.xlu0 %5766, %v298_v55   ;;  %4609 = vmatprep.mubr.f32.mxu1 %v6709_v1  ;;  %v306_v55 = vld [vmem:[%s7117_s0 + $0xe0] sm:$0xff]  ;;  %v6835_v26 = vld [vmem:[%s5900_s6 + $0x117] sm:$0xff] }
  0xe3   : > { %5010 = vmatmul.mubr.f32.gmra.mrb[2].mxu0 %v2582_v52  ;;  %3390 = vperm.xlu1 %5767, %v299_v14   ;;  %v2590_v52 = vld [vmem:[%s5900_s6 + $0x82] sm:$0xff]  ;;  %v3901_v14 = vld [vmem:[%s7119_s2 + $0x478] sm:$0xff] }
  0xe4   : > { %5012 = vmatprep.mubr.f32.mxu0 %v2583_v57  ;;  %5409 = vmatpush3.bf16.msra.mxu0 %v5406_v48  ;;  %v3898_v48 = vld [vmem:[%s7119_s2 + $0x460] sm:$0xff]  ;;  %v6797_v57 = vld [vmem:[%s5900_s6 + $0xf7] sm:$0xff] }
  0xe5   : > { %5411 = vmatprep.subr.bf16.mxu0 %v5410_v62  ;;  %4610 = vmatmul.mubr.f32.gmra.mrb[22].mxu1 %v6721_v59  ;;  %v5426_v3 = vpack.c.bf16 %v3899_v44, %v3898_v48  ;;  %v313_v48 = vld [vmem:[%s7117_s0 + $0x118] sm:$0xff]  ;;  %v2598_v44 = vld [vmem:[%s5900_s6 + $0xc2] sm:$0xff] }
  0xe6   : > { %3395 = vperm.xlu0 %5766, %v300_v8   ;;  %4612 = vmatprep.mubr.f32.mxu1 %v6731_v11  ;;  %v307_v8 = vld [vmem:[%s7117_s0 + $0xe8] sm:$0xff] }
  0xe7   : > { %5013 = vmatmul.mubr.f32.gmra.mrb[4].mxu0 %v2584_v9  ;;  %3400 = vperm.xlu1 %5767, %v301_v10   ;;  %v6812_v9 = vld [vmem:[%s5900_s6 + $0xff] sm:$0xff]  ;;  %v5430_v10 = vpack.c.bf16 %v3901_v14, %v3900_v25  ;;  %v2934_v14 = vld [vmem:[%s5900_s6 + $0xd3] sm:$0xff] }
  0xe8   : > { %5015 = vmatprep.mubr.f32.mxu0 %v2585_v2  ;;  %5413 = vmatpush3.bf16.msra.mxu0 %v5410_v62  ;;  %v2591_v62 = vld [vmem:[%s5900_s6 + $0x8a] sm:$0xff]  ;;  %v1598_v25 = vld [vmem:[%s5900_s6 + $0xc0] sm:$0xff] }
  0xe9   : > { %5415 = vmatprep.subr.bf16.mxu0 %v5414_v30  ;;  %4613 = vmatmul.mubr.f32.gmra.mrb[24].mxu1 %v6743_v21  ;;  %v308_v2 = vld [vmem:[%s7117_s0 + $0xf0] sm:$0xff] }
  0xea   : > { %3405 = vperm.xlu0 %5766, %v302_v45   ;;  %4615 = vmatprep.mubr.f32.mxu1 %v6753_v32  ;;  %v309_v45 = vld [vmem:[%s7117_s0 + $0xf8] sm:$0xff] }
  0xeb   : > { %5016 = vmatmul.mubr.f32.gmra.mrb[6].mxu0 %v2586_v51  ;;  %3410 = vperm.xlu1 %5767, %v303_v40   ;;  %v6828_v51 = vld [vmem:[%s5900_s6 + $0x10f] sm:$0xff] }
  0xec   : > { %5018 = vmatprep.mubr.f32.mxu0 %v2587_v60  ;;  %5417 = vmatpush3.bf16.msra.mxu0 %v5414_v30  ;;  %v2592_v30 = vld [vmem:[%s5900_s6 + $0x92] sm:$0xff]  ;;  %v310_v60 = vld [vmem:[%s7117_s0 + $0x100] sm:$0xff]  ;;  %v311_v40 = vld [vmem:[%s7117_s0 + $0x108] sm:$0xff] }
  0xed   : > { %5419 = vmatprep.subr.bf16.mxu0 %v5418_v63  ;;  %4616 = vmatmul.mubr.f32.gmra.mrb[26].mxu1 %v6765_v6 }
  0xee   : > { %3415 = vperm.xlu0 %5766, %v304_v34   ;;  %4618 = vmatprep.mubr.f32.mxu1 %v6775_v38  ;;  %v6844_v34 = vld [vmem:[%s5900_s6 + $0x11f] sm:$0xff] }
  0xef   : > { %5019 = vmatmul.mubr.f32.gmra.mrb[8].mxu0 %v2588_v24  ;;  %3420 = vperm.xlu1 %5767, %v305_v56   ;;  %v312_v24 = vld [vmem:[%s7117_s0 + $0x110] sm:$0xff] }
  0xf0   : > { %5021 = vmatprep.mubr.f32.mxu0 %v2589_v47  ;;  %5421 = vmatpush3.bf16.msra.mxu0 %v5418_v63  ;;  %v2594_v63 = vld [vmem:[%s5900_s6 + $0xa2] sm:$0xff]  ;;  %v2596_v47 = vld [vmem:[%s5900_s6 + $0xb2] sm:$0xff]  ;;  %v2599_v56 = vld [vmem:[%s5900_s6 + $0xca] sm:$0xff] }
  0xf1   : > { %5423 = vmatprep.subr.bf16.mxu0 %v5422_v42  ;;  %4619 = vmatmul.mubr.f32.gmra.mrb[28].mxu1 %v6790_v18 }
  0xf2   : > { %3425 = vperm.xlu0 %5766, %v306_v55   ;;  %4621 = vmatprep.mubr.f32.mxu1 %v6797_v57  ;;  %v2600_v55 = vld [vmem:[%s5900_s6 + $0xd2] sm:$0xff] }
  0xf3   : > { %5022 = vmatmul.mubr.f32.gmra.mrb[10].mxu0 %v2590_v52  ;;  %3430 = vperm.xlu1 %5767, %v307_v8   ;;  %v2601_v52 = vld [vmem:[%s5900_s6 + $0xda] sm:$0xff]  ;;  %v1599_v8 = vld [vmem:[%s5900_s6 + $0xc8] sm:$0xff] }
  0xf4   : > { %5024 = vmatprep.mubr.f32.mxu0 %v2591_v62  ;;  %5425 = vmatpush3.bf16.msra.mxu0 %v5422_v42  ;;  %v2597_v42 = vld [vmem:[%s5900_s6 + $0xba] sm:$0xff] }
  0xf5   : > { %5427 = vmatprep.subr.bf16.mxu0 %v5426_v3  ;;  %4622 = vmatmul.mubr.f32.gmra.mrb[30].mxu1 %v6812_v9  ;;  %v1597_v62 = vld [vmem:[%s5900_s6 + $0xb8] sm:$0xff] }
  0xf6   : > { %3435 = vperm.xlu0 %5766, %v308_v2   ;;  %4624 = vmatprep.mubr.f32.mxu1 %v6819_v15  ;;  %v1600_v2 = vld [vmem:[%s5900_s6 + $0xd0] sm:$0xff] }
  0xf7   : > { %5025 = vmatmul.mubr.f32.gmra.mrb[12].mxu0 %v2592_v30  ;;  %3440 = vperm.xlu1 %5767, %v309_v45   ;;  %v2936_v30 = vld [vmem:[%s5900_s6 + $0xe3] sm:$0xff]  ;;  %v2938_v45 = vld [vmem:[%s5900_s6 + $0xf3] sm:$0xff] }
  0xf8   : > { %5027 = vmatprep.mubr.f32.mxu0 %v2593_v19  ;;  %5429 = vmatpush3.bf16.msra.mxu0 %v5426_v3  ;;  %v2933_v3 = vld [vmem:[%s5900_s6 + $0xcb] sm:$0xff] }
  0xf9   : > { %5431 = vmatprep.subr.bf16.mxu0 %v5430_v10  ;;  %4625 = vmatmul.mubr.f32.gmra.mrb[32].mxu1 %v6828_v51  ;;  %v2937_v19 = vld [vmem:[%s5900_s6 + $0xeb] sm:$0xff] }
  0xfa   : > { %3445 = vperm.xlu0 %5766, %v310_v60   ;;  %4627 = vmatprep.mubr.f32.mxu1 %v6835_v26  ;;  %v2939_v60 = vld [vmem:[%s5900_s6 + $0xfb] sm:$0xff] }
  0xfb   : > { %5028 = vmatmul.mubr.f32.gmra.mrb[14].mxu0 %v2594_v63  ;;  %3450 = vperm.xlu1 %5767, %v311_v40   ;;  %v1604_v63 = vld [vmem:[%s5900_s6 + $0xf0] sm:$0xff] }
  0xfc   : > { %5030 = vmatprep.mubr.f32.mxu0 %v2595_v28  ;;  %5433 = vmatpush3.bf16.msra.mxu0 %v5430_v10  ;;  %v1602_v10 = vld [vmem:[%s5900_s6 + $0xe0] sm:$0xff]  ;;  %v1605_v28 = vld [vmem:[%s5900_s6 + $0xf8] sm:$0xff]  ;;  %v2941_v40 = vld [vmem:[%s5900_s6 + $0x10b] sm:$0xff] }
  0xfd   : > { %4628 = vmatmul.mubr.f32.gmra.mrb[34].mxu1 %v6844_v34 }
  0xfe   : > { %3455 = vperm.xlu0 %5766, %v312_v24   ;;  %4662 = vmatprep.mubr.f32.mxu1 %v6498_v36  ;;  %v2602_v36 = vld [vmem:[%s5900_s6 + $0xe2] sm:$0xff]  ;;  %v2942_v24 = vld [vmem:[%s5900_s6 + $0x113] sm:$0xff] }
  0xff   : > { %5031 = vmatmul.mubr.f32.gmra.mrb[16].mxu0 %v2596_v47  ;;  %3460 = vperm.xlu1 %5767, %v313_v48   ;;  %v1607_v47 = vld [vmem:[%s5900_s6 + $0x108] sm:$0xff]  ;;  %v1608_v48 = vld [vmem:[%s5900_s6 + $0x110] sm:$0xff] }
 0x100   : > { %5033 = vmatprep.mubr.f32.mxu0 %v2597_v42  ;;  %v2943_v42 = vld [vmem:[%s5900_s6 + $0x11b] sm:$0xff] }
 0x101   : > { %4663 = vmatmul.mubr.f32.vlgmr.msra.gmra.mrb[0].mxu1 %v6509_v39  ;;  %v2604_v39 = vld [vmem:[%s5900_s6 + $0xf2] sm:$0xff] }
 0x102   : > { %5442 = vmatpush3.bf16.msra.mxu1 %v5855_v7  ;;  %4665 = vmatprep.mubr.f32.mxu1 %v6520_v41  ;;  %v2603_v7 = vld [vmem:[%s5900_s6 + $0xea] sm:$0xff]  ;;  %v2605_v41 = vld [vmem:[%s5900_s6 + $0xfa] sm:$0xff] }
 0x103   : > { %5034 = vmatmul.mubr.f32.gmra.mrb[18].mxu0 %v2598_v44  ;;  %5435 = vmatprep.subr.bf16.mxu1 %v5868_v12  ;;  %v2944_v44 = vld [vmem:[%s5900_s6 + $0x123] sm:$0xff] }
 0x104   : > { %5036 = vmatprep.mubr.f32.mxu0 %v2599_v56  ;;  %v1609_v56 = vld [vmem:[%s5900_s6 + $0x118] sm:$0xff] }
 0x105   : > { %4666 = vmatmul.mubr.f32.gmra.mrb[2].mxu1 %v6532_v50  ;;  %v2607_v50 = vld [vmem:[%s5900_s6 + $0x10a] sm:$0xff] }
 0x106   : > { %4668 = vmatprep.mubr.f32.mxu1 %v6542_v46  ;;  %5443 = vmatpush3.bf16.msra.mxu1 %v5868_v12  ;;  %v2606_v12 = vld [vmem:[%s5900_s6 + $0x102] sm:$0xff]  ;;  %v2609_v46 = vld [vmem:[%s5900_s6 + $0x11a] sm:$0xff] }
 0x107   : > { %5037 = vmatmul.mubr.f32.gmra.mrb[20].mxu0 %v2600_v55  ;;  %5436 = vmatprep.subr.bf16.mxu1 %v5883_v17  ;;  %v2945_v55 = vld [vmem:[%s5900_s6 + $0x12b] sm:$0xff] }
 0x108   : > { %5039 = vmatprep.mubr.f32.mxu0 %v2601_v52  ;;  %v1610_v52 = vld [vmem:[%s5900_s6 + $0x120] sm:$0xff] }
 0x109   : > { %4669 = vmatmul.mubr.f32.gmra.mrb[4].mxu1 %v6554_v58  ;;  %v2611_v58 = vld [vmem:[%s5900_s6 + $0x12a] sm:$0xff] }
 0x10a   : > { %4671 = vmatprep.mubr.f32.mxu1 %v6564_v54  ;;  %5444 = vmatpush3.bf16.msra.mxu1 %v5883_v17  ;;  %v2608_v17 = vld [vmem:[%s5900_s6 + $0x112] sm:$0xff]  ;;  %v2613_v54 = vld [vmem:[%s5900_s6 + $0x13a] sm:$0xff] }
 0x10b   : > { %5040 = vmatmul.mubr.f32.gmra.mrb[22].mxu0 %v2602_v36  ;;  %5437 = vmatprep.subr.bf16.mxu1 %v5904_v23  ;;  %v2946_v36 = vld [vmem:[%s5900_s6 + $0x133] sm:$0xff] }
 0x10c   : > { %5042 = vmatprep.mubr.f32.mxu0 %v2603_v7  ;;  %v1611_v7 = vld [vmem:[%s5900_s6 + $0x128] sm:$0xff] }
 0x10d   : > { %4672 = vmatmul.mubr.f32.gmra.mrb[6].mxu1 %v6576_v5  ;;  %v2913_v5 = vld [vmem:[%s5900_s6 + $0x2b] sm:$0xff] }
 0x10e   : > { %4674 = vmatprep.mubr.f32.mxu1 %v6586_v61  ;;  %5445 = vmatpush3.bf16.msra.mxu1 %v5904_v23  ;;  %v2610_v23 = vld [vmem:[%s5900_s6 + $0x122] sm:$0xff] }
 0x10f   : > { %5043 = vmatmul.mubr.f32.gmra.mrb[24].mxu0 %v2604_v39  ;;  %5438 = vmatprep.subr.bf16.mxu1 %v5922_v31  ;;  %v2915_v61 = vld [vmem:[%s5900_s6 + $0x3b] sm:$0xff] }
 0x110   : > { %5045 = vmatprep.mubr.f32.mxu0 %v2605_v41  ;;  %v2947_v39 = vld [vmem:[%s5900_s6 + $0x13b] sm:$0xff]  ;;  %v1612_v41 = vld [vmem:[%s5900_s6 + $0x130] sm:$0xff] }
 0x111   : > { %4675 = vmatmul.mubr.f32.gmra.mrb[8].mxu1 %v6598_v16  ;;  %v2917_v16 = vld [vmem:[%s5900_s6 + $0x4b] sm:$0xff] }
 0x112   : > { %4677 = vmatprep.mubr.f32.mxu1 %v6608_v4  ;;  %5446 = vmatpush3.bf16.msra.mxu1 %v5922_v31  ;;  %v2612_v31 = vld [vmem:[%s5900_s6 + $0x132] sm:$0xff] }
 0x113   : > { %5046 = vmatmul.mubr.f32.gmra.mrb[26].mxu0 %v2606_v12  ;;  %5439 = vmatprep.subr.bf16.mxu1 %v5938_v37  ;;  %v2918_v4 = vld [vmem:[%s5900_s6 + $0x53] sm:$0xff]  ;;  %v2948_v12 = vld [vmem:[%s5900_s6 + $0x143] sm:$0xff] }
 0x114   : > { %5048 = vmatprep.mubr.f32.mxu0 %v2607_v50  ;;  %v5793_v50 = vmov 0.0  }
 0x115   : > { %4678 = vmatmul.mubr.f32.gmra.mrb[10].mxu1 %v6620_v33  ;;  %v2919_v33 = vld [vmem:[%s5900_s6 + $0x5b] sm:$0xff]  ;;  %277 = vst [vmem:[%s6981_s27] sm:$0xff] %v5793_v50 }
 0x116   : > { %4680 = vmatprep.mubr.f32.mxu1 %v6630_v13  ;;  %5447 = vmatpush3.bf16.msra.mxu1 %v5938_v37  ;;  %v2614_v37 = vld [vmem:[%s5900_s6 + $0x142] sm:$0xff] }
 0x117   : > { %5049 = vmatmul.mubr.f32.gmra.mrb[28].mxu0 %v2608_v17  ;;  %5440 = vmatprep.subr.bf16.mxu1 %v5954_v43  ;;  %v2920_v13 = vld [vmem:[%s5900_s6 + $0x63] sm:$0xff] }
 0x118   : > { %5051 = vmatprep.mubr.f32.mxu0 %v2609_v46 }
 0x119   : > { %4681 = vmatmul.mubr.f32.gmra.mrb[12].mxu1 %v6636_v27  ;;  %v2921_v27 = vld [vmem:[%s5900_s6 + $0x6b] sm:$0xff] }
 0x11a   : > { %4683 = vmatprep.mubr.f32.mxu1 %v6646_v20  ;;  %5448 = vmatpush3.bf16.msra.mxu1 %v5954_v43  ;;  %v2914_v43 = vld [vmem:[%s5900_s6 + $0x33] sm:$0xff] }
 0x11b   : > { %5052 = vmatmul.mubr.f32.gmra.mrb[30].mxu0 %v2610_v23  ;;  %5441 = vmatprep.subr.bf16.mxu1 %v5970_v49  ;;  %v2922_v20 = vld [vmem:[%s5900_s6 + $0x73] sm:$0xff] }
 0x11c   : > { %5054 = vmatprep.mubr.f32.mxu0 %v2611_v58 }
 0x11d   : > { %4684 = vmatmul.mubr.f32.gmra.mrb[14].mxu1 %v6653_v22  ;;  %v2923_v22 = vld [vmem:[%s5900_s6 + $0x7b] sm:$0xff] }
 0x11e   : > { %4686 = vmatprep.mubr.f32.mxu1 %v6663_v29  ;;  %5449 = vmatpush3.bf16.msra.mxu1 %v5970_v49  ;;  %v2916_v49 = vld [vmem:[%s5900_s6 + $0x43] sm:$0xff] }
 0x11f   : > { %5055 = vmatmul.mubr.f32.gmra.mrb[32].mxu0 %v2612_v31  ;;  %v2924_v29 = vld [vmem:[%s5900_s6 + $0x83] sm:$0xff] }
 0x120   : > { %5057 = vmatprep.mubr.f32.mxu0 %v2613_v54  ;;  %v3296_v54 = vpop.permute.xlu1 %3295 }
 0x121   : > { %4687 = vmatmul.mubr.f32.gmra.mrb[16].mxu1 %v6676_v35  ;;  %v2925_v35 = vld [vmem:[%s5900_s6 + $0x8b] sm:$0xff] }
 0x122   : > { %4689 = vmatprep.mubr.f32.mxu1 %v6686_v0  ;;  %v2926_v0 = vld [vmem:[%s5900_s6 + $0x93] sm:$0xff] }
 0x123   : > { %5058 = vmatmul.mubr.f32.gmra.mrb[34].mxu0 %v2614_v37 }
 0x124   : > { %5092 = vmatprep.mubr.f32.mxu0 %v2913_v5 }
 0x125   : > { %4690 = vmatmul.mubr.f32.gmra.mrb[18].mxu1 %v6698_v53  ;;  %v2927_v53 = vld [vmem:[%s5900_s6 + $0x9b] sm:$0xff] }
 0x126   : > { %4692 = vmatprep.mubr.f32.mxu1 %v6709_v1  ;;  %v2928_v1 = vld [vmem:[%s5900_s6 + $0xa3] sm:$0xff] }
 0x127   : > { %5093 = vmatmul.mubr.f32.vlgmr.msra.gmra.mrb[0].mxu0 %v2914_v43 }
 0x128   : > { %5095 = vmatprep.mubr.f32.mxu0 %v2915_v61  ;;  %v3301_v61 = vpop.permute.xlu1 %3300 }
 0x129   : > { %4693 = vmatmul.mubr.f32.gmra.mrb[20].mxu1 %v6721_v59  ;;  %v1277_v59 = vld [vmem:[%s5900_s6 + $0x127] sm:$0xff] }
 0x12a   : > { %4695 = vmatprep.mubr.f32.mxu1 %v6731_v11  ;;  %v2929_v11 = vld [vmem:[%s5900_s6 + $0xab] sm:$0xff] }
 0x12b   : > { %5096 = vmatmul.mubr.f32.gmra.mrb[2].mxu0 %v2916_v49 }
 0x12c   : > { %5098 = vmatprep.mubr.f32.mxu0 %v2917_v16 }
 0x12d   : > { %4696 = vmatmul.mubr.f32.gmra.mrb[22].mxu1 %v6743_v21  ;;  %v1278_v21 = vld [vmem:[%s5900_s6 + $0x12f] sm:$0xff] }
 0x12e   : > { %4698 = vmatprep.mubr.f32.mxu1 %v6753_v32  ;;  %v2930_v32 = vld [vmem:[%s5900_s6 + $0xb3] sm:$0xff] }
 0x12f   : > { %5099 = vmatmul.mubr.f32.gmra.mrb[4].mxu0 %v2918_v4 }
 0x130   : > { %5101 = vmatprep.mubr.f32.mxu0 %v2919_v33 }
 0x131   : > { %4699 = vmatmul.mubr.f32.gmra.mrb[24].mxu1 %v6765_v6  ;;  %v1595_v6 = vld [vmem:[%s5900_s6 + $0xa8] sm:$0xff] }
 0x132   : > { %4701 = vmatprep.mubr.f32.mxu1 %v6775_v38  ;;  %v2931_v38 = vld [vmem:[%s5900_s6 + $0xbb] sm:$0xff] }
 0x133   : > { %5102 = vmatmul.mubr.f32.gmra.mrb[6].mxu0 %v2920_v13 }
 0x134   : > { %5104 = vmatprep.mubr.f32.mxu0 %v2921_v27  ;;  %v3311_v27 = vpop.permute.xlu1 %3310 }
 0x135   : > { %4702 = vmatmul.mubr.f32.gmra.mrb[26].mxu1 %v6790_v18  ;;  %v1596_v18 = vld [vmem:[%s5900_s6 + $0xb0] sm:$0xff]  ;;  %v3286_v23 = vpop.permute.xlu0 %3285 }
 0x136   : > { %4704 = vmatprep.mubr.f32.mxu1 %v6797_v57  ;;  %v2932_v57 = vld [vmem:[%s5900_s6 + $0xc3] sm:$0xff] }
 0x137   : > { %5105 = vmatmul.mubr.f32.gmra.mrb[8].mxu0 %v2922_v20 }
 0x138   : > { %5107 = vmatprep.mubr.f32.mxu0 %v2923_v22 }
 0x139   : > { %4705 = vmatmul.mubr.f32.gmra.mrb[28].mxu1 %v6812_v9  ;;  %v2935_v9 = vld [vmem:[%s5900_s6 + $0xdb] sm:$0xff] }
 0x13a   : > { %4707 = vmatprep.mubr.f32.mxu1 %v6819_v15  ;;  %v1601_v15 = vld [vmem:[%s5900_s6 + $0xd8] sm:$0xff] }
 0x13b   : > { %5108 = vmatmul.mubr.f32.gmra.mrb[10].mxu0 %v2924_v29  ;;  %v3291_v43 = vpop.permute.xlu0 %3290 }
 0x13c   : > { %5110 = vmatprep.mubr.f32.mxu0 %v2925_v35  ;;  %v3321_v35 = vpop.permute.xlu1 %3320 }
 0x13d   : > { %4708 = vmatmul.mubr.f32.gmra.mrb[30].mxu1 %v6828_v51  ;;  %v1603_v51 = vld [vmem:[%s5900_s6 + $0xe8] sm:$0xff] }
 0x13e   : > { %4710 = vmatprep.mubr.f32.mxu1 %v6835_v26  ;;  %v2940_v26 = vld [vmem:[%s5900_s6 + $0x103] sm:$0xff] }
 0x13f   : > { %5111 = vmatmul.mubr.f32.gmra.mrb[12].mxu0 %v2926_v0  ;;  %v3306_v4 = vpop.permute.xlu0 %3305 }
 0x140   : > { %5113 = vmatprep.mubr.f32.mxu0 %v2927_v53 }
 0x141   : > { %4711 = vmatmul.mubr.f32.gmra.mrb[32].mxu1 %v6844_v34  ;;  %v1606_v34 = vld [vmem:[%s5900_s6 + $0x100] sm:$0xff]  ;;  %s5739_s6 = smul.u32 288, %s7127_s15 }
 0x142   : > { %4713 = vmatprep.mubr.f32.mxu1 %v1277_v59 }
 0x143   : > { %5114 = vmatmul.mubr.f32.gmra.mrb[14].mxu0 %v2928_v1  ;;  %v6994_v29 = vpop.permute.xlu0 %3315  ;;  %s7020_s30 = scalar_lea.vmem %s7120_s3, %s5739_s6 }
 0x144   : > { %5116 = vmatprep.mubr.f32.mxu0 %v2929_v11 }
 0x145   : > { %4714 = vmatmul.mubr.f32.gmra.mrb[34].mxu1 %v1278_v21  ;;  %v7006_v21 = vpop.permute.xlu1 %3330 }
 0x146   : > { %4775 = vmatprep.mubr.f32.mxu1 %v1595_v6 }
 0x147   : > { %5117 = vmatmul.mubr.f32.gmra.mrb[16].mxu0 %v2930_v32  ;;  %v7000_v1 = vpop.permute.xlu0 %3325 }
 0x148   : > { %5119 = vmatprep.mubr.f32.mxu0 %v2931_v38 }
 0x149   : > { %4776 = vmatmul.mubr.f32.vlgmr.msra.gmra.mrb[18].mxu1 %v1596_v18  ;;  %v7015_v18 = vpop.permute.xlu1 %3340 }
 0x14a   : > { %4778 = vmatprep.mubr.f32.mxu1 %v1597_v62 }
 0x14b   : > { %5120 = vmatmul.mubr.f32.gmra.mrb[18].mxu0 %v2932_v57  ;;  %v7013_v38 = vpop.permute.xlu0 %3335 }
 0x14c   : > { %5122 = vmatprep.mubr.f32.mxu0 %v2933_v3 }
 0x14d   : > { %4779 = vmatmul.mubr.f32.gmra.mrb[20].mxu1 %v1598_v25 }
 0x14e   : > { %4781 = vmatprep.mubr.f32.mxu1 %v1599_v8 }
 0x14f   : > { %5123 = vmatmul.mubr.f32.gmra.mrb[20].mxu0 %v2934_v14  ;;  %v7022_v14 = vpop.permute.xlu0 %3345 }
 0x150   : > { %5125 = vmatprep.mubr.f32.mxu0 %v2935_v9 }
 0x151   : > { %4782 = vmatmul.mubr.f32.gmra.mrb[22].mxu1 %v1600_v2 }
 0x152   : > { %4784 = vmatprep.mubr.f32.mxu1 %v1601_v15 }
 0x153   : > { %5126 = vmatmul.mubr.f32.gmra.mrb[22].mxu0 %v2936_v30  ;;  %v7026_v30 = vpop.permute.xlu1 %3350 }
 0x154   : > { %5128 = vmatprep.mubr.f32.mxu0 %v2937_v19 }
 0x155   : > { %4785 = vmatmul.mubr.f32.gmra.mrb[24].mxu1 %v1602_v10 }
 0x156   : > { %4787 = vmatprep.mubr.f32.mxu1 %v1603_v51 }
 0x157   : > { %5129 = vmatmul.mubr.f32.gmra.mrb[24].mxu0 %v2938_v45 }
 0x158   : > { %5131 = vmatprep.mubr.f32.mxu0 %v2939_v60 }
 0x159   : > { %4788 = vmatmul.mubr.f32.gmra.mrb[26].mxu1 %v1604_v63 }
 0x15a   : > { %4790 = vmatprep.mubr.f32.mxu1 %v1605_v28 }
 0x15b   : > { %5132 = vmatmul.mubr.f32.gmra.mrb[26].mxu0 %v2940_v26 }
 0x15c   : > { %5134 = vmatprep.mubr.f32.mxu0 %v2941_v40 }
 0x15d   : > { %4791 = vmatmul.mubr.f32.gmra.mrb[28].mxu1 %v1606_v34  ;;  %v7030_v34 = vpop.permute.xlu0 %3355 }
 0x15e   : > { %4793 = vmatprep.mubr.f32.mxu1 %v1607_v47 }
 0x15f   : > { %5135 = vmatmul.mubr.f32.gmra.mrb[28].mxu0 %v2942_v24 }
 0x160   : > { %5137 = vmatprep.mubr.f32.mxu0 %v2943_v42 }
 0x161   : > { %4794 = vmatmul.mubr.f32.gmra.mrb[30].mxu1 %v1608_v48 }
 0x162   : > { %4796 = vmatprep.mubr.f32.mxu1 %v1609_v56  ;;  %v7032_v56 = vpop.permute.xlu1 %3360 }
 0x163   : > { %5138 = vmatmul.mubr.f32.gmra.mrb[30].mxu0 %v2944_v44 }
 0x164   : > { %5140 = vmatprep.mubr.f32.mxu0 %v2945_v55 }
 0x165   : > { %4797 = vmatmul.mubr.f32.gmra.mrb[32].mxu1 %v1610_v52 }
 0x166   : > { %4799 = vmatprep.mubr.f32.mxu1 %v1611_v7 }
 0x167   : > { %5141 = vmatmul.mubr.f32.gmra.mrb[32].mxu0 %v2946_v36 }
 0x168   : > { %5143 = vmatprep.mubr.f32.mxu0 %v2947_v39 }
 0x169   : > { %4800 = vmatmul.mubr.f32.gmra.mrb[34].mxu1 %v1612_v41 }
 0x16b   : > { %5144 = vmatmul.mubr.f32.gmra.mrb[34].mxu0 %v2948_v12 }
 0x1d4   : > { %v4664_v17 = vpop.f32.mrb[0].mxu1 }
 0x1d5   : > { %v1362_v46 = vpop.f32.mrb[1].mxu1 }
 0x1d8   : > { %v4667_v58 = vpop.f32.mrb[2].mxu1 }
 0x1d9   : > { %v1372_v31 = vpop.f32.mrb[3].mxu1 }
 0x1dc   : > { %v4670_v37 = vpop.f32.mrb[4].mxu1 }
 0x1dd   : > { %v1382_v5 = vpop.f32.mrb[5].mxu1 }
 0x1e0   : > { %v4673_v49 = vpop.f32.mrb[6].mxu1 }
 0x1e1   : > { %v6984_v16 = vpop.f32.mrb[7].mxu1 }
 0x1e4   : > { %v6986_v33 = vpop.f32.mrb[8].mxu1 }
 0x1e5   : > { %v6988_v13 = vpop.f32.mrb[9].mxu1 }
 0x1e8   : > { %v6990_v20 = vpop.f32.mrb[10].mxu1 }
 0x1e9   : > { %v6992_v22 = vpop.f32.mrb[11].mxu1 }
 0x1ec   : > { %v6996_v0 = vpop.f32.mrb[12].mxu1 }
 0x1ed   : > { %v6998_v53 = vpop.f32.mrb[13].mxu1 }
 0x1f0   : > { %v7002_v59 = vpop.f32.mrb[14].mxu1 }
 0x1f1   : > { %v7004_v11 = vpop.f32.mrb[15].mxu1 }
 0x1f4   : > { %v7008_v32 = vpop.f32.mrb[16].mxu1 }
 0x1f5   : > { %v7010_v6 = vpop.f32.mrb[17].mxu1 }
 0x1fa   : > { %v5094_v57 = vpop.f32.mrb[0].mxu0 }
 0x1fb   : > { %v5450_v62 = vadd.f32 %v5094_v57, %v4664_v17  ;;  %v3032_v3 = vpop.f32.mrb[1].mxu0 }
 0x1fc   : > { %v5451_v25 = vadd.f32 %v3032_v3, %v1362_v46 }
 0x1fd   : > { %3248 = vst [vmem:[%s7020_s30 + $0x8] sm:$0xff] %v5450_v62  ;;  %v3464_v8 = vmul.f32 %v5450_v62, %v3291_v43 }
 0x1fe   : > { %3247 = vst [vmem:[%s7020_s30] sm:$0xff] %v5451_v25  ;;  %v3463_v9 = vmul.f32 %v5451_v25, %v3286_v23  ;;  %v5097_v2 = vpop.f32.mrb[2].mxu0 }
 0x1ff   : > { %v3542_v15 = vmul.f32 %v5450_v62, %v3464_v8  ;;  %v5452_v19 = vadd.f32 %v5097_v2, %v4667_v58  ;;  %v3042_v10 = vpop.f32.mrb[3].mxu0 }
 0x200   : > { %v3499_v45 = vadd.f32 %v3464_v8, %v3463_v9  ;;  %v3541_v51 = vmul.f32 %v5451_v25, %v3463_v9  ;;  %v5453_v60 = vadd.f32 %v3042_v10, %v1372_v31  ;;  %v7037_v31 = vpop.permute.xlu0 %3365 }
 0x201   : > { %3250 = vst [vmem:[%s7020_s30 + $0x18] sm:$0xff] %v5452_v19  ;;  %v3466_v26 = vmul.f32 %v5452_v19, %v3301_v61 }
 0x202   : > { %v3577_v63 = vadd.f32 %v3542_v15, %v3541_v51  ;;  %3249 = vst [vmem:[%s7020_s30 + $0x10] sm:$0xff] %v5453_v60  ;;  %v3465_v28 = vmul.f32 %v5453_v60, %v3296_v54  ;;  %v5100_v40 = vpop.f32.mrb[4].mxu0 }
 0x203   : > { %v5454_v24 = vadd.f32 %v5100_v40, %v4670_v37  ;;  %v3052_v47 = vpop.f32.mrb[5].mxu0  ;;  %v3544_v52 = vmul.f32 %v5452_v19, %v3466_v26 }
 0x204   : > { %v3500_v42 = vadd.f32 %v3499_v45, %v3465_v28  ;;  %v3543_v48 = vmul.f32 %v5453_v60, %v3465_v28  ;;  %v5455_v44 = vadd.f32 %v3052_v47, %v1382_v5  ;;  %v7050_v19 = vpop.permute.xlu0 %3375 }
 0x205   : > { %3252 = vst [vmem:[%s7020_s30 + $0x28] sm:$0xff] %v5454_v24  ;;  %v3468_v55 = vmul.f32 %v5454_v24, %v3311_v27 }
 0x206   : > { %v3578_v36 = vadd.f32 %v3577_v63, %v3543_v48  ;;  %3251 = vst [vmem:[%s7020_s30 + $0x20] sm:$0xff] %v5455_v44  ;;  %v3467_v7 = vmul.f32 %v5455_v44, %v3306_v4  ;;  %v3501_v39 = vadd.f32 %v3500_v42, %v3466_v26  ;;  %v5103_v41 = vpop.f32.mrb[6].mxu0 }
 0x207   : > { %v5456_v12 = vadd.f32 %v5103_v41, %v4673_v49  ;;  %v3062_v50 = vpop.f32.mrb[7].mxu0  ;;  %v3546_v54 = vmul.f32 %v5454_v24, %v3468_v55  ;;  %v7042_v49 = vpop.permute.xlu1 %3370 }
 0x208   : > { %v3502_v17 = vadd.f32 %v3501_v39, %v3467_v7  ;;  %v3545_v46 = vmul.f32 %v5455_v44, %v3467_v7  ;;  %v3579_v23 = vadd.f32 %v3578_v36, %v3544_v52  ;;  %v5457_v58 = vadd.f32 %v3062_v50, %v6984_v16 }
 0x209   : > { %3254 = vst [vmem:[%s7020_s30 + $0x38] sm:$0xff] %v5456_v12  ;;  %v3470_v5 = vmul.f32 %v5456_v12, %v3321_v35 }
 0x20a   : > { %v3580_v37 = vadd.f32 %v3579_v23, %v3545_v46  ;;  %3253 = vst [vmem:[%s7020_s30 + $0x30] sm:$0xff] %v5457_v58  ;;  %v3469_v43 = vmul.f32 %v5457_v58, %v6994_v29  ;;  %v3503_v61 = vadd.f32 %v3502_v17, %v3468_v55  ;;  %v5106_v4 = vpop.f32.mrb[8].mxu0  ;;  %v7062_v55 = vpop.permute.xlu0 %3385 }
 0x20b   : > { %v5458_v27 = vadd.f32 %v5106_v4, %v6986_v33  ;;  %v3072_v57 = vpop.f32.mrb[9].mxu0  ;;  %v3548_v35 = vmul.f32 %v5456_v12, %v3470_v5 }
 0x20c   : > { %v3504_v62 = vadd.f32 %v3503_v61, %v3469_v43  ;;  %v3547_v16 = vmul.f32 %v5457_v58, %v3469_v43  ;;  %v3581_v3 = vadd.f32 %v3580_v37, %v3546_v54  ;;  %v5459_v25 = vadd.f32 %v3072_v57, %v6988_v13 }
 0x20d   : > { %3256 = vst [vmem:[%s7020_s30 + $0x48] sm:$0xff] %v5458_v27  ;;  %v3472_v8 = vmul.f32 %v5458_v27, %v7006_v21  ;;  %v7054_v21 = vpop.permute.xlu1 %3380 }
 0x20e   : > { %v3582_v9 = vadd.f32 %v3581_v3, %v3547_v16  ;;  %3255 = vst [vmem:[%s7020_s30 + $0x40] sm:$0xff] %v5459_v25  ;;  %v3471_v29 = vmul.f32 %v5459_v25, %v7000_v1  ;;  %v3505_v2 = vadd.f32 %v3504_v62, %v3470_v5  ;;  %v5109_v15 = vpop.f32.mrb[10].mxu0  ;;  %v7074_v5 = vpop.permute.xlu0 %3395 }
 0x20f   : > { %v5460_v33 = vadd.f32 %v5109_v15, %v6990_v20  ;;  %v3082_v10 = vpop.f32.mrb[11].mxu0  ;;  %v3550_v63 = vmul.f32 %v5458_v27, %v3472_v8 }
 0x210   : > { %v3506_v45 = vadd.f32 %v3505_v2, %v3471_v29  ;;  %v3549_v51 = vmul.f32 %v5459_v25, %v3471_v29  ;;  %v3583_v13 = vadd.f32 %v3582_v9, %v3548_v35  ;;  %v5461_v60 = vadd.f32 %v3082_v10, %v6992_v22 }
 0x211   : > { %3258 = vst [vmem:[%s7020_s30 + $0x58] sm:$0xff] %v5460_v33  ;;  %v3474_v1 = vmul.f32 %v5460_v33, %v7015_v18  ;;  %v3391_v39 = vpop.permute.xlu1 %3390 }
 0x212   : > { %v3584_v26 = vadd.f32 %v3583_v13, %v3549_v51  ;;  %3257 = vst [vmem:[%s7020_s30 + $0x50] sm:$0xff] %v5461_v60  ;;  %v3473_v28 = vmul.f32 %v5461_v60, %v7013_v38  ;;  %v3507_v40 = vadd.f32 %v3506_v45, %v3472_v8  ;;  %v5112_v20 = vpop.f32.mrb[12].mxu0 }
 0x213   : > { %v5462_v24 = vadd.f32 %v5112_v20, %v6996_v0  ;;  %v3092_v47 = vpop.f32.mrb[13].mxu0  ;;  %v3552_v52 = vmul.f32 %v5460_v33, %v3474_v1  ;;  %v3406_v33 = vpop.permute.xlu0 %3405 }
 0x214   : > { %v3508_v42 = vadd.f32 %v3507_v40, %v3473_v28  ;;  %v3551_v48 = vmul.f32 %v5461_v60, %v3473_v28  ;;  %v3585_v22 = vadd.f32 %v3584_v26, %v3550_v63  ;;  %v5463_v44 = vadd.f32 %v3092_v47, %v6998_v53 }
 0x215   : > { %3260 = vst [vmem:[%s7020_s30 + $0x68] sm:$0xff] %v5462_v24  ;;  %v3476_v18 = vmul.f32 %v5462_v24, %v7026_v30  ;;  %v3401_v57 = vpop.permute.xlu1 %3400 }
 0x216   : > { %v3586_v36 = vadd.f32 %v3585_v22, %v3551_v48  ;;  %3259 = vst [vmem:[%s7020_s30 + $0x60] sm:$0xff] %v5463_v44  ;;  %v3475_v38 = vmul.f32 %v5463_v44, %v7022_v14  ;;  %v3509_v7 = vadd.f32 %v3508_v42, %v3474_v1  ;;  %v5115_v0 = vpop.f32.mrb[14].mxu0 }
 0x217   : > { %v5464_v41 = vadd.f32 %v5115_v0, %v7002_v59  ;;  %v3102_v12 = vpop.f32.mrb[15].mxu0  ;;  %v3554_v23 = vmul.f32 %v5462_v24, %v3476_v18 }
 0x218   : > { %v3510_v50 = vadd.f32 %v3509_v7, %v3475_v38  ;;  %v3553_v53 = vmul.f32 %v5463_v44, %v3475_v38  ;;  %v3587_v17 = vadd.f32 %v3586_v36, %v3552_v52  ;;  %v5465_v46 = vadd.f32 %v3102_v12, %v7004_v11  ;;  %v3416_v36 = vpop.permute.xlu0 %3415 }
 0x219   : > { %3262 = vst [vmem:[%s7020_s30 + $0x78] sm:$0xff] %v5464_v41  ;;  %v3478_v58 = vmul.f32 %v5464_v41, %v7032_v56  ;;  %v3411_v26 = vpop.permute.xlu1 %3410 }
 0x21a   : > { %v3588_v30 = vadd.f32 %v3587_v17, %v3553_v53  ;;  %3261 = vst [vmem:[%s7020_s30 + $0x70] sm:$0xff] %v5465_v46  ;;  %v3477_v14 = vmul.f32 %v5465_v46, %v7030_v34  ;;  %v3511_v54 = vadd.f32 %v3510_v50, %v3476_v18  ;;  %v5118_v37 = vpop.f32.mrb[16].mxu0 }
 0x21b   : > { %v5466_v59 = vadd.f32 %v5118_v37, %v7008_v32  ;;  %v3112_v43 = vpop.f32.mrb[17].mxu0  ;;  %v3556_v34 = vmul.f32 %v5464_v41, %v3478_v58 }
 0x21c   : > { %v3512_v61 = vadd.f32 %v3511_v54, %v3477_v14  ;;  %v3555_v4 = vmul.f32 %v5465_v46, %v3477_v14  ;;  %v3589_v11 = vadd.f32 %v3588_v30, %v3554_v23  ;;  %v5467_v27 = vadd.f32 %v3112_v43, %v7010_v6  ;;  %v4777_v62 = vpop.f32.mrb[18].mxu1 }
 0x21d   : > { %3264 = vst [vmem:[%s7020_s30 + $0x88] sm:$0xff] %v5466_v59  ;;  %v3480_v56 = vmul.f32 %v5466_v59, %v7042_v49  ;;  %v1786_v8 = vpop.f32.mrb[19].mxu1  ;;  %v3421_v53 = vpop.permute.xlu1 %3420 }
 0x21e   : > { %v3590_v16 = vadd.f32 %v3589_v11, %v3555_v4  ;;  %3263 = vst [vmem:[%s7020_s30 + $0x80] sm:$0xff] %v5467_v27  ;;  %v3479_v3 = vmul.f32 %v5467_v27, %v7037_v31  ;;  %v3513_v25 = vadd.f32 %v3512_v61, %v3478_v58  ;;  %v5121_v32 = vpop.f32.mrb[18].mxu0  ;;  %v3426_v11 = vpop.permute.xlu0 %3425 }
 0x21f   : > { %v5468_v35 = vadd.f32 %v5121_v32, %v4777_v62  ;;  %v3122_v9 = vpop.f32.mrb[19].mxu0  ;;  %v3558_v10 = vmul.f32 %v5466_v59, %v3480_v56 }
 0x220   : > { %v3514_v29 = vadd.f32 %v3513_v25, %v3479_v3  ;;  %v3557_v2 = vmul.f32 %v5467_v27, %v3479_v3  ;;  %v3591_v6 = vadd.f32 %v3590_v16, %v3556_v34  ;;  %v5469_v15 = vadd.f32 %v3122_v9, %v1786_v8  ;;  %v4780_v49 = vpop.f32.mrb[20].mxu1 }
 0x221   : > { %3266 = vst [vmem:[%s7020_s30 + $0x98] sm:$0xff] %v5468_v35  ;;  %v3482_v51 = vmul.f32 %v5468_v35, %v7054_v21  ;;  %v1796_v63 = vpop.f32.mrb[21].mxu1  ;;  %v3431_v25 = vpop.permute.xlu1 %3430 }
 0x222   : > { %v3592_v45 = vadd.f32 %v3591_v6, %v3557_v2  ;;  %3265 = vst [vmem:[%s7020_s30 + $0x90] sm:$0xff] %v5469_v15  ;;  %v3481_v31 = vmul.f32 %v5469_v15, %v7050_v19  ;;  %v3515_v13 = vadd.f32 %v3514_v29, %v3480_v56  ;;  %v5124_v60 = vpop.f32.mrb[20].mxu0 }
 0x223   : > { %v5470_v1 = vadd.f32 %v5124_v60, %v4780_v49  ;;  %v3132_v28 = vpop.f32.mrb[21].mxu0  ;;  %v3560_v22 = vmul.f32 %v5468_v35, %v3482_v51 }
 0x224   : > { %v3516_v40 = vadd.f32 %v3515_v13, %v3481_v31  ;;  %v3559_v20 = vmul.f32 %v5469_v15, %v3481_v31  ;;  %v3593_v24 = vadd.f32 %v3592_v45, %v3558_v10  ;;  %v5471_v47 = vadd.f32 %v3132_v28, %v1796_v63  ;;  %v4783_v48 = vpop.f32.mrb[22].mxu1  ;;  %v3436_v13 = vpop.permute.xlu0 %3435 }
 0x225   : > { %3268 = vst [vmem:[%s7020_s30 + $0xa8] sm:$0xff] %v5470_v1  ;;  %v3484_v42 = vmul.f32 %v5470_v1, %v3391_v39  ;;  %v1806_v52 = vpop.f32.mrb[23].mxu1 }
 0x226   : > { %v3594_v21 = vadd.f32 %v3593_v24, %v3559_v20  ;;  %3267 = vst [vmem:[%s7020_s30 + $0xa0] sm:$0xff] %v5471_v47  ;;  %v3483_v19 = vmul.f32 %v5471_v47, %v7062_v55  ;;  %v3517_v44 = vadd.f32 %v3516_v40, %v3482_v51  ;;  %v5127_v18 = vpop.f32.mrb[22].mxu0  ;;  %v3441_v20 = vpop.permute.xlu1 %3440 }
 0x227   : > { %v5472_v38 = vadd.f32 %v5127_v18, %v4783_v48  ;;  %v3142_v7 = vpop.f32.mrb[23].mxu0  ;;  %v3562_v39 = vmul.f32 %v5470_v1, %v3484_v42 }
 0x228   : > { %v3518_v0 = vadd.f32 %v3517_v44, %v3483_v19  ;;  %v3561_v41 = vmul.f32 %v5471_v47, %v3483_v19  ;;  %v3595_v12 = vadd.f32 %v3594_v21, %v3560_v22  ;;  %v5473_v50 = vadd.f32 %v3142_v7, %v1806_v52  ;;  %v4786_v17 = vpop.f32.mrb[24].mxu1 }
 0x229   : > { %3270 = vst [vmem:[%s7020_s30 + $0xb8] sm:$0xff] %v5472_v38  ;;  %v3486_v23 = vmul.f32 %v5472_v38, %v3401_v57  ;;  %v1816_v14 = vpop.f32.mrb[25].mxu1 }
 0x22a   : > { %v3596_v46 = vadd.f32 %v3595_v12, %v3561_v41  ;;  %3269 = vst [vmem:[%s7020_s30 + $0xb0] sm:$0xff] %v5473_v50  ;;  %v3485_v55 = vmul.f32 %v5473_v50, %v7074_v5  ;;  %v3519_v30 = vadd.f32 %v3518_v0, %v3484_v42  ;;  %v5130_v58 = vpop.f32.mrb[24].mxu0  ;;  %v3446_v41 = vpop.permute.xlu0 %3445 }
 0x22b   : > { %v5474_v54 = vadd.f32 %v5130_v58, %v4786_v17  ;;  %v3152_v37 = vpop.f32.mrb[25].mxu0  ;;  %v3564_v62 = vmul.f32 %v5472_v38, %v3486_v23 }
 0x22c   : > { %v3520_v59 = vadd.f32 %v3519_v30, %v3485_v55  ;;  %v3563_v43 = vmul.f32 %v5473_v50, %v3485_v55  ;;  %v3597_v61 = vadd.f32 %v3596_v46, %v3562_v39  ;;  %v5475_v4 = vadd.f32 %v3152_v37, %v1816_v14  ;;  %v4789_v56 = vpop.f32.mrb[26].mxu1  ;;  %v3451_v30 = vpop.permute.xlu1 %3450 }
 0x22d   : > { %3272 = vst [vmem:[%s7020_s30 + $0xc8] sm:$0xff] %v5474_v54  ;;  %v3488_v27 = vmul.f32 %v5474_v54, %v3411_v26  ;;  %v1826_v3 = vpop.f32.mrb[27].mxu1 }
 0x22e   : > { %v3598_v57 = vadd.f32 %v3597_v61, %v3563_v43  ;;  %3271 = vst [vmem:[%s7020_s30 + $0xc0] sm:$0xff] %v5475_v4  ;;  %v3487_v34 = vmul.f32 %v5475_v4, %v3406_v33  ;;  %v3521_v5 = vadd.f32 %v3520_v59, %v3486_v23  ;;  %v5133_v16 = vpop.f32.mrb[26].mxu0 }
 0x22f   : > { %v5476_v32 = vadd.f32 %v5133_v16, %v4789_v56  ;;  %v3162_v8 = vpop.f32.mrb[27].mxu0  ;;  %v3566_v6 = vmul.f32 %v5474_v54, %v3488_v27 }
 0x230   : > { %v3522_v35 = vadd.f32 %v3521_v5, %v3487_v34  ;;  %v3565_v9 = vmul.f32 %v5475_v4, %v3487_v34  ;;  %v3599_v29 = vadd.f32 %v3598_v57, %v3564_v62  ;;  %v5477_v2 = vadd.f32 %v3162_v8, %v1826_v3  ;;  %v4792_v15 = vpop.f32.mrb[28].mxu1 }
 0x231   : > { %3274 = vst [vmem:[%s7020_s30 + $0xd8] sm:$0xff] %v5476_v32  ;;  %v3490_v49 = vmul.f32 %v5476_v32, %v3421_v53  ;;  %v1836_v31 = vpop.f32.mrb[29].mxu1 }
 0x232   : > { %v3600_v10 = vadd.f32 %v3599_v29, %v3565_v9  ;;  %3273 = vst [vmem:[%s7020_s30 + $0xd0] sm:$0xff] %v5477_v2  ;;  %v3489_v45 = vmul.f32 %v5477_v2, %v3416_v36  ;;  %v3523_v33 = vadd.f32 %v3522_v35, %v3488_v27  ;;  %v5136_v51 = vpop.f32.mrb[28].mxu0  ;;  %v3456_v35 = vpop.permute.xlu0 %3455 }
 0x233   : > { %v5478_v60 = vadd.f32 %v5136_v51, %v4792_v15  ;;  %v3172_v63 = vpop.f32.mrb[29].mxu0  ;;  %v3568_v42 = vmul.f32 %v5476_v32, %v3490_v49  ;;  %v3461_v9 = vpop.permute.xlu1 %3460 }
 0x234   : > { %v3524_v26 = vadd.f32 %v3523_v33, %v3489_v45  ;;  %v3567_v1 = vmul.f32 %v5477_v2, %v3489_v45  ;;  %v3601_v28 = vadd.f32 %v3600_v10, %v3566_v6  ;;  %v5479_v40 = vadd.f32 %v3172_v63, %v1836_v31  ;;  %v4795_v47 = vpop.f32.mrb[30].mxu1 }
 0x235   : > { %3276 = vst [vmem:[%s7020_s30 + $0xe8] sm:$0xff] %v5478_v60  ;;  %v3492_v24 = vmul.f32 %v5478_v60, %v3431_v25  ;;  %v1846_v44 = vpop.f32.mrb[31].mxu1 }
 0x236   : > { %v3602_v48 = vadd.f32 %v3601_v28, %v3567_v1  ;;  %3275 = vst [vmem:[%s7020_s30 + $0xe0] sm:$0xff] %v5479_v40  ;;  %v3491_v22 = vmul.f32 %v5479_v40, %v3426_v11  ;;  %v3525_v21 = vadd.f32 %v3524_v26, %v3490_v49  ;;  %v5139_v19 = vpop.f32.mrb[30].mxu0 }
 0x237   : > { %v5480_v18 = vadd.f32 %v5139_v19, %v4795_v47  ;;  %v3182_v52 = vpop.f32.mrb[31].mxu0  ;;  %v3570_v12 = vmul.f32 %v5478_v60, %v3492_v24  ;;  %v3622_v19 = vld [vmem:[%s6981_s27 + $0x1] sm:$0x1] }
 0x238   : > { %v3526_v36 = vadd.f32 %v3525_v21, %v3491_v22  ;;  %v3569_v38 = vmul.f32 %v5479_v40, %v3491_v22  ;;  %v3603_v7 = vadd.f32 %v3602_v48, %v3568_v42  ;;  %v5481_v0 = vadd.f32 %v3182_v52, %v1846_v44  ;;  %v4798_v50 = vpop.f32.mrb[32].mxu1  ;;  %v3619_v48 = vld [vmem:[%s6981_s27] sm:$0x1] }
 0x239   : > { %3278 = vst [vmem:[%s7020_s30 + $0xf8] sm:$0xff] %v5480_v18  ;;  %v3494_v39 = vmul.f32 %v5480_v18, %v3441_v20  ;;  %v1856_v55 = vpop.f32.mrb[33].mxu1 }
 0x23a   : > { %v3604_v53 = vadd.f32 %v3603_v7, %v3569_v38  ;;  %3277 = vst [vmem:[%s7020_s30 + $0xf0] sm:$0xff] %v5481_v0  ;;  %v3493_v17 = vmul.f32 %v5481_v0, %v3436_v13  ;;  %v3527_v46 = vadd.f32 %v3526_v36, %v3492_v24  ;;  %v5142_v23 = vpop.f32.mrb[32].mxu0 }
 0x23b   : > { %v5482_v58 = vadd.f32 %v5142_v23, %v4798_v50  ;;  %v3192_v14 = vpop.f32.mrb[33].mxu0  ;;  %v3572_v11 = vmul.f32 %v5480_v18, %v3494_v39 }
 0x23c   : > { %v3528_v54 = vadd.f32 %v3527_v46, %v3493_v17  ;;  %v3571_v37 = vmul.f32 %v5481_v0, %v3493_v17  ;;  %v3605_v59 = vadd.f32 %v3604_v53, %v3570_v12  ;;  %v5483_v43 = vadd.f32 %v3192_v14, %v1856_v55  ;;  %v4801_v4 = vpop.f32.mrb[34].mxu1 }
 0x23d   : > { %3280 = vst [vmem:[%s7020_s30 + $0x108] sm:$0xff] %v5482_v58  ;;  %v3496_v61 = vmul.f32 %v5482_v58, %v3451_v30  ;;  %v1866_v34 = vpop.f32.mrb[35].mxu1 }
 0x23e   : > { %v3606_v27 = vadd.f32 %v3605_v59, %v3571_v37  ;;  %3279 = vst [vmem:[%s7020_s30 + $0x100] sm:$0xff] %v5483_v43  ;;  %v3495_v56 = vmul.f32 %v5483_v43, %v3446_v41  ;;  %v3529_v62 = vadd.f32 %v3528_v54, %v3494_v39  ;;  %v5145_v57 = vpop.f32.mrb[34].mxu0 }
 0x23f   : > { %v5484_v5 = vadd.f32 %v5145_v57, %v4801_v4  ;;  %v3202_v16 = vpop.f32.mrb[35].mxu0  ;;  %v3574_v29 = vmul.f32 %v5482_v58, %v3496_v61 }
 0x240   : > { %v3530_v3 = vadd.f32 %v3529_v62, %v3495_v56  ;;  %v3573_v25 = vmul.f32 %v5483_v43, %v3495_v56  ;;  %v3607_v32 = vadd.f32 %v3606_v27, %v3572_v11  ;;  %v5485_v8 = vadd.f32 %v3202_v16, %v1866_v34 }
 0x241   : > { %3282 = vst [vmem:[%s7020_s30 + $0x118] sm:$0xff] %v5484_v5  ;;  %v3498_v6 = vmul.f32 %v5484_v5, %v3461_v9 }
 0x242   : > { %v3608_v2 = vadd.f32 %v3607_v32, %v3573_v25  ;;  %3281 = vst [vmem:[%s7020_s30 + $0x110] sm:$0xff] %v5485_v8  ;;  %v3497_v15 = vmul.f32 %v5485_v8, %v3456_v35  ;;  %v3531_v10 = vadd.f32 %v3530_v3, %v3496_v61 }
 0x243   : > { %v3576_v51 = vmul.f32 %v5484_v5, %v3498_v6 }
 0x244   : > { %v3532_v49 = vadd.f32 %v3531_v10, %v3497_v15  ;;  %v3575_v45 = vmul.f32 %v5485_v8, %v3497_v15  ;;  %v3609_v33 = vadd.f32 %v3608_v2, %v3574_v29 }
 0x246   : > { %v3533_v31 = vadd.f32 %v3532_v49, %v3498_v6  ;;  %v3610_v13 = vadd.f32 %v3609_v33, %v3575_v45 }
 0x248   : > { %v3534_v60 = vrot.slane %v3533_v31, 4  ;;  %v3611_v63 = vadd.f32 %v3610_v13, %v3576_v51 }
 0x24a   : > { %v3535_v26 = vadd.f32 %v3534_v60, %v3533_v31  ;;  %v3612_v1 = vrot.slane %v3611_v63, 4 }
 0x24c   : > { %v3536_v28 = vrot.slane %v3535_v26, 2  ;;  %v3613_v40 = vadd.f32 %v3612_v1, %v3611_v63 }
 0x24e   : > { %v3537_v20 = vadd.f32 %v3536_v28, %v3535_v26  ;;  %v3614_v24 = vrot.slane %v3613_v40, 2 }
 0x250   : > { %v3538_v47 = vrot.slane %v3537_v20, 1  ;;  %v3615_v42 = vadd.f32 %v3614_v24, %v3613_v40 }
 0x252   : > { %v3539_v22 = vadd.f32 %v3538_v47, %v3537_v20  ;;  %v3616_v21 = vrot.slane %v3615_v42, 1 }
 0x254   : > { %v3617_v44 = vadd.f32 %v3616_v21, %v3615_v42  ;;  %v3620_v18 = vadd.f32 %v3619_v48, %v3539_v22 }
 0x256   : > { %3621 = vst [vmem:[%s6981_s27] sm:$0x1] %v3620_v18  ;;  %v3623_v52 = vadd.f32 %v3622_v19, %v3617_v44 }
 0x258   : > { %3624 = vst [vmem:[%s6981_s27 + $0x1] sm:$0x1] %v3623_v52 }
 0x259 PF: > { %s15_s17 = sadd.s32 1, %s5790_s17   ;;  %s7122_s15 = smov %s5786_s16 }
 0x25a   : > { %p12_p5 = scmp.ge.s32.totalorder %s15_s17, 4   ;;  %s7123_s16 = smov %s7125_s18 }
 0x25c   :  { %14 = sbr.rel (!%p12_p5) target bundleno = 2 (0x2), region = 89 }

</bundles_post_ra>
